<compile_context>
chip_gen: v7x
topology: tpu7x:2x2x1
jax: 0.10.0
libtpu: 0.0.40
codegen_flags: <defaults>
</compile_context>

<pallas_src>
import functools

import jax
import jax.numpy as jnp
import numpy as np
from jax.experimental import pallas as pl
from jax.experimental.pallas import tpu as pltpu

_EPS = 1e-12          # matches torch.nn.functional.normalize default eps
_EPS2 = _EPS * _EPS   # clamp on the squared norm (== clamping the norm at eps)


def _round_up(x, m):
    return -(-x // m) * m


def _nvl_kernel(*refs, has_valid):
    if has_valid:
        sel_ref, co_ref, valid_ref, out_ref = refs
    else:
        sel_ref, co_ref, out_ref = refs
        valid_ref = None

    bt = co_ref.shape[1]
    ft = sel_ref.shape[2]

    # Edge-difference selection matrices ({-1, 0, +1} entries):
    #   d10 = onehot(corner1) - onehot(corner0)
    #   d20 = onehot(corner2) - onehot(corner0)
    #   d21 = onehot(corner2) - onehot(corner1)
    d10 = sel_ref[0]
    d20 = sel_ref[1]
    d21 = sel_ref[2]

    # 6 coordinate component slabs: out x,y,z ; gt x,y,z  -- each (bt, V_pad).
    co = [co_ref[c] for c in range(6)]

    def edge(base, dmat):
        # (bt, V_pad) @ (V_pad, ft) -> (bt, ft) on the MXU.  Exact gather +
        # subtract: dmat entries are {-1,0,+1} (exact in bf16 chunks) and the
        # HIGHEST-precision f32 path keeps the coordinates exact; each output
        # element sums exactly two +/-coordinate terms.
        return tuple(
            jnp.dot(co[base + c], dmat,
                    precision=jax.lax.Precision.HIGHEST,
                    preferred_element_type=jnp.float32)
            for c in range(3))

    e1o = edge(0, d10)      # out: corner1 - corner0
    e2o = edge(0, d20)      # out: corner2 - corner0
    e3o = edge(0, d21)      # out: corner2 - corner1
    e1g = edge(3, d10)      # gt:  corner1 - corner0
    e2g = edge(3, d20)      # gt:  corner2 - corner0

    def normalize(v):
        vx, vy, vz = v
        ss = vx * vx + vy * vy + vz * vz
        inv = jax.lax.rsqrt(jnp.maximum(ss, jnp.float32(_EPS2)))
        return vx * inv, vy * inv, vz * inv

    v1ox, v1oy, v1oz = normalize(e1o)
    v2ox, v2oy, v2oz = normalize(e2o)
    v3ox, v3oy, v3oz = normalize(e3o)
    v1gx, v1gy, v1gz = normalize(e1g)
    v2gx, v2gy, v2gz = normalize(e2g)

    # Cross product of the two gt edges, fully component-wise.
    nx = v1gy * v2gz - v1gz * v2gy
    ny = v1gz * v2gx - v1gx * v2gz
    nz = v1gx * v2gy - v1gy * v2gx
    nx, ny, nz = normalize((nx, ny, nz))

    cos1 = jnp.abs(v1ox * nx + v1oy * ny + v1oz * nz)
    cos2 = jnp.abs(v2ox * nx + v2oy * ny + v2oz * nz)
    cos3 = jnp.abs(v3ox * nx + v3oy * ny + v3oz * nz)
    w = cos1 + cos2 + cos3                                  # (bt, ft)

    # Tile-aligned partial-sum reduction: pure (8, 128) vreg adds.
    acc = jnp.zeros((8, 128), jnp.float32)
    for bi in range(bt // 8):
        r0 = bi * 8
        vblk = valid_ref[r0:r0 + 8, :] if has_valid else None      # (8, 128)
        for fi in range(ft // 128):
            c0 = fi * 128
            blk = w[r0:r0 + 8, c0:c0 + 128]
            if has_valid:
                blk = blk * vblk
            acc = acc + blk

    out_ref[0, 0] = acc


def normal_vector_loss(coord_out, coord_gt, face, is_valid=None, *,
                       max_batch_tile=None,
                       max_face_tile=512,
                       vmem_block_budget=8 * 1024 * 1024):
    """coord_out, coord_gt: (B, V, 3); face: (F, 3) int; returns scalar mean loss."""
    B, V, C = coord_out.shape
    assert C == 3
    face = jnp.asarray(face, dtype=jnp.int32)
    F = face.shape[0]

    # ---- tiling --------------------------------------------------------
    v_pad = max(128, _round_up(V, 128))                  # lane dim of coord slabs
    f_pad = max(128, _round_up(F, 128))
    ft = min(max(128, _round_up(max_face_tile, 128)), f_pad)
    f_pad = _round_up(f_pad, ft)
    nf = f_pad // ft

    b_pad8 = _round_up(B, 8)
    # Per-step VMEM accounting: double-buffered inputs + elementwise temps.
    sel_bytes = 2 * 3 * v_pad * ft * 4
    per_row = 2 * 6 * v_pad * 4 + 40 * ft * 4 + 2 * 128 * 4
    avail = max(vmem_block_budget - sel_bytes, 8 * per_row)
    bt = max(8, min(128, (avail // per_row) // 8 * 8))
    if max_batch_tile is not None:
        bt = max(8, min(bt, (max_batch_tile // 8) * 8))
    # v7x megacore: prefer >=2 grid steps when there is only one face tile.
    if nf == 1 and b_pad8 >= 16:
        bt = min(bt, max(8, (b_pad8 // 2) // 8 * 8))
    bt = min(bt, b_pad8)
    b_pad = _round_up(b_pad8, bt)
    nb = b_pad // bt

    # ---- small host-side glue (tiny arrays only) -----------------------
    # Edge-difference selection matrices, padded faces get corner index -1
    # (matches no vertex -> zero column -> zero contribution).
    face_pad = jnp.pad(face, ((0, f_pad - F), (0, 0)), constant_values=-1)
    vid = jnp.arange(v_pad, dtype=jnp.int32)
    onehot = (face_pad.T[:, None, :] == vid[None, :, None]).astype(jnp.float32)
    sel = jnp.stack([onehot[1] - onehot[0],
                     onehot[2] - onehot[0],
                     onehot[2] - onehot[1]], axis=0)       # (3, v_pad, f_pad)

    co = jnp.concatenate(
        [jnp.transpose(jnp.asarray(coord_out, jnp.float32), (2, 0, 1)),
         jnp.transpose(jnp.asarray(coord_gt, jnp.float32), (2, 0, 1))],
        axis=0)                                            # (6, B, V)
    co = jnp.pad(co, ((0, 0), (0, b_pad - B), (0, v_pad - V)))

    has_valid = is_valid is not None
    inputs = [sel, co]
    in_specs = [
        pl.BlockSpec((3, v_pad, ft), lambda jf, ib: (0, 0, jf)),
        pl.BlockSpec((6, bt, v_pad), lambda jf, ib: (0, ib, 0)),
    ]

    if has_valid:
        v = jnp.asarray(is_valid, dtype=jnp.float32)
        if v.size != B:
            # TODO(synk): per-element is_valid of shape (B, 3F, 1) is not
            # kernelized; only per-sample validity is supported here.
            raise NotImplementedError(
                "normal_vector_loss kernel supports per-sample is_valid only")
        v = jnp.pad(jnp.reshape(v, (B,)), (0, b_pad - B))
        valid2d = jnp.broadcast_to(v[:, None], (b_pad, 128))
        inputs.append(valid2d)
        in_specs.append(pl.BlockSpec((bt, 128), lambda jf, ib: (ib, 0)))

    kernel = functools.partial(_nvl_kernel, has_valid=has_valid)

    partials = pl.pallas_call(
        kernel,
        out_shape=jax.ShapeDtypeStruct((nf, nb, 8, 128), jnp.float32),
        grid_spec=pltpu.PrefetchScalarGridSpec(
            num_scalar_prefetch=0,
            grid=(nf, nb),
            in_specs=in_specs,
            out_specs=pl.BlockSpec((1, 1, 8, 128),
                                   lambda jf, ib: (jf, ib, 0, 0)),
        ),
        compiler_params=pltpu.CompilerParams(
            dimension_semantics=("parallel", "parallel"),
            vmem_limit_bytes=48 * 1024 * 1024,
        ),
    )(*inputs)

    # Padded rows / faces contribute exactly 0, so the denominator is unpadded.
    return jnp.sum(partials) / jnp.float32(B * 3 * F)


def _reference_loss_np(coord_out, coord_gt, face, is_valid=None):
    """float64 NumPy reference mirroring the PyTorch forward exactly."""
    co = np.asarray(coord_out, np.float64)
    cg = np.asarray(coord_gt, np.float64)
    f = np.asarray(face, np.int64)

    def normalize(v):
        n = np.linalg.norm(v, axis=2, keepdims=True)
        return v / np.maximum(n, _EPS)

    v1_out = normalize(co[:, f[:, 1], :] - co[:, f[:, 0], :])
    v2_out = normalize(co[:, f[:, 2], :] - co[:, f[:, 0], :])
    v3_out = normalize(co[:, f[:, 2], :] - co[:, f[:, 1], :])
    v1_gt = normalize(cg[:, f[:, 1], :] - cg[:, f[:, 0], :])
    v2_gt = normalize(cg[:, f[:, 2], :] - cg[:, f[:, 0], :])
    normal_gt = normalize(np.cross(v1_gt, v2_gt, axis=2))
    cos1 = np.abs(np.sum(v1_out * normal_gt, 2, keepdims=True))
    cos2 = np.abs(np.sum(v2_out * normal_gt, 2, keepdims=True))
    cos3 = np.abs(np.sum(v3_out * normal_gt, 2, keepdims=True))
    loss = np.concatenate((cos1, cos2, cos3), 1)
    if is_valid is not None:
        loss = loss * np.asarray(is_valid, np.float64)
    return loss.mean()


def _make_faces(num_faces, num_verts, seed=0):
    """Deterministic faces with three *distinct* corners (like a real mesh)."""
    rng = np.random.RandomState(seed)
    f = np.zeros((num_faces, 3), np.int32)
    for i in range(num_faces):
        f[i] = rng.choice(num_verts, size=3, replace=False)
    return f


if __name__ == "__main__":
    key = jax.random.PRNGKey(0)
    k1, k2, k3, k4 = jax.random.split(key, 4)

    # --- Case 1: no is_valid, F < 128 (lane padding), single grid step -----
    B, V, NF = 2, 32, 16
    face = _make_faces(NF, V, seed=0)
    coord_out = jax.random.normal(k1, (B, V, 3), dtype=jnp.float32)
    coord_gt = jax.random.normal(k2, (B, V, 3), dtype=jnp.float32)

    loss = jax.block_until_ready(normal_vector_loss(coord_out, coord_gt, face))
    ref = _reference_loss_np(coord_out, coord_gt, face)
    np.testing.assert_allclose(np.asarray(loss), ref, rtol=1e-4, atol=1e-4)

    # --- Case 2: per-sample is_valid, F not a multiple of 128, 2 batch blocks
    B2, V2, NF2 = 12, 64, 200
    face2 = _make_faces(NF2, V2, seed=1)
    coord_out2 = jax.random.normal(k3, (B2, V2, 3), dtype=jnp.float32)
    coord_gt2 = jax.random.normal(k4, (B2, V2, 3), dtype=jnp.float32)
    is_valid2 = (np.arange(B2) % 3 != 0).astype(np.float32).reshape(B2, 1, 1)

    loss2 = jax.block_until_ready(
        normal_vector_loss(coord_out2, coord_gt2, face2, is_valid2,
                           max_batch_tile=8))
    ref2 = _reference_loss_np(coord_out2, coord_gt2, face2, is_valid2)
    np.testing.assert_allclose(np.asarray(loss2), ref2, rtol=1e-4, atol=1e-4)

    # --- Case 3: same data, exercising face-axis tiling (2x2 parallel grid) -
    loss3 = jax.block_until_ready(
        normal_vector_loss(coord_out2, coord_gt2, face2, is_valid2,
                           max_batch_tile=8, max_face_tile=128))
    np.testing.assert_allclose(np.asarray(loss3), ref2, rtol=1e-4, atol=1e-4)

    print("KERNEL_OK")
</pallas_src>

<mosaic_0001>
module attributes {stable_mosaic.version = 11 : i64} {
  func.func @_nvl_kernel(%arg0: i32, %arg1: i32, %arg2: memref<3x128x128xf32, #tpu.memory_space<vmem>>, %arg3: memref<6x8x128xf32, #tpu.memory_space<vmem>>, %arg4: memref<1x1x8x128xf32, #tpu.memory_space<vmem>>) attributes {dimension_semantics = [#tpu.dimension_semantics<parallel>, #tpu.dimension_semantics<parallel>], iteration_bounds = array<i64: 1, 1>, scalar_prefetch = 0 : i64, scratch_operands = 0 : i64, tpu.core_type = #tpu.core_type<tc>, window_params = [{transform_indices = @transform_0, window_bounds = array<i64: 3, 128, 128>}, {transform_indices = @transform_1, window_bounds = array<i64: 6, 8, 128>}, {transform_indices = @transform_2, window_bounds = array<i64: 1, 1, 8, 128>}]} {
    %c0 = arith.constant 0 : index
    %c0_0 = arith.constant 0 : index
    %c0_1 = arith.constant 0 : index
    %0 = vector.load %arg2[%c0, %c0_0, %c0_1] : memref<3x128x128xf32, #tpu.memory_space<vmem>>, vector<1x128x128xf32>
    %1 = vector.shape_cast %0 : vector<1x128x128xf32> to vector<128x128xf32>
    %c1 = arith.constant 1 : index
    %c0_2 = arith.constant 0 : index
    %c0_3 = arith.constant 0 : index
    %2 = vector.load %arg2[%c1, %c0_2, %c0_3] : memref<3x128x128xf32, #tpu.memory_space<vmem>>, vector<1x128x128xf32>
    %3 = vector.shape_cast %2 : vector<1x128x128xf32> to vector<128x128xf32>
    %c2 = arith.constant 2 : index
    %c0_4 = arith.constant 0 : index
    %c0_5 = arith.constant 0 : index
    %4 = vector.load %arg2[%c2, %c0_4, %c0_5] : memref<3x128x128xf32, #tpu.memory_space<vmem>>, vector<1x128x128xf32>
    %5 = vector.shape_cast %4 : vector<1x128x128xf32> to vector<128x128xf32>
    %c0_6 = arith.constant 0 : index
    %c0_7 = arith.constant 0 : index
    %c0_8 = arith.constant 0 : index
    %6 = vector.load %arg3[%c0_6, %c0_7, %c0_8] : memref<6x8x128xf32, #tpu.memory_space<vmem>>, vector<1x8x128xf32>
    %7 = vector.shape_cast %6 : vector<1x8x128xf32> to vector<8x128xf32>
    %c1_9 = arith.constant 1 : index
    %c0_10 = arith.constant 0 : index
    %c0_11 = arith.constant 0 : index
    %8 = vector.load %arg3[%c1_9, %c0_10, %c0_11] : memref<6x8x128xf32, #tpu.memory_space<vmem>>, vector<1x8x128xf32>
    %9 = vector.shape_cast %8 : vector<1x8x128xf32> to vector<8x128xf32>
    %c2_12 = arith.constant 2 : index
    %c0_13 = arith.constant 0 : index
    %c0_14 = arith.constant 0 : index
    %10 = vector.load %arg3[%c2_12, %c0_13, %c0_14] : memref<6x8x128xf32, #tpu.memory_space<vmem>>, vector<1x8x128xf32>
    %11 = vector.shape_cast %10 : vector<1x8x128xf32> to vector<8x128xf32>
    %c3 = arith.constant 3 : index
    %c0_15 = arith.constant 0 : index
    %c0_16 = arith.constant 0 : index
    %12 = vector.load %arg3[%c3, %c0_15, %c0_16] : memref<6x8x128xf32, #tpu.memory_space<vmem>>, vector<1x8x128xf32>
    %13 = vector.shape_cast %12 : vector<1x8x128xf32> to vector<8x128xf32>
    %c4 = arith.constant 4 : index
    %c0_17 = arith.constant 0 : index
    %c0_18 = arith.constant 0 : index
    %14 = vector.load %arg3[%c4, %c0_17, %c0_18] : memref<6x8x128xf32, #tpu.memory_space<vmem>>, vector<1x8x128xf32>
    %15 = vector.shape_cast %14 : vector<1x8x128xf32> to vector<8x128xf32>
    %c5 = arith.constant 5 : index
    %c0_19 = arith.constant 0 : index
    %c0_20 = arith.constant 0 : index
    %16 = vector.load %arg3[%c5, %c0_19, %c0_20] : memref<6x8x128xf32, #tpu.memory_space<vmem>>, vector<1x8x128xf32>
    %17 = vector.shape_cast %16 : vector<1x8x128xf32> to vector<8x128xf32>
    %cst = arith.constant dense<0.000000e+00> : vector<8x128xf32>
    %18 = tpu.matmul %7, %1, %cst {dimension_numbers = #tpu.dot_dimension_numbers<[1], [0], [0], [1], [0, 0, 1, 1], [], []>, precision = #tpu.contract_precision<fp32>} : vector<8x128xf32>, vector<128x128xf32>, vector<8x128xf32> -> vector<8x128xf32>
    %cst_21 = arith.constant dense<0.000000e+00> : vector<8x128xf32>
    %19 = tpu.matmul %9, %1, %cst_21 {dimension_numbers = #tpu.dot_dimension_numbers<[1], [0], [0], [1], [0, 0, 1, 1], [], []>, precision = #tpu.contract_precision<fp32>} : vector<8x128xf32>, vector<128x128xf32>, vector<8x128xf32> -> vector<8x128xf32>
    %cst_22 = arith.constant dense<0.000000e+00> : vector<8x128xf32>
    %20 = tpu.matmul %11, %1, %cst_22 {dimension_numbers = #tpu.dot_dimension_numbers<[1], [0], [0], [1], [0, 0, 1, 1], [], []>, precision = #tpu.contract_precision<fp32>} : vector<8x128xf32>, vector<128x128xf32>, vector<8x128xf32> -> vector<8x128xf32>
    %cst_23 = arith.constant dense<0.000000e+00> : vector<8x128xf32>
    %21 = tpu.matmul %7, %3, %cst_23 {dimension_numbers = #tpu.dot_dimension_numbers<[1], [0], [0], [1], [0, 0, 1, 1], [], []>, precision = #tpu.contract_precision<fp32>} : vector<8x128xf32>, vector<128x128xf32>, vector<8x128xf32> -> vector<8x128xf32>
    %cst_24 = arith.constant dense<0.000000e+00> : vector<8x128xf32>
    %22 = tpu.matmul %9, %3, %cst_24 {dimension_numbers = #tpu.dot_dimension_numbers<[1], [0], [0], [1], [0, 0, 1, 1], [], []>, precision = #tpu.contract_precision<fp32>} : vector<8x128xf32>, vector<128x128xf32>, vector<8x128xf32> -> vector<8x128xf32>
    %cst_25 = arith.constant dense<0.000000e+00> : vector<8x128xf32>
    %23 = tpu.matmul %11, %3, %cst_25 {dimension_numbers = #tpu.dot_dimension_numbers<[1], [0], [0], [1], [0, 0, 1, 1], [], []>, precision = #tpu.contract_precision<fp32>} : vector<8x128xf32>, vector<128x128xf32>, vector<8x128xf32> -> vector<8x128xf32>
    %cst_26 = arith.constant dense<0.000000e+00> : vector<8x128xf32>
    %24 = tpu.matmul %7, %5, %cst_26 {dimension_numbers = #tpu.dot_dimension_numbers<[1], [0], [0], [1], [0, 0, 1, 1], [], []>, precision = #tpu.contract_precision<fp32>} : vector<8x128xf32>, vector<128x128xf32>, vector<8x128xf32> -> vector<8x128xf32>
    %cst_27 = arith.constant dense<0.000000e+00> : vector<8x128xf32>
    %25 = tpu.matmul %9, %5, %cst_27 {dimension_numbers = #tpu.dot_dimension_numbers<[1], [0], [0], [1], [0, 0, 1, 1], [], []>, precision = #tpu.contract_precision<fp32>} : vector<8x128xf32>, vector<128x128xf32>, vector<8x128xf32> -> vector<8x128xf32>
    %cst_28 = arith.constant dense<0.000000e+00> : vector<8x128xf32>
    %26 = tpu.matmul %11, %5, %cst_28 {dimension_numbers = #tpu.dot_dimension_numbers<[1], [0], [0], [1], [0, 0, 1, 1], [], []>, precision = #tpu.contract_precision<fp32>} : vector<8x128xf32>, vector<128x128xf32>, vector<8x128xf32> -> vector<8x128xf32>
    %cst_29 = arith.constant dense<0.000000e+00> : vector<8x128xf32>
    %27 = tpu.matmul %13, %1, %cst_29 {dimension_numbers = #tpu.dot_dimension_numbers<[1], [0], [0], [1], [0, 0, 1, 1], [], []>, precision = #tpu.contract_precision<fp32>} : vector<8x128xf32>, vector<128x128xf32>, vector<8x128xf32> -> vector<8x128xf32>
    %cst_30 = arith.constant dense<0.000000e+00> : vector<8x128xf32>
    %28 = tpu.matmul %15, %1, %cst_30 {dimension_numbers = #tpu.dot_dimension_numbers<[1], [0], [0], [1], [0, 0, 1, 1], [], []>, precision = #tpu.contract_precision<fp32>} : vector<8x128xf32>, vector<128x128xf32>, vector<8x128xf32> -> vector<8x128xf32>
    %cst_31 = arith.constant dense<0.000000e+00> : vector<8x128xf32>
    %29 = tpu.matmul %17, %1, %cst_31 {dimension_numbers = #tpu.dot_dimension_numbers<[1], [0], [0], [1], [0, 0, 1, 1], [], []>, precision = #tpu.contract_precision<fp32>} : vector<8x128xf32>, vector<128x128xf32>, vector<8x128xf32> -> vector<8x128xf32>
    %cst_32 = arith.constant dense<0.000000e+00> : vector<8x128xf32>
    %30 = tpu.matmul %13, %3, %cst_32 {dimension_numbers = #tpu.dot_dimension_numbers<[1], [0], [0], [1], [0, 0, 1, 1], [], []>, precision = #tpu.contract_precision<fp32>} : vector<8x128xf32>, vector<128x128xf32>, vector<8x128xf32> -> vector<8x128xf32>
    %cst_33 = arith.constant dense<0.000000e+00> : vector<8x128xf32>
    %31 = tpu.matmul %15, %3, %cst_33 {dimension_numbers = #tpu.dot_dimension_numbers<[1], [0], [0], [1], [0, 0, 1, 1], [], []>, precision = #tpu.contract_precision<fp32>} : vector<8x128xf32>, vector<128x128xf32>, vector<8x128xf32> -> vector<8x128xf32>
    %cst_34 = arith.constant dense<0.000000e+00> : vector<8x128xf32>
    %32 = tpu.matmul %17, %3, %cst_34 {dimension_numbers = #tpu.dot_dimension_numbers<[1], [0], [0], [1], [0, 0, 1, 1], [], []>, precision = #tpu.contract_precision<fp32>} : vector<8x128xf32>, vector<128x128xf32>, vector<8x128xf32> -> vector<8x128xf32>
    %33 = arith.mulf %18, %18 : vector<8x128xf32>
    %34 = arith.mulf %19, %19 : vector<8x128xf32>
    %35 = arith.addf %33, %34 : vector<8x128xf32>
    %36 = arith.mulf %20, %20 : vector<8x128xf32>
    %37 = arith.addf %35, %36 : vector<8x128xf32>
    %cst_35 = arith.constant 1.000000e-24 : f32
    %38 = vector.broadcast %cst_35 : f32 to vector<8x128xf32>
    %39 = arith.maximumf %37, %38 : vector<8x128xf32>
    %40 = math.rsqrt %39 : vector<8x128xf32>
    %41 = arith.mulf %18, %40 : vector<8x128xf32>
    %42 = arith.mulf %19, %40 : vector<8x128xf32>
    %43 = arith.mulf %20, %40 : vector<8x128xf32>
    %44 = arith.mulf %21, %21 : vector<8x128xf32>
    %45 = arith.mulf %22, %22 : vector<8x128xf32>
    %46 = arith.addf %44, %45 : vector<8x128xf32>
    %47 = arith.mulf %23, %23 : vector<8x128xf32>
    %48 = arith.addf %46, %47 : vector<8x128xf32>
    %cst_36 = arith.constant 1.000000e-24 : f32
    %49 = vector.broadcast %cst_36 : f32 to vector<8x128xf32>
    %50 = arith.maximumf %48, %49 : vector<8x128xf32>
    %51 = math.rsqrt %50 : vector<8x128xf32>
    %52 = arith.mulf %21, %51 : vector<8x128xf32>
    %53 = arith.mulf %22, %51 : vector<8x128xf32>
    %54 = arith.mulf %23, %51 : vector<8x128xf32>
    %55 = arith.mulf %24, %24 : vector<8x128xf32>
    %56 = arith.mulf %25, %25 : vector<8x128xf32>
    %57 = arith.addf %55, %56 : vector<8x128xf32>
    %58 = arith.mulf %26, %26 : vector<8x128xf32>
    %59 = arith.addf %57, %58 : vector<8x128xf32>
    %cst_37 = arith.constant 1.000000e-24 : f32
    %60 = vector.broadcast %cst_37 : f32 to vector<8x128xf32>
    %61 = arith.maximumf %59, %60 : vector<8x128xf32>
    %62 = math.rsqrt %61 : vector<8x128xf32>
    %63 = arith.mulf %24, %62 : vector<8x128xf32>
    %64 = arith.mulf %25, %62 : vector<8x128xf32>
    %65 = arith.mulf %26, %62 : vector<8x128xf32>
    %66 = arith.mulf %27, %27 : vector<8x128xf32>
    %67 = arith.mulf %28, %28 : vector<8x128xf32>
    %68 = arith.addf %66, %67 : vector<8x128xf32>
    %69 = arith.mulf %29, %29 : vector<8x128xf32>
    %70 = arith.addf %68, %69 : vector<8x128xf32>
    %cst_38 = arith.constant 1.000000e-24 : f32
    %71 = vector.broadcast %cst_38 : f32 to vector<8x128xf32>
    %72 = arith.maximumf %70, %71 : vector<8x128xf32>
    %73 = math.rsqrt %72 : vector<8x128xf32>
    %74 = arith.mulf %27, %73 : vector<8x128xf32>
    %75 = arith.mulf %28, %73 : vector<8x128xf32>
    %76 = arith.mulf %29, %73 : vector<8x128xf32>
    %77 = arith.mulf %30, %30 : vector<8x128xf32>
    %78 = arith.mulf %31, %31 : vector<8x128xf32>
    %79 = arith.addf %77, %78 : vector<8x128xf32>
    %80 = arith.mulf %32, %32 : vector<8x128xf32>
    %81 = arith.addf %79, %80 : vector<8x128xf32>
    %cst_39 = arith.constant 1.000000e-24 : f32
    %82 = vector.broadcast %cst_39 : f32 to vector<8x128xf32>
    %83 = arith.maximumf %81, %82 : vector<8x128xf32>
    %84 = math.rsqrt %83 : vector<8x128xf32>
    %85 = arith.mulf %30, %84 : vector<8x128xf32>
    %86 = arith.mulf %31, %84 : vector<8x128xf32>
    %87 = arith.mulf %32, %84 : vector<8x128xf32>
    %88 = arith.mulf %75, %87 : vector<8x128xf32>
    %89 = arith.mulf %76, %86 : vector<8x128xf32>
    %90 = arith.subf %88, %89 : vector<8x128xf32>
    %91 = arith.mulf %76, %85 : vector<8x128xf32>
    %92 = arith.mulf %74, %87 : vector<8x128xf32>
    %93 = arith.subf %91, %92 : vector<8x128xf32>
    %94 = arith.mulf %74, %86 : vector<8x128xf32>
    %95 = arith.mulf %75, %85 : vector<8x128xf32>
    %96 = arith.subf %94, %95 : vector<8x128xf32>
    %97 = arith.mulf %90, %90 : vector<8x128xf32>
    %98 = arith.mulf %93, %93 : vector<8x128xf32>
    %99 = arith.addf %97, %98 : vector<8x128xf32>
    %100 = arith.mulf %96, %96 : vector<8x128xf32>
    %101 = arith.addf %99, %100 : vector<8x128xf32>
    %cst_40 = arith.constant 1.000000e-24 : f32
    %102 = vector.broadcast %cst_40 : f32 to vector<8x128xf32>
    %103 = arith.maximumf %101, %102 : vector<8x128xf32>
    %104 = math.rsqrt %103 : vector<8x128xf32>
    %105 = arith.mulf %90, %104 : vector<8x128xf32>
    %106 = arith.mulf %93, %104 : vector<8x128xf32>
    %107 = arith.mulf %96, %104 : vector<8x128xf32>
    %108 = arith.mulf %41, %105 : vector<8x128xf32>
    %109 = arith.mulf %42, %106 : vector<8x128xf32>
    %110 = arith.addf %108, %109 : vector<8x128xf32>
    %111 = arith.mulf %43, %107 : vector<8x128xf32>
    %112 = arith.addf %110, %111 : vector<8x128xf32>
    %113 = math.absf %112 : vector<8x128xf32>
    %114 = arith.mulf %52, %105 : vector<8x128xf32>
    %115 = arith.mulf %53, %106 : vector<8x128xf32>
    %116 = arith.addf %114, %115 : vector<8x128xf32>
    %117 = arith.mulf %54, %107 : vector<8x128xf32>
    %118 = arith.addf %116, %117 : vector<8x128xf32>
    %119 = math.absf %118 : vector<8x128xf32>
    %120 = arith.mulf %63, %105 : vector<8x128xf32>
    %121 = arith.mulf %64, %106 : vector<8x128xf32>
    %122 = arith.addf %120, %121 : vector<8x128xf32>
    %123 = arith.mulf %65, %107 : vector<8x128xf32>
    %124 = arith.addf %122, %123 : vector<8x128xf32>
    %125 = math.absf %124 : vector<8x128xf32>
    %126 = arith.addf %113, %119 : vector<8x128xf32>
    %127 = arith.addf %126, %125 : vector<8x128xf32>
    %cst_41 = arith.constant 0.000000e+00 : f32
    %128 = vector.broadcast %cst_41 : f32 to vector<8x128xf32>
    %129 = arith.addf %128, %127 : vector<8x128xf32>
    %c0_42 = arith.constant 0 : index
    %c0_43 = arith.constant 0 : index
    %c0_44 = arith.constant 0 : index
    %c0_45 = arith.constant 0 : index
    %130 = vector.load %arg4[%c0_42, %c0_43, %c0_44, %c0_45] : memref<1x1x8x128xf32, #tpu.memory_space<vmem>>, vector<1x1x8x128xf32>
    %131 = vector.shape_cast %130 : vector<1x1x8x128xf32> to vector<8x128xf32>
    %132 = vector.shape_cast %129 : vector<8x128xf32> to vector<1x1x8x128xf32>
    tpu.vector_store %arg4[%c0_42, %c0_43, %c0_44, %c0_45], %132 {strides = array<i32>} : memref<1x1x8x128xf32, #tpu.memory_space<vmem>>, vector<1x1x8x128xf32>,
    return
  }
  func.func @transform_0(%arg0: i32, %arg1: i32) -> (i32, i32, i32) {
    %c0_i32 = arith.constant 0 : i32
    %c0_i32_0 = arith.constant 0 : i32
    %c0_i32_1 = arith.constant 0 : i32
    return %c0_i32, %c0_i32_0, %arg0 : i32, i32, i32
  }
  func.func @transform_1(%arg0: i32, %arg1: i32) -> (i32, i32, i32) {
    %c0_i32 = arith.constant 0 : i32
    %c0_i32_0 = arith.constant 0 : i32
    %c0_i32_1 = arith.constant 0 : i32
    return %c0_i32, %arg1, %c0_i32_0 : i32, i32, i32
  }
  func.func @transform_2(%arg0: i32, %arg1: i32) -> (i32, i32, i32, i32) {
    %c0_i32 = arith.constant 0 : i32
    %c0_i32_0 = arith.constant 0 : i32
    %c0_i32_1 = arith.constant 0 : i32
    return %arg0, %arg1, %c0_i32, %c0_i32_0 : i32, i32, i32, i32
  }
}

</mosaic_0001>

<bundles_post_ra>
// kernel: tpu_custom_call.1
= control target key start
LH: loop header
LB: loop body
LE: loop exit
PB: predicated region body
PF: predicated region fallthrough
CT: control target
= control target key end

     0   :  { %7 = vsyncpa [#allocation3], 0  ;;  %s19634_s0 = inlined_call_operand.hbm [shape: f32[3,128,128], index: 0, kind: input, shape index: {}]   ;;  %s19635_s1 = inlined_call_operand.hbm [shape: f32[6,8,128], index: 1, kind: input, shape index: {}]   ;;  %s19636_s2 = inlined_call_operand.hbm [shape: f32[1,1,8,128], index: 2, kind: output, shape index: {}]  }
   0x1   :  { %8 = vsyncpa [#allocation6], 0 }
   0x2   :  { %9 = vsyncpa [#allocation4], 0  ;;  %s16904_s9 = smov [#allocation2]   ;;  %s16832_s13 = scalar_lea.hbm %s19634_s0, 6144 }
   0x3   :  { %s15_s10 = sshll.u32 %s16904_s9, 4  ;;  %p16833_p0 = scmp.ne.s32.totalorder %s19634_s0, %s16832_s13  ;;  %s16_s10 = int_to_ptr.vmem [resolvable:$true] %s15_s10 }
   0x4   :  { %p16836_p1 = scmp.lt.u32.totalorder %s16832_s13, %s19634_s0 }
   0x6   :  { %p16838_p2 = pnand %p16836_p1, %p16833_p0 }
   0x8   :  { %16841 = shalt.err (!%p16838_p2)
}
   0x9   :  { %s16842_s18 = scalar_lea.vmem %s16_s10, 6144  ;;  %p16847_p4 = scmp.lt.s32.totalorder %s16_s10, %s16_s10 }
   0xa   :  { %p16843_p3 = scmp.ne.s32.totalorder %s16_s10, %s16842_s18  ;;  %p16848_p5 = scmp.lt.s32.totalorder %s16842_s18, %s16842_s18 }
   0xc   :  { %p16849_p6 = por %p16848_p5, %p16847_p4 }
   0xe   :  { %p16850_p7 = pnand %p16849_p6, %p16843_p3 }
  0x10   :  { %16853 = shalt.err (!%p16850_p7)
}
  0x11   :  { %s16905_s19 = smov 128   ;;  %s16906_s20 = smov 8  }
  0x12   :  { %21 = dma.hbm_to_vmem [thread:$0]  %s19634_s0, 6144, %s16_s10, [#allocation3], %s16905_s19, %s16905_s19, %s16906_s20  }
  0x13   :  { %s16907_s23 = smov [#allocation5]   ;;  %s16854_s27 = scalar_lea.hbm %s19635_s1, 768 }
  0x14   :  { %s27_s24 = sshll.u32 %s16907_s23, 4  ;;  %p16855_p8 = scmp.ne.s32.totalorder %s19635_s1, %s16854_s27  ;;  %s28_s24 = int_to_ptr.vmem [resolvable:$true] %s27_s24 }
  0x15   :  { %p16858_p9 = scmp.lt.u32.totalorder %s16854_s27, %s19635_s1 }
  0x17   :  { %p16860_p10 = pnand %p16858_p9, %p16855_p8 }
  0x19   :  { %16863 = shalt.err (!%p16860_p10)
}
  0x1a   :  { %s16864_s4 = scalar_lea.vmem %s28_s24, 768  ;;  %p16869_p12 = scmp.lt.s32.totalorder %s28_s24, %s28_s24 }
  0x1b   :  { %p16865_p11 = scmp.ne.s32.totalorder %s28_s24, %s16864_s4  ;;  %p16870_p13 = scmp.lt.s32.totalorder %s16864_s4, %s16864_s4 }
  0x1d   :  { %p16871_p0 = por %p16870_p13, %p16869_p12 }
  0x1f   :  { %p16872_p1 = pnand %p16871_p0, %p16865_p11 }
  0x21   :  { %16875 = shalt.err (!%p16872_p1)
}
  0x22   :  { %33 = dma.hbm_to_vmem [thread:$0]  %s19635_s1, 768, %s28_s24, [#allocation6], %s16905_s19, %s16905_s19, %s16906_s20  }
  0x23   :  { %16898 = dma.done.wait [#allocation3], 6144  }
  0x24   :  { %16899 = vsyncadd [#allocation3], 4294961152 }
  0x25   :  { %16900 = dma.done.wait [#allocation6], 768  }
  0x26   :  { %16901 = vsyncadd [#allocation6], 4294966528  ;;  %v19637_v0 = vmov 0.0|0.0   ;;  %vm16909_vm0 = vmmov 0   ;;  %v19643_v1 = vmov 0.0   ;;  %v40_v2 = vld [vmem:[#allocation2] sm:$0xff] }
  0x27   :  { %14503 = vmatprep.subr.bf16.mxu1 %v19637_v0  ;;  %14575 = vmatprep.subr.bf16.mxu0 %v19637_v0  ;;  %v41_v3 = vld [vmem:[#allocation2 + $0x8] sm:$0xff]  ;;  %v42_v4 = vld [vmem:[#allocation2 + $0x10] sm:$0xff]  ;;  %v102_v5 = vand.u32 4294901760, %v40_v2  ;;  %v43_v7 = vld [vmem:[#allocation2 + $0x18] sm:$0xff]  ;;  %s16911_s1 = smov [#allocation7]  }
  0x28   :  { %11385 = vmatprep.mubr.msk.f32.mxu1 %vm16909_vm0, %v19643_v1  ;;  %11490 = vmatprep.mubr.msk.f32.mxu0 %vm16909_vm0, %v19643_v1  ;;  %v105_v6 = vand.u32 4294901760, %v41_v3  ;;  %v108_v8 = vand.u32 4294901760, %v42_v4  ;;  %v111_v9 = vand.u32 4294901760, %v43_v7  ;;  %v44_v10 = vld [vmem:[#allocation2 + $0x20] sm:$0xff]  ;;  %v16957_v11 = vld [vmem:[#allocation2 + $0x28] sm:$0xff]  ;;  %v16968_v16 = vld [vmem:[#allocation2 + $0x30] sm:$0xff] }
  0x29   :  { %v114_v14 = vand.u32 4294901760, %v44_v10  ;;  %v117_v15 = vand.u32 4294901760, %v16957_v11  ;;  %v16970_v17 = vld [vmem:[#allocation2 + $0x38] sm:$0xff]  ;;  %v120_v19 = vand.u32 4294901760, %v16968_v16  ;;  %v16980_v21 = vld [vmem:[#allocation2 + $0x40] sm:$0xff]  ;;  %v16982_v22 = vld [vmem:[#allocation2 + $0x48] sm:$0xff]  ;;  %v17014_v35 = vsub.f32 %v40_v2, %v102_v5 }
  0x2a   :  { %v16959_v12 = vpack.c.bf16 %v105_v6, %v102_v5  ;;  %v16963_v13 = vpack.c.bf16 %v111_v9, %v108_v8  ;;  %v123_v20 = vand.u32 4294901760, %v16970_v17  ;;  %v90_v23 = vld [vmem:[#allocation5] sm:$0xff]  ;;  %v126_v25 = vand.u32 4294901760, %v16980_v21  ;;  %v16992_v27 = vld [vmem:[#allocation2 + $0x50] sm:$0xff]  ;;  %v16996_v28 = vld [vmem:[#allocation2 + $0x58] sm:$0xff]  ;;  %s9813_s6 = sshll.u32 %s16911_s1, 4  ;;  %s9814_s6 = int_to_ptr.vmem [resolvable:$true] %s9813_s6 }
  0x2b   :  { %v16974_v18 = vpack.c.bf16 %v117_v15, %v114_v14  ;;  %v129_v26 = vand.u32 4294901760, %v16982_v22  ;;  %v16998_v29 = vand.u32 4294901760, %v90_v23  ;;  %v132_v30 = vand.u32 4294901760, %v16992_v27  ;;  %v17010_v33 = vld [vmem:[#allocation2 + $0x60] sm:$0xff]  ;;  %v17012_v34 = vld [vmem:[#allocation2 + $0x68] sm:$0xff]  ;;  %v17025_v40 = vld [vmem:[#allocation2 + $0x70] sm:$0xff]  ;;  %p16881_p3 = scmp.lt.s32.totalorder %s9814_s6, %s9814_s6 }
  0x2c   :  { %19809 = vst [vmem:[#allocation11_spill] sm:$0xff] %v16959_v12  ;;  %14505 = vmatpush3.bf16.msra.mxu1 %v16959_v12  ;;  %14577 = vmatpush3.bf16.msra.mxu0 %v16959_v12  ;;  %19810 = vst [vmem:[#allocation12_spill] sm:$0xff] %v16963_v13  ;;  %v16988_v24 = vpack.c.bf16 %v123_v20, %v120_v19  ;;  %v135_v32 = vand.u32 4294901760, %v16996_v28  ;;  %v17016_v36 = vsub.f32 %v41_v3, %v105_v6  ;;  %v17039_v44 = vld [vmem:[#allocation2 + $0x78] sm:$0xff]  ;;  %s16876_s7 = scalar_lea.vmem %s9814_s6, 128 }
  0x2d   :  { %14506 = vmatprep.subr.bf16.mxu1 %v19637_v0  ;;  %14578 = vmatprep.subr.bf16.mxu0 %v19637_v0  ;;  %19811 = vst [vmem:[#allocation13_spill] sm:$0xff] %v16974_v18  ;;  %v17007_v31 = vpack.c.bf16 %v129_v26, %v126_v25  ;;  %v17021_v37 = vsub.f32 %v90_v23, %v16998_v29  ;;  %v138_v38 = vand.u32 4294901760, %v17010_v33  ;;  %v141_v39 = vand.u32 4294901760, %v17012_v34  ;;  %p16877_p2 = scmp.ne.s32.totalorder %s9814_s6, %s16876_s7  ;;  %p16882_p4 = scmp.lt.s32.totalorder %s16876_s7, %s16876_s7 }
  0x2e   :  { %19812 = vst [vmem:[#allocation14_spill] sm:$0xff] %v16988_v24  ;;  %v17027_v41 = vsub.f32 %v42_v4, %v108_v8  ;;  %v17029_v42 = vsub.f32 %v43_v7, %v111_v9  ;;  %v17037_v43 = vpack.c.bf16 %v135_v32, %v132_v30  ;;  %v195_v45 = vand.u32 4294901760, %v17014_v35 }
  0x2f   :  { %19813 = vst [vmem:[#allocation15_spill] sm:$0xff] %v17007_v31  ;;  %v202_v46 = vand.u32 4294901760, %v17016_v36  ;;  %v144_v47 = vand.u32 4294901760, %v17025_v40  ;;  %v17047_v48 = vand.u32 4294901760, %v17021_v37  ;;  %v17049_v49 = vsub.f32 %v44_v10, %v114_v14  ;;  %p16883_p5 = por %p16882_p4, %p16881_p3 }
  0x30   :  { %14508 = vmatpush3.bf16.msra.mxu1 %v16963_v13  ;;  %14580 = vmatpush3.bf16.msra.mxu0 %v16963_v13  ;;  %19814 = vst [vmem:[#allocation16_spill] sm:$0xff] %v17037_v43  ;;  %v17055_v50 = vpack.c.bf16 %v141_v39, %v138_v38  ;;  %v147_v51 = vand.u32 4294901760, %v17039_v44  ;;  %v209_v52 = vand.u32 4294901760, %v17027_v41  ;;  %v216_v53 = vand.u32 4294901760, %v17029_v42 }
  0x31   :  { %14509 = vmatprep.subr.bf16.mxu1 %v19637_v0  ;;  %14581 = vmatprep.subr.bf16.mxu0 %v19637_v0  ;;  %19815 = vst [vmem:[#allocation17_spill] sm:$0xff] %v17047_v48  ;;  %v196_v54 = vsub.f32 %v17014_v35, %v195_v45  ;;  %v203_v55 = vsub.f32 %v17016_v36, %v202_v46  ;;  %v223_v58 = vand.u32 4294901760, %v17049_v49  ;;  %p16884_p6 = pnand %p16883_p5, %p16877_p2 }
  0x32   :  { %19816 = vst [vmem:[#allocation18_spill] sm:$0xff] %v17055_v50  ;;  %v17065_v56 = vsub.f32 %v16957_v11, %v117_v15  ;;  %v185_v57 = vsub.f32 %v17021_v37, %v17047_v48  ;;  %v17076_v59 = vpack.c.bf16 %v147_v51, %v144_v47  ;;  %v210_v60 = vsub.f32 %v17027_v41, %v209_v52 }
  0x33   :  { %v217_v61 = vsub.f32 %v17029_v42, %v216_v53  ;;  %v17081_v62 = vsub.f32 %v16968_v16, %v120_v19  ;;  %v197_v63 = vand.u32 4294901760, %v196_v54  ;;  %v204_v2 = vand.u32 4294901760, %v203_v55 }
  0x34   :  { %14511 = vmatpush3.bf16.msra.mxu1 %v16974_v18  ;;  %14583 = vmatpush3.bf16.msra.mxu0 %v16974_v18  ;;  %19817 = vst [vmem:[#allocation19_spill] sm:$0xff] %v17076_v59  ;;  %v230_v3 = vand.u32 4294901760, %v17065_v56  ;;  %v17089_v4 = vsub.f32 %v16970_v17, %v123_v20  ;;  %v17093_v5 = vand.u32 4294901760, %v185_v57  ;;  %v17095_v6 = vpack.c.bf16 %v202_v46, %v195_v45 }
  0x35   :  { %14512 = vmatprep.subr.bf16.mxu1 %v19637_v0  ;;  %14584 = vmatprep.subr.bf16.mxu0 %v19637_v0  ;;  %v224_v7 = vsub.f32 %v17049_v49, %v223_v58  ;;  %v211_v8 = vand.u32 4294901760, %v210_v60  ;;  %v218_v9 = vand.u32 4294901760, %v217_v61  ;;  %v17101_v10 = vsub.f32 %v16980_v21, %v126_v25 }
  0x36   :  { %19818 = vst [vmem:[#allocation20_spill] sm:$0xff] %v17095_v6  ;;  %v17106_v11 = vsub.f32 %v16982_v22, %v129_v26  ;;  %v17110_v14 = vpack.c.bf16 %v204_v2, %v197_v63  ;;  %v231_v15 = vsub.f32 %v17065_v56, %v230_v3  ;;  %v237_v16 = vand.u32 4294901760, %v17081_v62 }
  0x37   :  { %v244_v17 = vand.u32 4294901760, %v17089_v4  ;;  %v17117_v19 = vpack.c.bf16 %v216_v53, %v209_v52  ;;  %v225_v20 = vand.u32 4294901760, %v224_v7  ;;  %v251_v21 = vand.u32 4294901760, %v17101_v10 }
  0x38   :  { %14514 = vmatpush3.bf16.msra.mxu1 %v16988_v24  ;;  %14586 = vmatpush3.bf16.msra.mxu0 %v16988_v24  ;;  %19819 = vst [vmem:[#allocation21_spill] sm:$0xff] %v17110_v14  ;;  %v258_v22 = vand.u32 4294901760, %v17106_v11  ;;  %v17126_v23 = vsub.f32 %v16992_v27, %v132_v30  ;;  %v17131_v25 = vsub.f32 %v16996_v28, %v135_v32  ;;  %v232_v45 = vand.u32 4294901760, %v231_v15 }
  0x39   :  { %14515 = vmatprep.subr.bf16.mxu1 %v19637_v0  ;;  %14587 = vmatprep.subr.bf16.mxu0 %v19637_v0  ;;  %19820 = vst [vmem:[#allocation22_spill] sm:$0xff] %v17117_v19  ;;  %v17135_v26 = vpack.c.bf16 %v218_v9, %v211_v8  ;;  %v238_v46 = vsub.f32 %v17081_v62, %v237_v16 }
  0x3a   :  { %v245_v52 = vsub.f32 %v17089_v4, %v244_v17  ;;  %v17141_v27 = vpack.c.bf16 %v230_v3, %v223_v58  ;;  %v17146_v28 = vsub.f32 %v17010_v33, %v138_v38  ;;  %v252_v30 = vsub.f32 %v17101_v10, %v251_v21 }
  0x3b   :  { %19821 = vst [vmem:[#allocation23_spill] sm:$0xff] %v17135_v26  ;;  %v259_v32 = vsub.f32 %v17106_v11, %v258_v22  ;;  %v265_v53 = vand.u32 4294901760, %v17126_v23  ;;  %v272_v54 = vand.u32 4294901760, %v17131_v25  ;;  %v17158_v33 = vpack.c.bf16 %v232_v45, %v225_v20 }
  0x3c   :  { %14517 = vmatpush3.bf16.msra.mxu1 %v17007_v31  ;;  %14589 = vmatpush3.bf16.msra.mxu0 %v17007_v31  ;;  %19822 = vst [vmem:[#allocation24_spill] sm:$0xff] %v17141_v27  ;;  %v239_v38 = vand.u32 4294901760, %v238_v46  ;;  %v246_v55 = vand.u32 4294901760, %v245_v52  ;;  %v17163_v57 = vsub.f32 %v17012_v34, %v141_v39  ;;  %v17167_v58 = vpack.c.bf16 %v244_v17, %v237_v16 }
  0x3d   :  { %14518 = vmatprep.subr.bf16.mxu1 %v19637_v0  ;;  %14590 = vmatprep.subr.bf16.mxu0 %v19637_v0  ;;  %19823 = vst [vmem:[#allocation25_spill] sm:$0xff] %v17158_v33  ;;  %v279_v60 = vand.u32 4294901760, %v17146_v28  ;;  %v253_v61 = vand.u32 4294901760, %v252_v30  ;;  %v260_v63 = vand.u32 4294901760, %v259_v32  ;;  %v266_v2 = vsub.f32 %v17126_v23, %v265_v53 }
  0x3e   :  { %19824 = vst [vmem:[#allocation26_spill] sm:$0xff] %v17167_v58  ;;  %v273_v3 = vsub.f32 %v17131_v25, %v272_v54  ;;  %v17174_v34 = vpack.c.bf16 %v246_v55, %v239_v38  ;;  %v286_v39 = vand.u32 4294901760, %v17163_v57  ;;  %v17180_v7 = vsub.f32 %v17025_v40, %v144_v47 }
  0x3f   :  { %v17185_v8 = vsub.f32 %v17039_v44, %v147_v51  ;;  %v17189_v9 = vpack.c.bf16 %v258_v22, %v251_v21  ;;  %v267_v15 = vand.u32 4294901760, %v266_v2  ;;  %v280_v17 = vsub.f32 %v17146_v28, %v279_v60 }
  0x40   :  { %14520 = vmatpush3.bf16.msra.mxu1 %v17037_v43  ;;  %14592 = vmatpush3.bf16.msra.mxu0 %v17037_v43  ;;  %19825 = vst [vmem:[#allocation27_spill] sm:$0xff] %v17174_v34  ;;  %v274_v16 = vand.u32 4294901760, %v273_v3  ;;  %v17194_v40 = vpack.c.bf16 %v260_v63, %v253_v61  ;;  %v287_v47 = vsub.f32 %v17163_v57, %v286_v39  ;;  %v293_v44 = vand.u32 4294901760, %v17180_v7 }
  0x41   :  { %14521 = vmatprep.subr.bf16.mxu1 %v19637_v0  ;;  %14593 = vmatprep.subr.bf16.mxu0 %v19637_v0  ;;  %19826 = vst [vmem:[#allocation28_spill] sm:$0xff] %v17189_v9  ;;  %v300_v51 = vand.u32 4294901760, %v17185_v8  ;;  %v17201_v20 = vpack.c.bf16 %v272_v54, %v265_v53  ;;  %v281_v21 = vand.u32 4294901760, %v280_v17  ;;  %v17215_v32 = vpack.c.bf16 %v286_v39, %v279_v60  ;;  %v59_v17 = vld [vmem:[#allocation2 + $0x90] sm:$0xff] }
  0x42   :  { %19827 = vst [vmem:[#allocation29_spill] sm:$0xff] %v17194_v40  ;;  %v17205_v22 = vpack.c.bf16 %v274_v16, %v267_v15  ;;  %v288_v45 = vand.u32 4294901760, %v287_v47  ;;  %v294_v46 = vsub.f32 %v17180_v7, %v293_v44  ;;  %v17231_v60 = vpack.c.bf16 %v17016_v36, %v17014_v35  ;;  %v60_v47 = vld [vmem:[#allocation2 + $0x98] sm:$0xff] }
  0x43   :  { %19828 = vst [vmem:[#allocation30_spill] sm:$0xff] %v17201_v20  ;;  %v301_v52 = vsub.f32 %v17185_v8, %v300_v51  ;;  %19831 = vst [vmem:[#allocation33_spill] sm:$0xff] %v17215_v32  ;;  %v17223_v55 = vpack.c.bf16 %v300_v51, %v293_v44  ;;  %v17241_v61 = vpack.c.bf16 %v17029_v42, %v17027_v41  ;;  %v2031_v51 = vand.u32 4294901760, %v59_v17 }
  0x44   :  { %14523 = vmatpush3.bf16.msra.mxu1 %v17055_v50  ;;  %14595 = vmatpush3.bf16.msra.mxu0 %v17055_v50  ;;  %19829 = vst [vmem:[#allocation31_spill] sm:$0xff] %v17205_v22  ;;  %v17213_v30 = vpack.c.bf16 %v288_v45, %v281_v21  ;;  %v295_v53 = vand.u32 4294901760, %v294_v46  ;;  %19834 = vst [vmem:[#allocation36_spill] sm:$0xff] %v17231_v60  ;;  %v17253_v35 = vpack.c.bf16 %v17065_v56, %v17049_v49  ;;  %v17555_v45 = vld [vmem:[#allocation2 + $0xa0] sm:$0xff]  ;;  %v17557_v46 = vld [vmem:[#allocation2 + $0xa8] sm:$0xff] }
  0x45   :  { %14524 = vmatprep.subr.bf16.mxu1 %v19637_v0  ;;  %14596 = vmatprep.subr.bf16.mxu0 %v19637_v0  ;;  %v302_v54 = vand.u32 4294901760, %v301_v52  ;;  %19833 = vst [vmem:[#allocation35_spill] sm:$0xff] %v17223_v55  ;;  %19835 = vst [vmem:[#allocation37_spill] sm:$0xff] %v17241_v61  ;;  %v17261_v36 = vpack.c.bf16 %v17089_v4, %v17081_v62  ;;  %v17269_v41 = vpack.c.bf16 %v17106_v11, %v17101_v10  ;;  %v92_v62 = vld [vmem:[#allocation5 + $0x8] sm:$0xff]  ;;  %v94_v4 = vld [vmem:[#allocation5 + $0x10] sm:$0xff] }
  0x46   :  { %19830 = vst [vmem:[#allocation32_spill] sm:$0xff] %v17213_v30  ;;  %19836 = vst [vmem:[#allocation38_spill] sm:$0xff] %v17253_v35  ;;  %v17277_v42 = vpack.c.bf16 %v17131_v25, %v17126_v23  ;;  %v17285_v49 = vpack.c.bf16 %v17163_v57, %v17146_v28  ;;  %v17293_v56 = vpack.c.bf16 %v17185_v8, %v17180_v7  ;;  %v17319_v10 = vand.u32 4294901760, %v92_v62  ;;  %v57_v7 = vld [vmem:[#allocation2 + $0x80] sm:$0xff]  ;;  %v58_v8 = vld [vmem:[#allocation2 + $0x88] sm:$0xff] }
  0x47   :  { %v17221_v38 = vpack.c.bf16 %v302_v54, %v295_v53  ;;  %19837 = vst [vmem:[#allocation39_spill] sm:$0xff] %v17261_v36  ;;  %19838 = vst [vmem:[#allocation40_spill] sm:$0xff] %v17269_v41  ;;  %v17321_v11 = vand.u32 4294901760, %v94_v4  ;;  %v2025_v15 = vand.u32 4294901760, %v57_v7  ;;  %v2028_v16 = vand.u32 4294901760, %v58_v8 }
  0x48   :  { %14526 = vmatpush3.bf16.msra.mxu1 %v17076_v59  ;;  %14598 = vmatpush3.bf16.msra.mxu0 %v17076_v59  ;;  %19839 = vst [vmem:[#allocation41_spill] sm:$0xff] %v17277_v42  ;;  %19840 = vst [vmem:[#allocation42_spill] sm:$0xff] %v17285_v49  ;;  %v17328_v23 = vsub.f32 %v92_v62, %v17319_v10  ;;  %v2034_v21 = vand.u32 4294901760, %v60_v47  ;;  %v19648_v53 = vand.u32 4294901760, %v17555_v45  ;;  %v19647_v54 = vand.u32 4294901760, %v17557_v46  ;;  %v17569_v62 = vld [vmem:[#allocation2 + $0xb0] sm:$0xff] }
  0x49   :  { %14527 = vmatprep.subr.bf16.mxu1 %v19637_v0  ;;  %14599 = vmatprep.subr.bf16.mxu0 %v19637_v0  ;;  %19832 = vst [vmem:[#allocation34_spill] sm:$0xff] %v17221_v38  ;;  %19841 = vst [vmem:[#allocation43_spill] sm:$0xff] %v17293_v56  ;;  %v17331_v25 = vsub.f32 %v94_v4, %v17321_v11  ;;  %v17551_v44 = vpack.c.bf16 %v2028_v16, %v2025_v15  ;;  %v17571_v4 = vld [vmem:[#allocation2 + $0xb8] sm:$0xff] }
  0x4a   :  { %19842 = vst [vmem:[#allocation44_spill] sm:$0xff] %v17319_v10  ;;  %19843 = vst [vmem:[#allocation45_spill] sm:$0xff] %v17328_v23  ;;  %v17338_v28 = vand.u32 4294901760, %v17328_v23  ;;  %v17563_v52 = vpack.c.bf16 %v2034_v21, %v2031_v51 }
  0x4b   :  { %11386 = vmatmul.mubr.f32.vlgmr.msra.gmra.mrb[0].mxu1 %v17093_v5  ;;  %11491 = vmatmul.mubr.f32.vlgmr.msra.gmra.mrb[0].mxu0 %v17047_v48  ;;  %v17341_v57 = vand.u32 4294901760, %v17331_v25 }
  0x4c   :  { %14529 = vmatpush3.bf16.msra.mxu1 %v17110_v14  ;;  %14601 = vmatpush3.bf16.msra.mxu0 %v17095_v6  ;;  %19844 = vst [vmem:[#allocation46_spill] sm:$0xff] %v17338_v28  ;;  %v826_v63 = vsub.f32 %v17328_v23, %v17338_v28  ;;  %19847 = vst [vmem:[#allocation49_spill] sm:$0xff] %v17563_v52 }
  0x4d   :  { %14530 = vmatprep.subr.bf16.mxu1 %v19637_v0  ;;  %14602 = vmatprep.subr.bf16.mxu0 %v19637_v0  ;;  %19845 = vst [vmem:[#allocation47_spill] sm:$0xff] %v17341_v57  ;;  %v1467_v2 = vsub.f32 %v17331_v25, %v17341_v57 }
  0x4e   :  { %11420 = vmatprep.mubr.msk.f32.mxu1 %vm16909_vm0, %v19643_v1  ;;  %11525 = vmatprep.mubr.msk.f32.mxu0 %vm16909_vm0, %v19643_v1  ;;  %v17355_v3 = vand.u32 4294901760, %v826_v63  ;;  %v17583_v63 = vpack.c.bf16 %v19647_v54, %v19648_v53 }
  0x4f   :  { %v17357_v39 = vand.u32 4294901760, %v1467_v2  ;;  %v2043_v2 = vand.u32 4294901760, %v17569_v62 }
  0x50   :  { %14532 = vmatpush3.bf16.msra.mxu1 %v17135_v26  ;;  %14604 = vmatpush3.bf16.msra.mxu0 %v17117_v19  ;;  %19846 = vst [vmem:[#allocation48_spill] sm:$0xff] %v17355_v3  ;;  %19848 = vst [vmem:[#allocation50_spill] sm:$0xff] %v17583_v63 }
  0x51   :  { %14533 = vmatprep.subr.bf16.mxu1 %v19637_v0  ;;  %14605 = vmatprep.subr.bf16.mxu0 %v19637_v0 }
  0x54   :  { %14535 = vmatpush3.bf16.msra.mxu1 %v17158_v33  ;;  %14607 = vmatpush3.bf16.msra.mxu0 %v17141_v27 }
  0x55   :  { %14536 = vmatprep.subr.bf16.mxu1 %v19637_v0  ;;  %14608 = vmatprep.subr.bf16.mxu0 %v19637_v0 }
  0x58   :  { %14538 = vmatpush3.bf16.msra.mxu1 %v17174_v34  ;;  %14610 = vmatpush3.bf16.msra.mxu0 %v17167_v58 }
  0x59   :  { %14539 = vmatprep.subr.bf16.mxu1 %v19637_v0  ;;  %14611 = vmatprep.subr.bf16.mxu0 %v19637_v0 }
  0x5c   :  { %14541 = vmatpush3.bf16.msra.mxu1 %v17194_v40  ;;  %14613 = vmatpush3.bf16.msra.mxu0 %v17189_v9 }
  0x5d   :  { %14542 = vmatprep.subr.bf16.mxu1 %v19637_v0  ;;  %14614 = vmatprep.subr.bf16.mxu0 %v19637_v0 }
  0x60   :  { %14544 = vmatpush3.bf16.msra.mxu1 %v17205_v22  ;;  %14616 = vmatpush3.bf16.msra.mxu0 %v17201_v20 }
  0x61   :  { %14545 = vmatprep.subr.bf16.mxu1 %v19637_v0  ;;  %14617 = vmatprep.subr.bf16.mxu0 %v19637_v0 }
  0x64   :  { %14547 = vmatpush3.bf16.msra.mxu1 %v17213_v30  ;;  %14619 = vmatpush3.bf16.msra.mxu0 %v17215_v32 }
  0x65   :  { %14548 = vmatprep.subr.bf16.mxu1 %v19637_v0  ;;  %14620 = vmatprep.subr.bf16.mxu0 %v19637_v0 }
  0x68   :  { %14550 = vmatpush3.bf16.msra.mxu1 %v17221_v38  ;;  %14622 = vmatpush3.bf16.msra.mxu0 %v17223_v55 }
  0x69   :  { %14551 = vmatprep.subr.bf16.mxu1 %v19637_v0  ;;  %14623 = vmatprep.subr.bf16.mxu0 %v19637_v0 }
  0x6b   :  { %11421 = vmatmul.mubr.f32.vlgmr.msra.gmra.mrb[0].mxu1 %v16998_v29  ;;  %11526 = vmatmul.mubr.f32.vlgmr.msra.gmra.mrb[0].mxu0 %v16998_v29 }
  0x6c   :  { %14553 = vmatpush3.bf16.msra.mxu1 %v17231_v60  ;;  %14625 = vmatpush3.bf16.msra.mxu0 %v16959_v12 }
  0x6d   :  { %14554 = vmatprep.subr.bf16.mxu1 %v19637_v0  ;;  %14626 = vmatprep.subr.bf16.mxu0 %v19637_v0 }
  0x6e   :  { %11455 = vmatprep.mubr.msk.f32.mxu1 %vm16909_vm0, %v19643_v1  ;;  %11560 = vmatprep.mubr.msk.f32.mxu0 %vm16909_vm0, %v19643_v1 }
  0x70   :  { %14556 = vmatpush3.bf16.msra.mxu1 %v17241_v61  ;;  %14628 = vmatpush3.bf16.msra.mxu0 %v16963_v13 }
  0x71   :  { %14557 = vmatprep.subr.bf16.mxu1 %v19637_v0  ;;  %14629 = vmatprep.subr.bf16.mxu0 %v19637_v0 }
  0x74   :  { %14559 = vmatpush3.bf16.msra.mxu1 %v17253_v35  ;;  %14631 = vmatpush3.bf16.msra.mxu0 %v16974_v18 }
  0x75   :  { %14560 = vmatprep.subr.bf16.mxu1 %v19637_v0  ;;  %14632 = vmatprep.subr.bf16.mxu0 %v19637_v0 }
  0x78   :  { %14562 = vmatpush3.bf16.msra.mxu1 %v17261_v36  ;;  %14634 = vmatpush3.bf16.msra.mxu0 %v16988_v24 }
  0x79   :  { %14563 = vmatprep.subr.bf16.mxu1 %v19637_v0  ;;  %14635 = vmatprep.subr.bf16.mxu0 %v19637_v0 }
  0x7c   :  { %14565 = vmatpush3.bf16.msra.mxu1 %v17269_v41  ;;  %14637 = vmatpush3.bf16.msra.mxu0 %v17007_v31 }
  0x7d   :  { %14566 = vmatprep.subr.bf16.mxu1 %v19637_v0  ;;  %14638 = vmatprep.subr.bf16.mxu0 %v19637_v0 }
  0x80   :  { %14568 = vmatpush3.bf16.msra.mxu1 %v17277_v42  ;;  %14640 = vmatpush3.bf16.msra.mxu0 %v17037_v43 }
  0x81   :  { %14569 = vmatprep.subr.bf16.mxu1 %v19637_v0  ;;  %14641 = vmatprep.subr.bf16.mxu0 %v19637_v0 }
  0x84   :  { %14571 = vmatpush3.bf16.msra.mxu1 %v17285_v49  ;;  %14643 = vmatpush3.bf16.msra.mxu0 %v17055_v50 }
  0x85   :  { %14572 = vmatprep.subr.bf16.mxu1 %v19637_v0  ;;  %14644 = vmatprep.subr.bf16.mxu0 %v19637_v0 }
  0x88   :  { %14574 = vmatpush3.bf16.msra.mxu1 %v17293_v56  ;;  %14646 = vmatpush3.bf16.msra.mxu0 %v17076_v59 }
  0x89   :  { %14647 = vmatprep.subr.bf16.mxu1 %v19637_v0  ;;  %14791 = vmatprep.subr.bf16.mxu0 %v19637_v0 }
  0x8b   :  { %11456 = vmatmul.mubr.f32.vlgmr.msra.gmra.mrb[0].mxu1 %v17021_v37  ;;  %11561 = vmatmul.mubr.f32.vlgmr.msra.gmra.mrb[0].mxu0 %v16998_v29 }
  0x8c   :  { %14649 = vmatpush3.bf16.msra.mxu1 %v16959_v12  ;;  %14793 = vmatpush3.bf16.msra.mxu0 %v16959_v12 }
  0x8d   :  { %14650 = vmatprep.subr.bf16.mxu1 %v19637_v0  ;;  %14794 = vmatprep.subr.bf16.mxu0 %v19637_v0 }
  0x8e   :  { %11595 = vmatprep.mubr.msk.f32.mxu1 %vm16909_vm0, %v19643_v1  ;;  %11805 = vmatprep.mubr.msk.f32.mxu0 %vm16909_vm0, %v19643_v1 }
  0x90   :  { %14652 = vmatpush3.bf16.msra.mxu1 %v16963_v13  ;;  %14796 = vmatpush3.bf16.msra.mxu0 %v16963_v13 }
  0x91   :  { %14653 = vmatprep.subr.bf16.mxu1 %v19637_v0  ;;  %14797 = vmatprep.subr.bf16.mxu0 %v19637_v0 }
  0x94   :  { %14655 = vmatpush3.bf16.msra.mxu1 %v16974_v18  ;;  %14799 = vmatpush3.bf16.msra.mxu0 %v16974_v18 }
  0x95   :  { %14656 = vmatprep.subr.bf16.mxu1 %v19637_v0  ;;  %14800 = vmatprep.subr.bf16.mxu0 %v19637_v0 }
  0x98   :  { %14658 = vmatpush3.bf16.msra.mxu1 %v16988_v24  ;;  %14802 = vmatpush3.bf16.msra.mxu0 %v16988_v24 }
  0x99   :  { %14659 = vmatprep.subr.bf16.mxu1 %v19637_v0  ;;  %14803 = vmatprep.subr.bf16.mxu0 %v19637_v0 }
  0x9c   :  { %14661 = vmatpush3.bf16.msra.mxu1 %v17007_v31  ;;  %14805 = vmatpush3.bf16.msra.mxu0 %v17007_v31 }
  0x9d   :  { %14662 = vmatprep.subr.bf16.mxu1 %v19637_v0  ;;  %14806 = vmatprep.subr.bf16.mxu0 %v19637_v0 }
  0xa0   :  { %14664 = vmatpush3.bf16.msra.mxu1 %v17037_v43  ;;  %14808 = vmatpush3.bf16.msra.mxu0 %v17037_v43 }
  0xa1   :  { %14665 = vmatprep.subr.bf16.mxu1 %v19637_v0  ;;  %14809 = vmatprep.subr.bf16.mxu0 %v19637_v0 }
  0xa4   :  { %14667 = vmatpush3.bf16.msra.mxu1 %v17055_v50  ;;  %14811 = vmatpush3.bf16.msra.mxu0 %v17055_v50 }
  0xa5   :  { %14668 = vmatprep.subr.bf16.mxu1 %v19637_v0  ;;  %14812 = vmatprep.subr.bf16.mxu0 %v19637_v0 }
  0xa8   :  { %14670 = vmatpush3.bf16.msra.mxu1 %v17076_v59  ;;  %14814 = vmatpush3.bf16.msra.mxu0 %v17076_v59 }
  0xa9   :  { %14671 = vmatprep.subr.bf16.mxu1 %v19637_v0  ;;  %14815 = vmatprep.subr.bf16.mxu0 %v19637_v0 }
  0xab   :  { %11596 = vmatmul.mubr.f32.vlgmr.msra.gmra.mrb[2].mxu1 %v17355_v3  ;;  %11806 = vmatmul.mubr.f32.vlgmr.msra.gmra.mrb[2].mxu0 %v17357_v39 }
  0xac   :  { %14673 = vmatpush3.bf16.msra.mxu1 %v17110_v14  ;;  %14817 = vmatpush3.bf16.msra.mxu0 %v17110_v14 }
  0xad   :  { %14674 = vmatprep.subr.bf16.mxu1 %v19637_v0  ;;  %14818 = vmatprep.subr.bf16.mxu0 %v19637_v0 }
  0xae   :  { %11630 = vmatprep.mubr.msk.f32.mxu1 %vm16909_vm0, %v19643_v1  ;;  %11840 = vmatprep.mubr.msk.f32.mxu0 %vm16909_vm0, %v19643_v1 }
  0xb0   :  { %14676 = vmatpush3.bf16.msra.mxu1 %v17135_v26  ;;  %14820 = vmatpush3.bf16.msra.mxu0 %v17135_v26 }
  0xb1   :  { %14677 = vmatprep.subr.bf16.mxu1 %v19637_v0  ;;  %14821 = vmatprep.subr.bf16.mxu0 %v19637_v0 }
  0xb4   :  { %14679 = vmatpush3.bf16.msra.mxu1 %v17158_v33  ;;  %14823 = vmatpush3.bf16.msra.mxu0 %v17158_v33 }
  0xb5   :  { %14680 = vmatprep.subr.bf16.mxu1 %v19637_v0  ;;  %14824 = vmatprep.subr.bf16.mxu0 %v19637_v0 }
  0xb8   :  { %14682 = vmatpush3.bf16.msra.mxu1 %v17174_v34  ;;  %14826 = vmatpush3.bf16.msra.mxu0 %v17174_v34 }
  0xb9   :  { %14683 = vmatprep.subr.bf16.mxu1 %v19637_v0  ;;  %14827 = vmatprep.subr.bf16.mxu0 %v19637_v0 }
  0xbc   :  { %14685 = vmatpush3.bf16.msra.mxu1 %v17194_v40  ;;  %14829 = vmatpush3.bf16.msra.mxu0 %v17194_v40 }
  0xbd   :  { %14686 = vmatprep.subr.bf16.mxu1 %v19637_v0  ;;  %14830 = vmatprep.subr.bf16.mxu0 %v19637_v0 }
  0xc0   :  { %14688 = vmatpush3.bf16.msra.mxu1 %v17205_v22  ;;  %14832 = vmatpush3.bf16.msra.mxu0 %v17205_v22 }
  0xc1   :  { %14689 = vmatprep.subr.bf16.mxu1 %v19637_v0  ;;  %14833 = vmatprep.subr.bf16.mxu0 %v19637_v0 }
  0xc4   :  { %14691 = vmatpush3.bf16.msra.mxu1 %v17213_v30  ;;  %14835 = vmatpush3.bf16.msra.mxu0 %v17213_v30 }
  0xc5   :  { %14692 = vmatprep.subr.bf16.mxu1 %v19637_v0  ;;  %14836 = vmatprep.subr.bf16.mxu0 %v19637_v0 }
  0xc8   :  { %14694 = vmatpush3.bf16.msra.mxu1 %v17221_v38  ;;  %14838 = vmatpush3.bf16.msra.mxu0 %v17221_v38 }
  0xc9   :  { %14695 = vmatprep.subr.bf16.mxu1 %v19637_v0  ;;  %14839 = vmatprep.subr.bf16.mxu0 %v19637_v0 }
  0xcb   :  { %11631 = vmatmul.mubr.f32.vlgmr.msra.gmra.mrb[2].mxu1 %v17319_v10  ;;  %11841 = vmatmul.mubr.f32.vlgmr.msra.gmra.mrb[2].mxu0 %v17321_v11 }
  0xcc   :  { %14697 = vmatpush3.bf16.msra.mxu1 %v17231_v60  ;;  %14841 = vmatpush3.bf16.msra.mxu0 %v17231_v60 }
  0xcd   :  { %14698 = vmatprep.subr.bf16.mxu1 %v19637_v0  ;;  %14842 = vmatprep.subr.bf16.mxu0 %v19637_v0 }
  0xce   :  { %11665 = vmatprep.mubr.msk.f32.mxu1 %vm16909_vm0, %v19643_v1  ;;  %11875 = vmatprep.mubr.msk.f32.mxu0 %vm16909_vm0, %v19643_v1 }
  0xd0   :  { %14700 = vmatpush3.bf16.msra.mxu1 %v17241_v61  ;;  %14844 = vmatpush3.bf16.msra.mxu0 %v17241_v61 }
  0xd1   :  { %14701 = vmatprep.subr.bf16.mxu1 %v19637_v0  ;;  %14845 = vmatprep.subr.bf16.mxu0 %v19637_v0 }
  0xd4   :  { %14703 = vmatpush3.bf16.msra.mxu1 %v17253_v35  ;;  %14847 = vmatpush3.bf16.msra.mxu0 %v17253_v35 }
  0xd5   :  { %14704 = vmatprep.subr.bf16.mxu1 %v19637_v0  ;;  %14848 = vmatprep.subr.bf16.mxu0 %v19637_v0 }
  0xd8   :  { %14706 = vmatpush3.bf16.msra.mxu1 %v17261_v36  ;;  %14850 = vmatpush3.bf16.msra.mxu0 %v17261_v36 }
  0xd9   :  { %14707 = vmatprep.subr.bf16.mxu1 %v19637_v0  ;;  %14851 = vmatprep.subr.bf16.mxu0 %v19637_v0 }
  0xdc   :  { %14709 = vmatpush3.bf16.msra.mxu1 %v17269_v41  ;;  %14853 = vmatpush3.bf16.msra.mxu0 %v17269_v41 }
  0xdd   :  { %14710 = vmatprep.subr.bf16.mxu1 %v19637_v0  ;;  %14854 = vmatprep.subr.bf16.mxu0 %v19637_v0 }
  0xe0   :  { %14712 = vmatpush3.bf16.msra.mxu1 %v17277_v42  ;;  %14856 = vmatpush3.bf16.msra.mxu0 %v17277_v42 }
  0xe1   :  { %14713 = vmatprep.subr.bf16.mxu1 %v19637_v0  ;;  %14857 = vmatprep.subr.bf16.mxu0 %v19637_v0 }
  0xe4   :  { %14715 = vmatpush3.bf16.msra.mxu1 %v17285_v49  ;;  %14859 = vmatpush3.bf16.msra.mxu0 %v17285_v49 }
  0xe5   :  { %14716 = vmatprep.subr.bf16.mxu1 %v19637_v0  ;;  %14860 = vmatprep.subr.bf16.mxu0 %v19637_v0 }
  0xe8   :  { %14718 = vmatpush3.bf16.msra.mxu1 %v17293_v56  ;;  %14862 = vmatpush3.bf16.msra.mxu0 %v17293_v56  ;;  %v17611_v56 = vsub.f32 %v58_v8, %v2028_v16  ;;  %v17643_v8 = vsub.f32 %v60_v47, %v2034_v21 }
  0xe9   :  { %14719 = vmatprep.subr.bf16.mxu1 %v19637_v0  ;;  %14863 = vmatprep.subr.bf16.mxu0 %v19637_v0 }
  0xea   :  { %v19855_v30 = vand.u32 4294901760, %v17611_v56 }
  0xeb   :  { %11666 = vmatmul.mubr.f32.vlgmr.msra.gmra.mrb[2].mxu1 %v17328_v23  ;;  %11876 = vmatmul.mubr.f32.vlgmr.msra.gmra.mrb[2].mxu0 %v17331_v25 }
  0xec   :  { %14721 = vmatpush3.bf16.msra.mxu1 %v16959_v12  ;;  %14865 = vmatpush3.bf16.msra.mxu0 %v16959_v12  ;;  %v2126_v22 = vsub.f32 %v17611_v56, %v19855_v30  ;;  %v17680_v30 = vsub.f32 %v17569_v62, %v2043_v2  ;;  %v19858_v62 = vand.u32 4294901760, %v17643_v8 }
  0xed   :  { %14722 = vmatprep.subr.bf16.mxu1 %v19637_v0  ;;  %14866 = vmatprep.subr.bf16.mxu0 %v19637_v0 }
  0xee   :  { %11700 = vmatprep.mubr.msk.f32.mxu1 %vm16909_vm0, %v19643_v1  ;;  %11910 = vmatprep.mubr.msk.f32.mxu0 %vm16909_vm0, %v19643_v1 }
  0xf0   :  { %14724 = vmatpush3.bf16.msra.mxu1 %v16963_v13  ;;  %14868 = vmatpush3.bf16.msra.mxu0 %v16963_v13 }
  0xf1   :  { %14725 = vmatprep.subr.bf16.mxu1 %v19637_v0  ;;  %14869 = vmatprep.subr.bf16.mxu0 %v19637_v0 }
  0xf4   :  { %14727 = vmatpush3.bf16.msra.mxu1 %v16974_v18  ;;  %14871 = vmatpush3.bf16.msra.mxu0 %v16974_v18 }
  0xf5   :  { %14728 = vmatprep.subr.bf16.mxu1 %v19637_v0  ;;  %14872 = vmatprep.subr.bf16.mxu0 %v19637_v0 }
  0xf8   :  { %14730 = vmatpush3.bf16.msra.mxu1 %v16988_v24  ;;  %14874 = vmatpush3.bf16.msra.mxu0 %v16988_v24 }
  0xf9   :  { %14731 = vmatprep.subr.bf16.mxu1 %v19637_v0  ;;  %14875 = vmatprep.subr.bf16.mxu0 %v19637_v0 }
  0xfc   :  { %14733 = vmatpush3.bf16.msra.mxu1 %v17007_v31  ;;  %14877 = vmatpush3.bf16.msra.mxu0 %v17007_v31 }
  0xfd   :  { %14734 = vmatprep.subr.bf16.mxu1 %v19637_v0  ;;  %14878 = vmatprep.subr.bf16.mxu0 %v19637_v0 }
 0x100   :  { %14736 = vmatpush3.bf16.msra.mxu1 %v17037_v43  ;;  %14880 = vmatpush3.bf16.msra.mxu0 %v17037_v43 }
 0x101   :  { %14737 = vmatprep.subr.bf16.mxu1 %v19637_v0  ;;  %14881 = vmatprep.subr.bf16.mxu0 %v19637_v0 }
 0x104   :  { %14739 = vmatpush3.bf16.msra.mxu1 %v17055_v50  ;;  %14883 = vmatpush3.bf16.msra.mxu0 %v17055_v50 }
 0x105   :  { %14740 = vmatprep.subr.bf16.mxu1 %v19637_v0  ;;  %14884 = vmatprep.subr.bf16.mxu0 %v19637_v0 }
 0x108   :  { %14742 = vmatpush3.bf16.msra.mxu1 %v17076_v59  ;;  %14886 = vmatpush3.bf16.msra.mxu0 %v17076_v59 }
 0x109   :  { %14743 = vmatprep.subr.bf16.mxu1 %v19637_v0  ;;  %14887 = vmatprep.subr.bf16.mxu0 %v19637_v0 }
 0x10b   :  { %11701 = vmatmul.mubr.f32.vlgmr.msra.gmra.mrb[2].mxu1 %v17338_v28  ;;  %11911 = vmatmul.mubr.f32.vlgmr.msra.gmra.mrb[2].mxu0 %v17341_v57 }
 0x10c   :  { %14745 = vmatpush3.bf16.msra.mxu1 %v17095_v6  ;;  %14889 = vmatpush3.bf16.msra.mxu0 %v17095_v6  ;;  %v17609_v6 = vsub.f32 %v57_v7, %v2025_v15  ;;  %v17627_v15 = vld [vmem:[#allocation2 + $0xf0] sm:$0xff]  ;;  %v17641_v7 = vsub.f32 %v59_v17, %v2031_v51 }
 0x10d   :  { %14746 = vmatprep.subr.bf16.mxu1 %v19637_v0  ;;  %14890 = vmatprep.subr.bf16.mxu0 %v19637_v0 }
 0x10e   :  { %11735 = vmatprep.mubr.msk.f32.mxu1 %vm16909_vm0, %v19643_v1  ;;  %11945 = vmatprep.mubr.msk.f32.mxu0 %vm16909_vm0, %v19643_v1  ;;  %v19854_v21 = vand.u32 4294901760, %v17609_v6 }
 0x110   :  { %14748 = vmatpush3.bf16.msra.mxu1 %v17117_v19  ;;  %14892 = vmatpush3.bf16.msra.mxu0 %v17117_v19  ;;  %v17607_v19 = vld [vmem:[#allocation2 + $0xe8] sm:$0xff]  ;;  %v2119_v38 = vsub.f32 %v17609_v6, %v19854_v21 }
 0x111   :  { %14749 = vmatprep.subr.bf16.mxu1 %v19637_v0  ;;  %14893 = vmatprep.subr.bf16.mxu0 %v19637_v0  ;;  %v19853_v61 = vand.u32 4294901760, %v17607_v19 }
 0x114   :  { %14751 = vmatpush3.bf16.msra.mxu1 %v17141_v27  ;;  %14895 = vmatpush3.bf16.msra.mxu0 %v17141_v27  ;;  %v17605_v27 = vld [vmem:[#allocation2 + $0xe0] sm:$0xff] }
 0x115   :  { %14752 = vmatprep.subr.bf16.mxu1 %v19637_v0  ;;  %14896 = vmatprep.subr.bf16.mxu0 %v19637_v0  ;;  %v19852_v35 = vand.u32 4294901760, %v17605_v27 }
 0x117   :  { %v17651_v60 = vpack.c.bf16 %v19853_v61, %v19852_v35  ;;  %v19685_v61 = vand.u32 4294901760, %v17641_v7  ;;  %v2127_v35 = vand.u32 4294901760, %v2126_v22 }
 0x118   :  { %14754 = vmatpush3.bf16.msra.mxu1 %v17167_v58  ;;  %14898 = vmatpush3.bf16.msra.mxu0 %v17167_v58  ;;  %v17603_v58 = vld [vmem:[#allocation2 + $0xd8] sm:$0xff] }
 0x119   :  { %14755 = vmatprep.subr.bf16.mxu1 %v19637_v0  ;;  %14899 = vmatprep.subr.bf16.mxu0 %v19637_v0  ;;  %v19677_v41 = vand.u32 4294901760, %v17603_v58  ;;  %v19865_v40 = vand.u32 4294901760, %v17603_v58 }
 0x11c   :  { %14757 = vmatpush3.bf16.msra.mxu1 %v17189_v9  ;;  %14901 = vmatpush3.bf16.msra.mxu0 %v17189_v9  ;;  %v17601_v9 = vld [vmem:[#allocation2 + $0xd0] sm:$0xff] }
 0x11d   :  { %14758 = vmatprep.subr.bf16.mxu1 %v19637_v0  ;;  %14902 = vmatprep.subr.bf16.mxu0 %v19637_v0  ;;  %v19678_v42 = vand.u32 4294901760, %v17601_v9 }
 0x120   :  { %14760 = vmatpush3.bf16.msra.mxu1 %v17201_v20  ;;  %14904 = vmatpush3.bf16.msra.mxu0 %v17201_v20 }
 0x121   :  { %14761 = vmatprep.subr.bf16.mxu1 %v19637_v0  ;;  %14905 = vmatprep.subr.bf16.mxu0 %v19637_v0 }
 0x124   :  { %14763 = vmatpush3.bf16.msra.mxu1 %v17215_v32  ;;  %14907 = vmatpush3.bf16.msra.mxu0 %v17215_v32  ;;  %v17589_v32 = vld [vmem:[#allocation2 + $0xc0] sm:$0xff] }
 0x125   :  { %14764 = vmatprep.subr.bf16.mxu1 %v19637_v0  ;;  %14908 = vmatprep.subr.bf16.mxu0 %v19637_v0  ;;  %v19670_v54 = vand.u32 4294901760, %v17589_v32 }
 0x128   :  { %14766 = vmatpush3.bf16.msra.mxu1 %v17223_v55  ;;  %14910 = vmatpush3.bf16.msra.mxu0 %v17223_v55  ;;  %v19849_v55 = vmov 0.0|0.0  }
 0x129   :  { %14767 = vmatprep.subr.bf16.mxu1 %v19637_v0  ;;  %14911 = vmatprep.subr.bf16.mxu0 %v19637_v0 }
 0x12b   :  { %11736 = vmatmul.mubr.f32.vlgmr.msra.gmra.mrb[2].mxu1 %v17319_v10  ;;  %11946 = vmatmul.mubr.f32.vlgmr.msra.gmra.mrb[2].mxu0 %v17321_v11 }
 0x12c   :  { %14769 = vmatpush3.bf16.msra.mxu1 %v16959_v12  ;;  %14913 = vmatpush3.bf16.msra.mxu0 %v16959_v12 }
 0x12d   :  { %14770 = vmatprep.subr.bf16.mxu1 %v19637_v0  ;;  %14914 = vmatprep.subr.bf16.mxu0 %v19637_v0 }
 0x12e   :  { %11770 = vmatprep.mubr.msk.f32.mxu1 %vm16909_vm0, %v19643_v1  ;;  %11980 = vmatprep.mubr.msk.f32.mxu0 %vm16909_vm0, %v19643_v1 }
 0x130   :  { %14772 = vmatpush3.bf16.msra.mxu1 %v16963_v13  ;;  %14916 = vmatpush3.bf16.msra.mxu0 %v16963_v13  ;;  %v18097_v13 = vld [vmem:[#allocation2 + $0x138] sm:$0xff] }
 0x131   :  { %14773 = vmatprep.subr.bf16.mxu1 %v19637_v0  ;;  %14917 = vmatprep.subr.bf16.mxu0 %v19637_v0 }
 0x134   :  { %14775 = vmatpush3.bf16.msra.mxu1 %v16974_v18  ;;  %14919 = vmatpush3.bf16.msra.mxu0 %v16974_v18  ;;  %v18095_v18 = vld [vmem:[#allocation2 + $0x130] sm:$0xff] }
 0x135   :  { %14776 = vmatprep.subr.bf16.mxu1 %v19637_v0  ;;  %14920 = vmatprep.subr.bf16.mxu0 %v19637_v0 }
 0x138   :  { %14778 = vmatpush3.bf16.msra.mxu1 %v16988_v24  ;;  %14922 = vmatpush3.bf16.msra.mxu0 %v16988_v24 }
 0x139   :  { %14779 = vmatprep.subr.bf16.mxu1 %v19637_v0  ;;  %14923 = vmatprep.subr.bf16.mxu0 %v19637_v0 }
 0x13c   :  { %14781 = vmatpush3.bf16.msra.mxu1 %v17007_v31  ;;  %14925 = vmatpush3.bf16.msra.mxu0 %v17007_v31 }
 0x13d   :  { %14782 = vmatprep.subr.bf16.mxu1 %v19637_v0  ;;  %14926 = vmatprep.subr.bf16.mxu0 %v19637_v0 }
 0x140   :  { %14784 = vmatpush3.bf16.msra.mxu1 %v17037_v43  ;;  %14928 = vmatpush3.bf16.msra.mxu0 %v17037_v43  ;;  %v19891_v43 = vand.u32 4294901760, %v17641_v7 }
 0x141   :  { %14785 = vmatprep.subr.bf16.mxu1 %v19637_v0  ;;  %14929 = vmatprep.subr.bf16.mxu0 %v19637_v0 }
 0x144   :  { %14787 = vmatpush3.bf16.msra.mxu1 %v17055_v50  ;;  %14931 = vmatpush3.bf16.msra.mxu0 %v17055_v50 }
 0x145   :  { %14788 = vmatprep.subr.bf16.mxu1 %v19637_v0  ;;  %14932 = vmatprep.subr.bf16.mxu0 %v19637_v0 }
 0x148   :  { %14790 = vmatpush3.bf16.msra.mxu1 %v17076_v59  ;;  %14934 = vmatpush3.bf16.msra.mxu0 %v17076_v59  ;;  %v19889_v59 = vand.u32 4294901760, %v17611_v56 }
 0x149   :  { %14935 = vmatprep.subr.bf16.mxu1 %v19637_v0  ;;  %15079 = vmatprep.subr.bf16.mxu0 %v19637_v0 }
 0x14b   :  { %11771 = vmatmul.mubr.f32.vlgmr.msra.gmra.mrb[2].mxu1 %v17319_v10  ;;  %11981 = vmatmul.mubr.f32.vlgmr.msra.gmra.mrb[2].mxu0 %v17321_v11 }
 0x14c   :  { %14937 = vmatpush3.bf16.msra.mxu1 %v17551_v44  ;;  %15081 = vmatpush3.bf16.msra.mxu0 %v17551_v44 }
 0x14d   :  { %14938 = vmatprep.subr.bf16.mxu1 %v19637_v0  ;;  %15082 = vmatprep.subr.bf16.mxu0 %v19637_v0  ;;  %v2046_v0 = vand.u32 4294901760, %v17571_v4 }
 0x14e   :  { %12015 = vmatprep.mubr.msk.f32.mxu1 %vm16909_vm0, %v19643_v1  ;;  %12225 = vmatprep.mubr.msk.f32.mxu0 %vm16909_vm0, %v19643_v1  ;;  %v17591_v1 = vld [vmem:[#allocation2 + $0xc8] sm:$0xff] }
 0x14f   :  { %v17595_v20 = vpack.c.bf16 %v2046_v0, %v2043_v2  ;;  %v19669_v53 = vand.u32 4294901760, %v17591_v1  ;;  %v17683_v21 = vsub.f32 %v17571_v4, %v2046_v0  ;;  %v2140_v0 = vsub.f32 %v17643_v8, %v19858_v62 }
 0x150   :  { %14940 = vmatpush3.bf16.msra.mxu1 %v17563_v52  ;;  %15084 = vmatpush3.bf16.msra.mxu0 %v17563_v52  ;;  %v19861_v62 = vand.u32 4294901760, %v17591_v1 }
 0x151   :  { %14941 = vmatprep.subr.bf16.mxu1 %v19849_v55  ;;  %15085 = vmatprep.subr.bf16.mxu0 %v19849_v55  ;;  %19850 = vst [vmem:[#allocation51_spill] sm:$0xff] %v17595_v20  ;;  %v17619_v49 = vpack.c.bf16 %v19669_v53, %v19670_v54  ;;  %v17637_v53 = vpack.c.bf16 %v19677_v41, %v19678_v42  ;;  %v17639_v54 = vld [vmem:[#allocation2 + $0xf8] sm:$0xff]  ;;  %v19687_v41 = vand.u32 4294901760, %v17627_v15  ;;  %v2141_v22 = vand.u32 4294901760, %v2140_v0 }
 0x152   :  { %v19686_v47 = vand.u32 4294901760, %v17639_v54 }
 0x153   :  { %19851 = vst [vmem:[#allocation52_spill] sm:$0xff] %v17619_v49 }
 0x154   :  { %14943 = vmatpush3.bf16.msra.mxu1 %v17583_v63  ;;  %15087 = vmatpush3.bf16.msra.mxu0 %v17583_v63 }
 0x155   :  { %14944 = vmatprep.subr.bf16.mxu1 %v19849_v55  ;;  %15088 = vmatprep.subr.bf16.mxu0 %v19849_v55 }
 0x158   :  { %14946 = vmatpush3.bf16.msra.mxu1 %v17595_v20  ;;  %15090 = vmatpush3.bf16.msra.mxu0 %v17595_v20 }
 0x159   :  { %14947 = vmatprep.subr.bf16.mxu1 %v19849_v55  ;;  %15091 = vmatprep.subr.bf16.mxu0 %v19849_v55 }
 0x15c   :  { %14949 = vmatpush3.bf16.msra.mxu1 %v17619_v49  ;;  %15093 = vmatpush3.bf16.msra.mxu0 %v17619_v49 }
 0x15d   :  { %14950 = vmatprep.subr.bf16.mxu1 %v19849_v55  ;;  %15094 = vmatprep.subr.bf16.mxu0 %v19849_v55 }
 0x15e   :  { %v443_v36 = vpop.f32.mrb[0].mxu1  ;;  %v738_v16 = vpop.f32.mrb[0].mxu0 }
 0x15f   :  { %v17654_v42 = vadd.f32 %v738_v16, %v443_v36  ;;  %v11457_v17 = vpop.f32.mrb[1].mxu1  ;;  %v11562_v51 = vpop.f32.mrb[1].mxu0  ;;  %v19856_v36 = vand.u32 4294901760, %v17555_v45 }
 0x160   :  { %14952 = vmatpush3.bf16.msra.mxu1 %v17637_v53  ;;  %15096 = vmatpush3.bf16.msra.mxu0 %v17637_v53  ;;  %v19857_v17 = vand.u32 4294901760, %v17557_v46 }
 0x161   :  { %v17670_v16 = vsub.f32 %v17555_v45, %v19856_v36  ;;  %14953 = vmatprep.subr.bf16.mxu1 %v19849_v55  ;;  %15097 = vmatprep.subr.bf16.mxu0 %v19849_v55  ;;  %v17689_v45 = vpack.c.bf16 %v19686_v47, %v19687_v41  ;;  %v2120_v36 = vand.u32 4294901760, %v2119_v38  ;;  %v19691_v38 = vand.u32 4294901760, %v17683_v21 }
 0x162   :  { %v17675_v51 = vsub.f32 %v17557_v46, %v19857_v17  ;;  %v2133_v46 = vsub.f32 %v17641_v7, %v19685_v61  ;;  %v19860_v61 = vand.u32 4294901760, %v17589_v32  ;;  %v17715_v41 = vsub.f32 %v17591_v1, %v19861_v62 }
 0x163   :  { %v19688_v4 = vand.u32 4294901760, %v17670_v16  ;;  %v17705_v17 = vpack.c.bf16 %v2127_v35, %v2120_v36  ;;  %v19863_v1 = vand.u32 4294901760, %v17680_v30 }
 0x164   :  { %14955 = vmatpush3.bf16.msra.mxu1 %v17651_v60  ;;  %15099 = vmatpush3.bf16.msra.mxu0 %v17651_v60  ;;  %v17710_v47 = vsub.f32 %v17589_v32, %v19860_v61  ;;  %v2134_v2 = vand.u32 4294901760, %v2133_v46  ;;  %v19862_v36 = vand.u32 4294901760, %v17675_v51  ;;  %v2168_v46 = vsub.f32 %v17683_v21, %v19691_v38 }
 0x165   :  { %14956 = vmatprep.subr.bf16.mxu1 %v19849_v55  ;;  %15100 = vmatprep.subr.bf16.mxu0 %v19849_v55  ;;  %19859 = vst [vmem:[#allocation53_spill] sm:$0xff] %v17705_v17  ;;  %v2147_v35 = vsub.f32 %v17670_v16, %v19688_v4  ;;  %v2161_v61 = vsub.f32 %v17680_v30, %v19863_v1 }
 0x166   :  { %v2154_v32 = vsub.f32 %v17675_v51, %v19862_v36  ;;  %v19864_v36 = vand.u32 4294901760, %v17601_v9  ;;  %v17745_v1 = vsub.f32 %v17603_v58, %v19865_v40  ;;  %v17749_v38 = vpack.c.bf16 %v2141_v22, %v2134_v2 }
 0x167   :  { %v2148_v34 = vand.u32 4294901760, %v2147_v35  ;;  %v2162_v62 = vand.u32 4294901760, %v2161_v61  ;;  %v19868_v58 = vand.u32 4294901760, %v17710_v47  ;;  %v19869_v2 = vand.u32 4294901760, %v17715_v41 }
 0x168   :  { %14958 = vmatpush3.bf16.msra.mxu1 %v17689_v45  ;;  %15102 = vmatpush3.bf16.msra.mxu0 %v17689_v45  ;;  %v17740_v4 = vsub.f32 %v17601_v9, %v19864_v36  ;;  %19866 = vst [vmem:[#allocation54_spill] sm:$0xff] %v17749_v38  ;;  %v2155_v0 = vand.u32 4294901760, %v2154_v32  ;;  %v2169_v9 = vand.u32 4294901760, %v2168_v46  ;;  %v19867_v36 = vmov 0.0  }
 0x169   :  { %14959 = vmatprep.subr.bf16.mxu1 %v19849_v55  ;;  %15103 = vmatprep.subr.bf16.mxu0 %v19849_v55  ;;  %v2175_v40 = vsub.f32 %v17710_v47, %v19868_v58  ;;  %v2182_v22 = vsub.f32 %v17715_v41, %v19869_v2  ;;  %v19870_v46 = vand.u32 4294901760, %v17605_v27  ;;  %v19871_v58 = vand.u32 4294901760, %v17607_v19 }
 0x16a   :  { %v17767_v61 = vpack.c.bf16 %v2155_v0, %v2148_v34  ;;  %v17781_v2 = vpack.c.bf16 %v2169_v9, %v2162_v62  ;;  %v19872_v34 = vand.u32 4294901760, %v17740_v4  ;;  %v19874_v62 = vand.u32 4294901760, %v17627_v15 }
 0x16b   :  { %12016 = vmatmul.mubr.f32.vlgmr.msra.gmra.mrb[4].mxu1 %v17093_v5  ;;  %12226 = vmatmul.mubr.f32.vlgmr.msra.gmra.mrb[4].mxu0 %v17355_v3  ;;  %v17772_v33 = vsub.f32 %v17605_v27, %v19870_v46  ;;  %v17777_v26 = vsub.f32 %v17607_v19, %v19871_v58  ;;  %v2176_v32 = vand.u32 4294901760, %v2175_v40  ;;  %v2183_v35 = vand.u32 4294901760, %v2182_v22  ;;  %v18117_v3 = vld [vmem:[#allocation2 + $0x148] sm:$0xff] }
 0x16c   :  { %14961 = vmatpush3.bf16.msra.mxu1 %v17705_v17  ;;  %15105 = vmatpush3.bf16.msra.mxu0 %v17705_v17  ;;  %v2189_v0 = vsub.f32 %v17740_v4, %v19872_v34  ;;  %v19873_v27 = vand.u32 4294901760, %v17745_v1  ;;  %v17796_v9 = vsub.f32 %v17627_v15, %v19874_v62  ;;  %v19875_v40 = vand.u32 4294901760, %v17639_v54 }
 0x16d   :  { %14962 = vmatprep.subr.bf16.mxu1 %v19849_v55  ;;  %15106 = vmatprep.subr.bf16.mxu0 %v19849_v55  ;;  %v19702_v58 = vand.u32 4294901760, %v17777_v26  ;;  %v17805_v34 = vpack.c.bf16 %v2183_v35, %v2176_v32  ;;  %v19876_v15 = vand.u32 4294901760, %v17772_v33 }
 0x16e   :  { %12050 = vmatprep.mubr.msk.f32.mxu1 %vm16909_vm0, %v19867_v36  ;;  %12260 = vmatprep.mubr.msk.f32.mxu0 %vm16909_vm0, %v19867_v36  ;;  %v2196_v46 = vsub.f32 %v17745_v1, %v19873_v27  ;;  %v17801_v22 = vsub.f32 %v17639_v54, %v19875_v40  ;;  %v2190_v27 = vand.u32 4294901760, %v2189_v0  ;;  %v19701_v40 = vand.u32 4294901760, %v17796_v9 }
 0x16f   :  { %v2203_v62 = vsub.f32 %v17772_v33, %v19876_v15  ;;  %v2210_v54 = vsub.f32 %v17777_v26, %v19702_v58  ;;  %v19888_v58 = vand.u32 4294901760, %v17609_v6 }
 0x170   :  { %14964 = vmatpush3.bf16.msra.mxu1 %v17749_v38  ;;  %15108 = vmatpush3.bf16.msra.mxu0 %v17749_v38  ;;  %v2197_v19 = vand.u32 4294901760, %v2196_v46  ;;  %v19700_v14 = vand.u32 4294901760, %v17801_v22  ;;  %v2217_v46 = vsub.f32 %v17796_v9, %v19701_v40  ;;  %v17909_v40 = vpack.c.bf16 %v17801_v22, %v17796_v9 }
 0x171   :  { %14965 = vmatprep.subr.bf16.mxu1 %v19849_v55  ;;  %15109 = vmatprep.subr.bf16.mxu0 %v19849_v55  ;;  %v2204_v32 = vand.u32 4294901760, %v2203_v62  ;;  %v2211_v0 = vand.u32 4294901760, %v2210_v54  ;;  %v17957_v50 = vpack.c.bf16 %v19889_v59, %v19888_v58  ;;  %v19894_v59 = vand.u32 4294901760, %v17670_v16 }
 0x172   :  { %v17819_v35 = vpack.c.bf16 %v2197_v19, %v2190_v27  ;;  %v2224_v15 = vsub.f32 %v17801_v22, %v19700_v14  ;;  %v2218_v27 = vand.u32 4294901760, %v2217_v46  ;;  %v17869_v46 = vpack.c.bf16 %v17675_v51, %v17670_v16  ;;  %19887 = vst [vmem:[#allocation65_spill] sm:$0xff] %v17909_v40 }
 0x173   :  { %v17833_v19 = vpack.c.bf16 %v2211_v0, %v2204_v32  ;;  %v17847_v32 = vpack.c.bf16 %v17611_v56, %v17609_v6  ;;  %v17857_v0 = vpack.c.bf16 %v17643_v8, %v17641_v7  ;;  %v17901_v14 = vpack.c.bf16 %v17777_v26, %v17772_v33  ;;  %19890 = vst [vmem:[#allocation66_spill] sm:$0xff] %v17957_v50 }
 0x174   :  { %14967 = vmatpush3.bf16.msra.mxu1 %v17767_v61  ;;  %15111 = vmatpush3.bf16.msra.mxu0 %v17767_v61  ;;  %19877 = vst [vmem:[#allocation55_spill] sm:$0xff] %v17819_v35  ;;  %v2225_v62 = vand.u32 4294901760, %v2224_v15  ;;  %19882 = vst [vmem:[#allocation60_spill] sm:$0xff] %v17869_v46  ;;  %v17877_v15 = vpack.c.bf16 %v17683_v21, %v17680_v30  ;;  %v19892_v6 = vand.u32 4294901760, %v17643_v8  ;;  %v19895_v56 = vand.u32 4294901760, %v17675_v51 }
 0x175   :  { %14968 = vmatprep.subr.bf16.mxu1 %v19849_v55  ;;  %15112 = vmatprep.subr.bf16.mxu0 %v19849_v55  ;;  %19878 = vst [vmem:[#allocation56_spill] sm:$0xff] %v17833_v19  ;;  %19880 = vst [vmem:[#allocation58_spill] sm:$0xff] %v17847_v32  ;;  %v19897_v7 = vand.u32 4294901760, %v17680_v30  ;;  %v19898_v8 = vand.u32 4294901760, %v17683_v21  ;;  %v19900_v16 = vand.u32 4294901760, %v17710_v47  ;;  %v19901_v51 = vand.u32 4294901760, %v17715_v41 }
 0x176   :  { %v17839_v54 = vpack.c.bf16 %v2225_v62, %v2218_v27  ;;  %19881 = vst [vmem:[#allocation59_spill] sm:$0xff] %v17857_v0  ;;  %19883 = vst [vmem:[#allocation61_spill] sm:$0xff] %v17877_v15  ;;  %v17885_v27 = vpack.c.bf16 %v17715_v41, %v17710_v47  ;;  %v17893_v62 = vpack.c.bf16 %v17745_v1, %v17740_v4  ;;  %v19903_v30 = vand.u32 4294901760, %v17740_v4 }
 0x177   :  { %19886 = vst [vmem:[#allocation64_spill] sm:$0xff] %v17901_v14  ;;  %v17969_v31 = vpack.c.bf16 %v19892_v6, %v19891_v43  ;;  %v17983_v43 = vpack.c.bf16 %v19895_v56, %v19894_v59  ;;  %v17993_v58 = vpack.c.bf16 %v19898_v8, %v19897_v7  ;;  %v18003_v6 = vpack.c.bf16 %v19901_v51, %v19900_v16  ;;  %v76_v8 = vld [vmem:[#allocation2 + $0x110] sm:$0xff]  ;;  %v77_v16 = vld [vmem:[#allocation2 + $0x118] sm:$0xff] }
 0x178   :  { %14970 = vmatpush3.bf16.msra.mxu1 %v17781_v2  ;;  %15114 = vmatpush3.bf16.msra.mxu0 %v17781_v2  ;;  %19879 = vst [vmem:[#allocation57_spill] sm:$0xff] %v17839_v54  ;;  %19884 = vst [vmem:[#allocation62_spill] sm:$0xff] %v17885_v27  ;;  %v19904_v21 = vand.u32 4294901760, %v17745_v1  ;;  %v19906_v41 = vand.u32 4294901760, %v17772_v33  ;;  %v19907_v47 = vand.u32 4294901760, %v17777_v26  ;;  %v19909_v4 = vand.u32 4294901760, %v17796_v9 }
 0x179   :  { %14971 = vmatprep.subr.bf16.mxu1 %v19849_v55  ;;  %15115 = vmatprep.subr.bf16.mxu0 %v19849_v55  ;;  %19885 = vst [vmem:[#allocation63_spill] sm:$0xff] %v17893_v62  ;;  %19893 = vst [vmem:[#allocation67_spill] sm:$0xff] %v17969_v31  ;;  %v19910_v1 = vand.u32 4294901760, %v17801_v22  ;;  %v74_v26 = vld [vmem:[#allocation2 + $0x100] sm:$0xff]  ;;  %v75_v33 = vld [vmem:[#allocation2 + $0x108] sm:$0xff] }
 0x17a   :  { %19896 = vst [vmem:[#allocation68_spill] sm:$0xff] %v17983_v43  ;;  %19899 = vst [vmem:[#allocation69_spill] sm:$0xff] %v17993_v58  ;;  %v18013_v59 = vpack.c.bf16 %v19904_v21, %v19903_v30  ;;  %v18023_v56 = vpack.c.bf16 %v19907_v47, %v19906_v41  ;;  %v3948_v9 = vand.u32 4294901760, %v74_v26  ;;  %v3951_v22 = vand.u32 4294901760, %v75_v33  ;;  %v18081_v41 = vld [vmem:[#allocation2 + $0x120] sm:$0xff]  ;;  %v18083_v47 = vld [vmem:[#allocation2 + $0x128] sm:$0xff] }
 0x17b   :  { %19902 = vst [vmem:[#allocation70_spill] sm:$0xff] %v18003_v6  ;;  %v18033_v7 = vpack.c.bf16 %v19910_v1, %v19909_v4  ;;  %v3954_v30 = vand.u32 4294901760, %v76_v8  ;;  %v3957_v21 = vand.u32 4294901760, %v77_v16  ;;  %v19727_v1 = vand.u32 4294901760, %v18081_v41 }
 0x17c   :  { %14973 = vmatpush3.bf16.msra.mxu1 %v17805_v34  ;;  %15117 = vmatpush3.bf16.msra.mxu0 %v17805_v34  ;;  %19905 = vst [vmem:[#allocation71_spill] sm:$0xff] %v18013_v59  ;;  %19908 = vst [vmem:[#allocation72_spill] sm:$0xff] %v18023_v56  ;;  %v18077_v51 = vpack.c.bf16 %v3951_v22, %v3948_v9  ;;  %v19726_v24 = vand.u32 4294901760, %v18083_v47 }
 0x17d   :  { %14974 = vmatprep.subr.bf16.mxu1 %v19849_v55  ;;  %15118 = vmatprep.subr.bf16.mxu0 %v19849_v55  ;;  %19911 = vst [vmem:[#allocation73_spill] sm:$0xff] %v18033_v7  ;;  %v18089_v4 = vpack.c.bf16 %v3957_v21, %v3954_v30 }
 0x17e   :  { %v18109_v12 = vpack.c.bf16 %v19726_v24, %v19727_v1  ;;  %v19747_v1 = vand.u32 4294901760, %v18117_v3 }
 0x17f   :  { %19912 = vst [vmem:[#allocation74_spill] sm:$0xff] %v18089_v4 }
 0x180   :  { %14976 = vmatpush3.bf16.msra.mxu1 %v17819_v35  ;;  %15120 = vmatpush3.bf16.msra.mxu0 %v17819_v35  ;;  %19913 = vst [vmem:[#allocation75_spill] sm:$0xff] %v18109_v12 }
 0x181   :  { %14977 = vmatprep.subr.bf16.mxu1 %v19849_v55  ;;  %15121 = vmatprep.subr.bf16.mxu0 %v19849_v55 }
 0x184   :  { %14979 = vmatpush3.bf16.msra.mxu1 %v17833_v19  ;;  %15123 = vmatpush3.bf16.msra.mxu0 %v17833_v19 }
 0x185   :  { %14980 = vmatprep.subr.bf16.mxu1 %v19849_v55  ;;  %15124 = vmatprep.subr.bf16.mxu0 %v19849_v55 }
 0x188   :  { %14982 = vmatpush3.bf16.msra.mxu1 %v17839_v54  ;;  %15126 = vmatpush3.bf16.msra.mxu0 %v17839_v54 }
 0x189   :  { %14983 = vmatprep.subr.bf16.mxu1 %v19849_v55  ;;  %15127 = vmatprep.subr.bf16.mxu0 %v19849_v55 }
 0x18b   :  { %12051 = vmatmul.mubr.f32.vlgmr.msra.gmra.mrb[4].mxu1 %v16998_v29  ;;  %12261 = vmatmul.mubr.f32.vlgmr.msra.gmra.mrb[4].mxu0 %v17319_v10 }
 0x18c   :  { %14985 = vmatpush3.bf16.msra.mxu1 %v17847_v32  ;;  %15129 = vmatpush3.bf16.msra.mxu0 %v17847_v32 }
 0x18d   :  { %14986 = vmatprep.subr.bf16.mxu1 %v19849_v55  ;;  %15130 = vmatprep.subr.bf16.mxu0 %v19849_v55 }
 0x18e   :  { %12085 = vmatprep.mubr.msk.f32.mxu1 %vm16909_vm0, %v19867_v36  ;;  %12295 = vmatprep.mubr.msk.f32.mxu0 %vm16909_vm0, %v19867_v36 }
 0x190   :  { %14988 = vmatpush3.bf16.msra.mxu1 %v17857_v0  ;;  %15132 = vmatpush3.bf16.msra.mxu0 %v17857_v0 }
 0x191   :  { %14989 = vmatprep.subr.bf16.mxu1 %v19849_v55  ;;  %15133 = vmatprep.subr.bf16.mxu0 %v19849_v55 }
 0x194   :  { %14991 = vmatpush3.bf16.msra.mxu1 %v17869_v46  ;;  %15135 = vmatpush3.bf16.msra.mxu0 %v17869_v46 }
 0x195   :  { %14992 = vmatprep.subr.bf16.mxu1 %v19849_v55  ;;  %15136 = vmatprep.subr.bf16.mxu0 %v19849_v55 }
 0x198   :  { %14994 = vmatpush3.bf16.msra.mxu1 %v17877_v15  ;;  %15138 = vmatpush3.bf16.msra.mxu0 %v17877_v15 }
 0x199   :  { %14995 = vmatprep.subr.bf16.mxu1 %v19849_v55  ;;  %15139 = vmatprep.subr.bf16.mxu0 %v19849_v55 }
 0x19c   :  { %14997 = vmatpush3.bf16.msra.mxu1 %v17885_v27  ;;  %15141 = vmatpush3.bf16.msra.mxu0 %v17885_v27 }
 0x19d   :  { %14998 = vmatprep.subr.bf16.mxu1 %v19849_v55  ;;  %15142 = vmatprep.subr.bf16.mxu0 %v19849_v55 }
 0x1a0   :  { %15000 = vmatpush3.bf16.msra.mxu1 %v17893_v62  ;;  %15144 = vmatpush3.bf16.msra.mxu0 %v17893_v62 }
 0x1a1   :  { %15001 = vmatprep.subr.bf16.mxu1 %v19849_v55  ;;  %15145 = vmatprep.subr.bf16.mxu0 %v19849_v55 }
 0x1a4   :  { %15003 = vmatpush3.bf16.msra.mxu1 %v17901_v14  ;;  %15147 = vmatpush3.bf16.msra.mxu0 %v17901_v14 }
 0x1a5   :  { %15004 = vmatprep.subr.bf16.mxu1 %v19849_v55  ;;  %15148 = vmatprep.subr.bf16.mxu0 %v19849_v55 }
 0x1a8   :  { %15006 = vmatpush3.bf16.msra.mxu1 %v17909_v40  ;;  %15150 = vmatpush3.bf16.msra.mxu0 %v17909_v40 }
 0x1a9   :  { %15007 = vmatprep.subr.bf16.mxu1 %v19849_v55  ;;  %15151 = vmatprep.subr.bf16.mxu0 %v19849_v55 }
 0x1ab   :  { %12086 = vmatmul.mubr.f32.vlgmr.msra.gmra.mrb[4].mxu1 %v17021_v37  ;;  %12296 = vmatmul.mubr.f32.vlgmr.msra.gmra.mrb[4].mxu0 %v17328_v23  ;;  %v3969_v23 = vand.u32 4294901760, %v18097_v13 }
 0x1ac   :  { %15009 = vmatpush3.bf16.msra.mxu1 %v17551_v44  ;;  %15153 = vmatpush3.bf16.msra.mxu0 %v17551_v44 }
 0x1ad   :  { %15010 = vmatprep.subr.bf16.mxu1 %v19849_v55  ;;  %15154 = vmatprep.subr.bf16.mxu0 %v19849_v55 }
 0x1ae   :  { %12120 = vmatprep.mubr.msk.f32.mxu1 %vm16909_vm0, %v19867_v36  ;;  %12330 = vmatprep.mubr.msk.f32.mxu0 %vm16909_vm0, %v19867_v36 }
 0x1b0   :  { %15012 = vmatpush3.bf16.msra.mxu1 %v17563_v52  ;;  %15156 = vmatpush3.bf16.msra.mxu0 %v17563_v52 }
 0x1b1   :  { %15013 = vmatprep.subr.bf16.mxu1 %v19849_v55  ;;  %15157 = vmatprep.subr.bf16.mxu0 %v19849_v55 }
 0x1b4   :  { %15015 = vmatpush3.bf16.msra.mxu1 %v17583_v63  ;;  %15159 = vmatpush3.bf16.msra.mxu0 %v17583_v63 }
 0x1b5   :  { %15016 = vmatprep.subr.bf16.mxu1 %v19849_v55  ;;  %15160 = vmatprep.subr.bf16.mxu0 %v19849_v55 }
 0x1b8   :  { %15018 = vmatpush3.bf16.msra.mxu1 %v17595_v20  ;;  %15162 = vmatpush3.bf16.msra.mxu0 %v17595_v20 }
 0x1b9   :  { %15019 = vmatprep.subr.bf16.mxu1 %v19849_v55  ;;  %15163 = vmatprep.subr.bf16.mxu0 %v19849_v55 }
 0x1bc   :  { %15021 = vmatpush3.bf16.msra.mxu1 %v17619_v49  ;;  %15165 = vmatpush3.bf16.msra.mxu0 %v17619_v49 }
 0x1bd   :  { %15022 = vmatprep.subr.bf16.mxu1 %v19849_v55  ;;  %15166 = vmatprep.subr.bf16.mxu0 %v19849_v55 }
 0x1c0   :  { %15024 = vmatpush3.bf16.msra.mxu1 %v17637_v53  ;;  %15168 = vmatpush3.bf16.msra.mxu0 %v17637_v53 }
 0x1c1   :  { %15025 = vmatprep.subr.bf16.mxu1 %v19849_v55  ;;  %15169 = vmatprep.subr.bf16.mxu0 %v19849_v55 }
 0x1c4   :  { %15027 = vmatpush3.bf16.msra.mxu1 %v17651_v60  ;;  %15171 = vmatpush3.bf16.msra.mxu0 %v17651_v60 }
 0x1c5   :  { %15028 = vmatprep.subr.bf16.mxu1 %v19849_v55  ;;  %15172 = vmatprep.subr.bf16.mxu0 %v19849_v55 }
 0x1c8   :  { %15030 = vmatpush3.bf16.msra.mxu1 %v17689_v45  ;;  %15174 = vmatpush3.bf16.msra.mxu0 %v17689_v45 }
 0x1c9   :  { %15031 = vmatprep.subr.bf16.mxu1 %v19849_v55  ;;  %15175 = vmatprep.subr.bf16.mxu0 %v19849_v55 }
 0x1cb   :  { %12121 = vmatmul.mubr.f32.vlgmr.msra.gmra.mrb[4].mxu1 %v17047_v48  ;;  %12331 = vmatmul.mubr.f32.vlgmr.msra.gmra.mrb[4].mxu0 %v17338_v28  ;;  %v3966_v28 = vand.u32 4294901760, %v18095_v18 }
 0x1cc   :  { %15033 = vmatpush3.bf16.msra.mxu1 %v17957_v50  ;;  %15177 = vmatpush3.bf16.msra.mxu0 %v17957_v50 }
 0x1cd   :  { %15034 = vmatprep.subr.bf16.mxu1 %v19849_v55  ;;  %15178 = vmatprep.subr.bf16.mxu0 %v19849_v55 }
 0x1ce   :  { %12155 = vmatprep.mubr.msk.f32.mxu1 %vm16909_vm0, %v19867_v36  ;;  %12365 = vmatprep.mubr.msk.f32.mxu0 %vm16909_vm0, %v19867_v36 }
 0x1d0   :  { %15036 = vmatpush3.bf16.msra.mxu1 %v17969_v31  ;;  %15180 = vmatpush3.bf16.msra.mxu0 %v17969_v31  ;;  %v18137_v31 = vsub.f32 %v75_v33, %v3951_v22  ;;  %v18169_v33 = vsub.f32 %v77_v16, %v3957_v21 }
 0x1d1   :  { %15037 = vmatprep.subr.bf16.mxu1 %v19849_v55  ;;  %15181 = vmatprep.subr.bf16.mxu0 %v19849_v55 }
 0x1d4   :  { %15039 = vmatpush3.bf16.msra.mxu1 %v17983_v43  ;;  %15183 = vmatpush3.bf16.msra.mxu0 %v17983_v43  ;;  %v18135_v43 = vsub.f32 %v74_v26, %v3948_v9  ;;  %v18153_v9 = vld [vmem:[#allocation2 + $0x170] sm:$0xff]  ;;  %v18167_v26 = vsub.f32 %v76_v8, %v3954_v30 }
 0x1d5   :  { %15040 = vmatprep.subr.bf16.mxu1 %v19849_v55  ;;  %15184 = vmatprep.subr.bf16.mxu0 %v19849_v55 }
 0x1d8   :  { %15042 = vmatpush3.bf16.msra.mxu1 %v17993_v58  ;;  %15186 = vmatpush3.bf16.msra.mxu0 %v17993_v58  ;;  %v18133_v58 = vld [vmem:[#allocation2 + $0x168] sm:$0xff] }
 0x1d9   :  { %15043 = vmatprep.subr.bf16.mxu1 %v19849_v55  ;;  %15187 = vmatprep.subr.bf16.mxu0 %v19849_v55 }
 0x1dc   :  { %15045 = vmatpush3.bf16.msra.mxu1 %v18003_v6  ;;  %15189 = vmatpush3.bf16.msra.mxu0 %v18003_v6  ;;  %v18131_v6 = vld [vmem:[#allocation2 + $0x160] sm:$0xff] }
 0x1dd   :  { %15046 = vmatprep.subr.bf16.mxu1 %v19849_v55  ;;  %15190 = vmatprep.subr.bf16.mxu0 %v19849_v55 }
 0x1e0   :  { %15048 = vmatpush3.bf16.msra.mxu1 %v18013_v59  ;;  %15192 = vmatpush3.bf16.msra.mxu0 %v18013_v59  ;;  %v18129_v59 = vld [vmem:[#allocation2 + $0x158] sm:$0xff] }
 0x1e1   :  { %15049 = vmatprep.subr.bf16.mxu1 %v19849_v55  ;;  %15193 = vmatprep.subr.bf16.mxu0 %v19849_v55  ;;  %v19751_v57 = vand.u32 4294901760, %v18129_v59 }
 0x1e4   :  { %15051 = vmatpush3.bf16.msra.mxu1 %v18023_v56  ;;  %15195 = vmatpush3.bf16.msra.mxu0 %v18023_v56  ;;  %v18127_v56 = vld [vmem:[#allocation2 + $0x150] sm:$0xff] }
 0x1e5   :  { %15052 = vmatprep.subr.bf16.mxu1 %v19849_v55  ;;  %15196 = vmatprep.subr.bf16.mxu0 %v19849_v55  ;;  %v19752_v48 = vand.u32 4294901760, %v18127_v56 }
 0x1e8   :  { %15054 = vmatpush3.bf16.msra.mxu1 %v18033_v7  ;;  %15198 = vmatpush3.bf16.msra.mxu0 %v18033_v7  ;;  %v18121_v7 = vpack.c.bf16 %v3969_v23, %v3966_v28 }
 0x1e9   :  { %15055 = vmatprep.subr.bf16.mxu1 %v19849_v55  ;;  %15199 = vmatprep.subr.bf16.mxu0 %v19849_v55 }
 0x1ea   :  { %19914 = vst [vmem:[#allocation76_spill] sm:$0xff] %v18121_v7 }
 0x1eb   :  { %12156 = vmatmul.mubr.f32.vlgmr.msra.gmra.mrb[4].mxu1 %v16998_v29  ;;  %12366 = vmatmul.mubr.f32.vlgmr.msra.gmra.mrb[4].mxu0 %v17319_v10 }
 0x1ec   :  { %15057 = vmatpush3.bf16.msra.mxu1 %v17551_v44  ;;  %15201 = vmatpush3.bf16.msra.mxu0 %v17551_v44 }
 0x1ed   :  { %15058 = vmatprep.subr.bf16.mxu1 %v19849_v55  ;;  %15202 = vmatprep.subr.bf16.mxu0 %v19849_v55 }
 0x1ee   :  { %12190 = vmatprep.mubr.msk.f32.mxu1 %vm16909_vm0, %v19867_v36  ;;  %12400 = vmatprep.mubr.msk.f32.mxu0 %vm16909_vm0, %v19867_v36 }
 0x1f0   :  { %15060 = vmatpush3.bf16.msra.mxu1 %v17563_v52  ;;  %15204 = vmatpush3.bf16.msra.mxu0 %v17563_v52 }
 0x1f1   :  { %15061 = vmatprep.subr.bf16.mxu1 %v19849_v55  ;;  %15205 = vmatprep.subr.bf16.mxu0 %v19849_v55 }
 0x1f4   :  { %15063 = vmatpush3.bf16.msra.mxu1 %v17583_v63  ;;  %15207 = vmatpush3.bf16.msra.mxu0 %v17583_v63 }
 0x1f5   :  { %15064 = vmatprep.subr.bf16.mxu1 %v19849_v55  ;;  %15208 = vmatprep.subr.bf16.mxu0 %v19849_v55 }
 0x1f8   :  { %15066 = vmatpush3.bf16.msra.mxu1 %v17595_v20  ;;  %15210 = vmatpush3.bf16.msra.mxu0 %v17595_v20 }
 0x1f9   :  { %15067 = vmatprep.subr.bf16.mxu1 %v19849_v55  ;;  %15211 = vmatprep.subr.bf16.mxu0 %v19849_v55 }
 0x1fc   :  { %15069 = vmatpush3.bf16.msra.mxu1 %v17619_v49  ;;  %15213 = vmatpush3.bf16.msra.mxu0 %v17619_v49 }
 0x1fd   :  { %15070 = vmatprep.subr.bf16.mxu1 %v19849_v55  ;;  %15214 = vmatprep.subr.bf16.mxu0 %v19849_v55 }
 0x200   :  { %15072 = vmatpush3.bf16.msra.mxu1 %v17637_v53  ;;  %15216 = vmatpush3.bf16.msra.mxu0 %v17637_v53 }
 0x201   :  { %15073 = vmatprep.subr.bf16.mxu1 %v19849_v55  ;;  %15217 = vmatprep.subr.bf16.mxu0 %v19849_v55 }
 0x204   :  { %15075 = vmatpush3.bf16.msra.mxu1 %v17651_v60  ;;  %15219 = vmatpush3.bf16.msra.mxu0 %v17651_v60 }
 0x205   :  { %15076 = vmatprep.subr.bf16.mxu1 %v19849_v55  ;;  %15220 = vmatprep.subr.bf16.mxu0 %v19849_v55 }
 0x208   :  { %15078 = vmatpush3.bf16.msra.mxu1 %v17689_v45  ;;  %15222 = vmatpush3.bf16.msra.mxu0 %v17689_v45 }
 0x209   :  { %15223 = vmatprep.subr.bf16.mxu1 %v19849_v55  ;;  %15367 = vmatprep.subr.bf16.mxu0 %v19849_v55 }
 0x20b   :  { %12191 = vmatmul.mubr.f32.vlgmr.msra.gmra.mrb[4].mxu1 %v16998_v29  ;;  %12401 = vmatmul.mubr.f32.vlgmr.msra.gmra.mrb[4].mxu0 %v17319_v10  ;;  %v18115_v10 = vld [vmem:[#allocation2 + $0x140] sm:$0xff] }
 0x20c   :  { %15225 = vmatpush3.bf16.msra.mxu1 %v17551_v44  ;;  %15369 = vmatpush3.bf16.msra.mxu0 %v18077_v51  ;;  %v19748_v24 = vand.u32 4294901760, %v18115_v10 }
 0x20d   :  { %15226 = vmatprep.subr.bf16.mxu1 %v19849_v55  ;;  %15370 = vmatprep.subr.bf16.mxu0 %v19849_v55 }
 0x20e   :  { %12435 = vmatprep.mubr.msk.f32.mxu1 %vm16909_vm0, %v19867_v36  ;;  %12645 = vmatprep.mubr.msk.f32.mxu0 %vm16909_vm0, %v19867_v36  ;;  %v18145_v50 = vpack.c.bf16 %v19747_v1, %v19748_v24  ;;  %v18163_v1 = vpack.c.bf16 %v19751_v57, %v19752_v48  ;;  %v18165_v24 = vld [vmem:[#allocation2 + $0x178] sm:$0xff]  ;;  %v19917_v57 = vand.u32 4294901760, %v18131_v6  ;;  %v19918_v48 = vand.u32 4294901760, %v18133_v58 }
 0x210   :  { %15228 = vmatpush3.bf16.msra.mxu1 %v17563_v52  ;;  %15372 = vmatpush3.bf16.msra.mxu0 %v18089_v4  ;;  %19915 = vst [vmem:[#allocation77_spill] sm:$0xff] %v18145_v50  ;;  %19916 = vst [vmem:[#allocation78_spill] sm:$0xff] %v18163_v1  ;;  %v19920_v4 = vand.u32 4294901760, %v18137_v31 }
 0x211   :  { %15229 = vmatprep.subr.bf16.mxu1 %v19849_v55  ;;  %15373 = vmatprep.subr.bf16.mxu0 %v19849_v55 }
 0x212   :  { %v4049_v52 = vsub.f32 %v18137_v31, %v19920_v4 }
 0x214   :  { %15231 = vmatpush3.bf16.msra.mxu1 %v17583_v63  ;;  %15375 = vmatpush3.bf16.msra.mxu0 %v18109_v12  ;;  %v19919_v12 = vand.u32 4294901760, %v18135_v43 }
 0x215   :  { %15232 = vmatprep.subr.bf16.mxu1 %v19849_v55  ;;  %15376 = vmatprep.subr.bf16.mxu0 %v19849_v55 }
 0x216   :  { %v4042_v63 = vsub.f32 %v18135_v43, %v19919_v12 }
 0x218   :  { %15234 = vmatpush3.bf16.msra.mxu1 %v17595_v20  ;;  %15378 = vmatpush3.bf16.msra.mxu0 %v18121_v7  ;;  %v9716_v7 = vmul.f32 %v17654_v42, %v17654_v42  ;;  %v19922_v20 = vand.u32 4294901760, %v18083_v47 }
 0x219   :  { %15235 = vmatprep.subr.bf16.mxu1 %v19849_v55  ;;  %15379 = vmatprep.subr.bf16.mxu0 %v19849_v55 }
 0x21a   :  { %v18207_v12 = vsub.f32 %v18083_v47, %v19922_v20  ;;  %v19924_v20 = vand.u32 4294901760, %v18165_v24 }
 0x21c   :  { %15237 = vmatpush3.bf16.msra.mxu1 %v17619_v49  ;;  %15381 = vmatpush3.bf16.msra.mxu0 %v18145_v50  ;;  %v18183_v49 = vpack.c.bf16 %v19918_v48, %v19917_v57  ;;  %v18214_v57 = vsub.f32 %v18095_v18, %v3966_v28  ;;  %v18217_v48 = vsub.f32 %v18097_v13, %v3969_v23  ;;  %v19926_v13 = vand.u32 4294901760, %v18169_v33 }
 0x21d   :  { %15238 = vmatprep.subr.bf16.mxu1 %v19849_v55  ;;  %15382 = vmatprep.subr.bf16.mxu0 %v19849_v55 }
 0x21e   :  { %v18175_v22 = vpop.f32.mrb[2].mxu1  ;;  %v18177_v50 = vpop.f32.mrb[2].mxu0  ;;  %v4063_v23 = vsub.f32 %v18169_v33, %v19926_v13  ;;  %v19928_v13 = vand.u32 4294901760, %v18117_v3 }
 0x21f   :  { %v9717_v16 = vmul.f32 %v18175_v22, %v18175_v22  ;;  %v11772_v30 = vpop.f32.mrb[3].mxu1  ;;  %v11982_v21 = vpop.f32.mrb[3].mxu0  ;;  %v9719_v4 = vmul.f32 %v18177_v50, %v18177_v50 }
 0x220   :  { %15240 = vmatpush3.bf16.msra.mxu1 %v17637_v53  ;;  %15384 = vmatpush3.bf16.msra.mxu0 %v18163_v1  ;;  %v19921_v30 = vand.u32 4294901760, %v18081_v41  ;;  %v19925_v1 = vand.u32 4294901760, %v18167_v26 }
 0x221   :  { %v9718_v8 = vadd.f32 %v9717_v16, %v9716_v7  ;;  %15241 = vmatprep.subr.bf16.mxu1 %v19849_v55  ;;  %15385 = vmatprep.subr.bf16.mxu0 %v19849_v55  ;;  %v4043_v7 = vand.u32 4294901760, %v4042_v63  ;;  %v4050_v16 = vand.u32 4294901760, %v4049_v52  ;;  %v19768_v63 = vand.u32 4294901760, %v18217_v48 }
 0x222   :  { %v18202_v21 = vsub.f32 %v18081_v41, %v19921_v30  ;;  %v19923_v30 = vand.u32 4294901760, %v18153_v9  ;;  %v4056_v18 = vsub.f32 %v18167_v26, %v19925_v1  ;;  %v19927_v1 = vand.u32 4294901760, %v18115_v10 }
 0x223   :  { %v9720_v41 = vadd.f32 %v9719_v4, %v9718_v8  ;;  %v4064_v8 = vand.u32 4294901760, %v4063_v23 }
 0x224   :  { %v18223_v47 = vpack.c.bf16 %v19924_v20, %v19923_v30  ;;  %15243 = vmatpush3.bf16.msra.mxu1 %v17651_v60  ;;  %15387 = vmatpush3.bf16.msra.mxu0 %v18183_v49  ;;  %v19767_v28 = vand.u32 4294901760, %v18202_v21  ;;  %v18239_v30 = vpack.c.bf16 %v4050_v16, %v4043_v7  ;;  %v18244_v20 = vsub.f32 %v18115_v10, %v19927_v1 }
 0x225   :  { %v9721_v4 = vmax.f32 %v9720_v41, 1e-24  ;;  %15244 = vmatprep.subr.bf16.mxu1 %v19849_v55  ;;  %15388 = vmatprep.subr.bf16.mxu0 %v19849_v55  ;;  %v18249_v41 = vsub.f32 %v18117_v3, %v19928_v13  ;;  %v4057_v52 = vand.u32 4294901760, %v4056_v18  ;;  %v19929_v16 = vand.u32 4294901760, %v18207_v12 }
 0x226   :  { %v4070_v7 = vsub.f32 %v18202_v21, %v19767_v28  ;;  %v19930_v3 = vand.u32 4294901760, %v18214_v57  ;;  %v4091_v18 = vsub.f32 %v18217_v48, %v19768_v63  ;;  %v19931_v13 = vand.u32 4294901760, %v18127_v56 }
 0x227   :  { %16820 = vrsqrt.f32 %v9721_v4  ;;  %v4077_v10 = vsub.f32 %v18207_v12, %v19929_v16  ;;  %v19932_v28 = vand.u32 4294901760, %v18129_v59  ;;  %v18283_v63 = vpack.c.bf16 %v4064_v8, %v4057_v52 }
 0x228   :  { %15246 = vmatpush3.bf16.msra.mxu1 %v17689_v45  ;;  %15390 = vmatpush3.bf16.msra.mxu0 %v18223_v47  ;;  %v4084_v4 = vsub.f32 %v18214_v57, %v19930_v3  ;;  %v18274_v16 = vsub.f32 %v18127_v56, %v19931_v13  ;;  %v4092_v56 = vand.u32 4294901760, %v4091_v18  ;;  %v19935_v8 = vand.u32 4294901760, %v18249_v41 }
 0x229   :  { %15247 = vmatprep.subr.bf16.mxu1 %v19849_v55  ;;  %15391 = vmatprep.subr.bf16.mxu0 %v19849_v55  ;;  %v18279_v3 = vsub.f32 %v18129_v59, %v19932_v28  ;;  %19933 = vst [vmem:[#allocation79_spill] sm:$0xff] %v18283_v63  ;;  %v4078_v23 = vand.u32 4294901760, %v4077_v10  ;;  %v19934_v59 = vand.u32 4294901760, %v18244_v20  ;;  %v19936_v18 = vand.u32 4294901760, %v18131_v6 }
 0x22a   :  { %v4085_v1 = vand.u32 4294901760, %v4084_v4  ;;  %v4105_v52 = vsub.f32 %v18249_v41, %v19935_v8 }
 0x22b   :  { %12436 = vmatmul.mubr.f32.vlgmr.msra.gmra.mrb[6].mxu1 %v17357_v39  ;;  %12646 = vmatmul.mubr.f32.vlgmr.msra.gmra.mrb[6].mxu0 %v17093_v5  ;;  %v4071_v5 = vand.u32 4294901760, %v4070_v7  ;;  %v4098_v28 = vsub.f32 %v18244_v20, %v19934_v59  ;;  %v18306_v13 = vsub.f32 %v18131_v6, %v19936_v18  ;;  %v19937_v59 = vand.u32 4294901760, %v18133_v58 }
 0x22c   :  { %15249 = vmatpush3.bf16.msra.mxu1 %v17705_v17  ;;  %15393 = vmatpush3.bf16.msra.mxu0 %v18239_v30  ;;  %v4106_v7 = vand.u32 4294901760, %v4105_v52 }
 0x22d   :  { %15250 = vmatprep.subr.bf16.mxu1 %v19849_v55  ;;  %15394 = vmatprep.subr.bf16.mxu0 %v19849_v55  ;;  %v18301_v4 = vpack.c.bf16 %v4078_v23, %v4071_v5  ;;  %v18311_v17 = vsub.f32 %v18133_v58, %v19937_v59  ;;  %v18318_v23 = vpack.c.bf16 %v4092_v56, %v4085_v1  ;;  %v4099_v18 = vand.u32 4294901760, %v4098_v28 }
 0x22e   :  { %12470 = vmatprep.mubr.msk.f32.mxu1 %vm16909_vm0, %v19867_v36  ;;  %12680 = vmatprep.mubr.msk.f32.mxu0 %vm16909_vm0, %v19867_v36  ;;  %v19941_v58 = vand.u32 4294901760, %v18274_v16  ;;  %v19944_v56 = vand.u32 4294901760, %v18165_v24 }
 0x230   :  { %15252 = vmatpush3.bf16.msra.mxu1 %v17749_v38  ;;  %15396 = vmatpush3.bf16.msra.mxu0 %v18283_v63  ;;  %v4112_v59 = vsub.f32 %v18274_v16, %v19941_v58  ;;  %v19942_v38 = vand.u32 4294901760, %v18279_v3  ;;  %v18344_v28 = vsub.f32 %v18165_v24, %v19944_v56 }
 0x231   :  { %v16821_v8 = vpop.eup %16820  ;;  %15253 = vmatprep.subr.bf16.mxu1 %v19849_v55  ;;  %15397 = vmatprep.subr.bf16.mxu0 %v19849_v55 }
 0x232   :  { %v18316_v10 = vmul.f32 %v16821_v8, %v18177_v50  ;;  %v18321_v5 = vmul.f32 %v16821_v8, %v17654_v42  ;;  %v18324_v6 = vmul.f32 %v16821_v8, %v18175_v22  ;;  %v4119_v63 = vsub.f32 %v18279_v3, %v19942_v38 }
 0x233   :  { %v19778_v50 = vand.u32 4294901760, %v18306_v13  ;;  %v19777_v42 = vand.u32 4294901760, %v18311_v17  ;;  %v19943_v22 = vand.u32 4294901760, %v18153_v9  ;;  %v18348_v38 = vpack.c.bf16 %v4106_v7, %v4099_v18 }
 0x234   :  { %19938 = vst [vmem:[#allocation80_spill] sm:$0xff] %v18316_v10  ;;  %19939 = vst [vmem:[#allocation81_spill] sm:$0xff] %v18321_v5  ;;  %15255 = vmatpush3.bf16.msra.mxu1 %v17767_v61  ;;  %15399 = vmatpush3.bf16.msra.mxu0 %v18301_v4  ;;  %v4113_v52 = vand.u32 4294901760, %v4112_v59  ;;  %v4120_v8 = vand.u32 4294901760, %v4119_v63  ;;  %v19948_v10 = vld [vmem:[#allocation75_spill] sm:$0xff]  ;;  %v19950_v5 = vld [vmem:[#allocation76_spill] sm:$0xff] }
 0x235   :  { %19940 = vst [vmem:[#allocation82_spill] sm:$0xff] %v18324_v6  ;;  %v18339_v1 = vsub.f32 %v18153_v9, %v19943_v22  ;;  %15256 = vmatprep.subr.bf16.mxu1 %v19849_v55  ;;  %15400 = vmatprep.subr.bf16.mxu0 %v19849_v55  ;;  %v4126_v9 = vsub.f32 %v18306_v13, %v19778_v50  ;;  %v19775_v22 = vand.u32 4294901760, %v18344_v28  ;;  %v19946_v50 = vld [vmem:[#allocation74_spill] sm:$0xff]  ;;  %v19949_v6 = vld [vmem:[#allocation51_spill] sm:$0xff] }
 0x236   :  { %v4133_v24 = vsub.f32 %v18311_v17, %v19777_v42  ;;  %v18362_v63 = vpack.c.bf16 %v4120_v8, %v4113_v52  ;;  %v19945_v42 = vld [vmem:[#allocation49_spill] sm:$0xff] }
 0x237   :  { %v19776_v58 = vand.u32 4294901760, %v18339_v1  ;;  %v4127_v7 = vand.u32 4294901760, %v4126_v9  ;;  %v4147_v56 = vsub.f32 %v18344_v28, %v19775_v22  ;;  %v18444_v22 = vpack.c.bf16 %v18311_v17, %v18306_v13 }
 0x238   :  { %15258 = vmatpush3.bf16.msra.mxu1 %v17781_v2  ;;  %15402 = vmatpush3.bf16.msra.mxu0 %v18318_v23  ;;  %v4134_v18 = vand.u32 4294901760, %v4133_v24 }
 0x239   :  { %15259 = vmatprep.subr.bf16.mxu1 %v19849_v55  ;;  %15403 = vmatprep.subr.bf16.mxu0 %v19849_v55  ;;  %v4140_v59 = vsub.f32 %v18339_v1, %v19776_v58  ;;  %v4148_v9 = vand.u32 4294901760, %v4147_v56  ;;  %v18420_v56 = vpack.c.bf16 %v18217_v48, %v18214_v57  ;;  %v18452_v58 = vpack.c.bf16 %v18344_v28, %v18339_v1 }
 0x23a   :  { %v18376_v52 = vpack.c.bf16 %v4134_v18, %v4127_v7  ;;  %v18390_v7 = vpack.c.bf16 %v18137_v31, %v18135_v43  ;;  %v18400_v18 = vpack.c.bf16 %v18169_v33, %v18167_v26 }
 0x23b   :  { %v4141_v8 = vand.u32 4294901760, %v4140_v59  ;;  %v18412_v59 = vpack.c.bf16 %v18207_v12, %v18202_v21 }
 0x23c   :  { %15261 = vmatpush3.bf16.msra.mxu1 %v17805_v34  ;;  %15405 = vmatpush3.bf16.msra.mxu0 %v18348_v38 }
 0x23d   :  { %15262 = vmatprep.subr.bf16.mxu1 %v19849_v55  ;;  %15406 = vmatprep.subr.bf16.mxu0 %v19849_v55  ;;  %v18382_v24 = vpack.c.bf16 %v4148_v9, %v4141_v8  ;;  %v18428_v8 = vpack.c.bf16 %v18249_v41, %v18244_v20  ;;  %v18436_v9 = vpack.c.bf16 %v18279_v3, %v18274_v16 }
 0x240   :  { %15264 = vmatpush3.bf16.msra.mxu1 %v17819_v35  ;;  %15408 = vmatpush3.bf16.msra.mxu0 %v18362_v63 }
 0x241   :  { %15265 = vmatprep.subr.bf16.mxu1 %v19849_v55  ;;  %15409 = vmatprep.subr.bf16.mxu0 %v19849_v55 }
 0x244   :  { %15267 = vmatpush3.bf16.msra.mxu1 %v17833_v19  ;;  %15411 = vmatpush3.bf16.msra.mxu0 %v18376_v52  ;;  %v19959_v19 = vand.u32 4294901760, %v18167_v26  ;;  %v19965_v26 = vand.u32 4294901760, %v18214_v57  ;;  %v19971_v57 = vand.u32 4294901760, %v18274_v16  ;;  %v19976_v16 = vld [vmem:[#allocation72_spill] sm:$0xff] }
 0x245   :  { %15268 = vmatprep.subr.bf16.mxu1 %v19849_v55  ;;  %15412 = vmatprep.subr.bf16.mxu0 %v19849_v55 }
 0x248   :  { %15270 = vmatpush3.bf16.msra.mxu1 %v17839_v54  ;;  %15414 = vmatpush3.bf16.msra.mxu0 %v18382_v24  ;;  %v19958_v54 = vld [vmem:[#allocation66_spill] sm:$0xff] }
 0x249   :  { %15271 = vmatprep.subr.bf16.mxu1 %v19849_v55  ;;  %15415 = vmatprep.subr.bf16.mxu0 %v19849_v55 }
 0x24b   :  { %12471 = vmatmul.mubr.f32.vlgmr.msra.gmra.mrb[6].mxu1 %v17321_v11  ;;  %12681 = vmatmul.mubr.f32.vlgmr.msra.gmra.mrb[6].mxu0 %v16998_v29 }
 0x24c   :  { %15273 = vmatpush3.bf16.msra.mxu1 %v17847_v32  ;;  %15417 = vmatpush3.bf16.msra.mxu0 %v18390_v7  ;;  %v19957_v32 = vld [vmem:[#allocation17_spill] sm:$0xff] }
 0x24d   :  { %15274 = vmatprep.subr.bf16.mxu1 %v19849_v55  ;;  %15418 = vmatprep.subr.bf16.mxu0 %v19849_v55 }
 0x24e   :  { %12505 = vmatprep.mubr.msk.f32.mxu1 %vm16909_vm0, %v19867_v36  ;;  %12715 = vmatprep.mubr.msk.f32.mxu0 %vm16909_vm0, %v19867_v36 }
 0x250   :  { %15276 = vmatpush3.bf16.msra.mxu1 %v17857_v0  ;;  %15420 = vmatpush3.bf16.msra.mxu0 %v18400_v18  ;;  %v19956_v0 = vld [vmem:[#allocation47_spill] sm:$0xff] }
 0x251   :  { %15277 = vmatprep.subr.bf16.mxu1 %v19849_v55  ;;  %15421 = vmatprep.subr.bf16.mxu0 %v19849_v55 }
 0x254   :  { %15279 = vmatpush3.bf16.msra.mxu1 %v17869_v46  ;;  %15423 = vmatpush3.bf16.msra.mxu0 %v18412_v59 }
 0x255   :  { %15280 = vmatprep.subr.bf16.mxu1 %v19849_v55  ;;  %15424 = vmatprep.subr.bf16.mxu0 %v19849_v55 }
 0x258   :  { %15282 = vmatpush3.bf16.msra.mxu1 %v17877_v15  ;;  %15426 = vmatpush3.bf16.msra.mxu0 %v18420_v56  ;;  %v19955_v15 = vand.u32 4294901760, %v18137_v31  ;;  %v19961_v31 = vld [vmem:[#allocation67_spill] sm:$0xff] }
 0x259   :  { %15283 = vmatprep.subr.bf16.mxu1 %v19849_v55  ;;  %15427 = vmatprep.subr.bf16.mxu0 %v19849_v55 }
 0x25c   :  { %15285 = vmatpush3.bf16.msra.mxu1 %v17885_v27  ;;  %15429 = vmatpush3.bf16.msra.mxu0 %v18428_v8  ;;  %v19954_v27 = vand.u32 4294901760, %v18135_v43  ;;  %v19960_v43 = vand.u32 4294901760, %v18169_v33  ;;  %v19966_v33 = vand.u32 4294901760, %v18217_v48  ;;  %v19970_v48 = vld [vmem:[#allocation70_spill] sm:$0xff] }
 0x25d   :  { %15286 = vmatprep.subr.bf16.mxu1 %v19849_v55  ;;  %15430 = vmatprep.subr.bf16.mxu0 %v19849_v55 }
 0x25e   :  { %v18500_v46 = vpack.c.bf16 %v19955_v15, %v19954_v27  ;;  %v18512_v35 = vpack.c.bf16 %v19960_v43, %v19959_v19  ;;  %v19963_v15 = vand.u32 4294901760, %v18207_v12  ;;  %v19964_v27 = vld [vmem:[#allocation68_spill] sm:$0xff]  ;;  %v18536_v43 = vpack.c.bf16 %v19966_v33, %v19965_v26 }
 0x25f   :  { %v19968_v12 = vand.u32 4294901760, %v18244_v20  ;;  %v19972_v26 = vand.u32 4294901760, %v18279_v3  ;;  %v19973_v20 = vld [vmem:[#allocation71_spill] sm:$0xff]  ;;  %v19977_v3 = vand.u32 4294901760, %v18339_v1 }
 0x260   :  { %15288 = vmatpush3.bf16.msra.mxu1 %v17893_v62  ;;  %15432 = vmatpush3.bf16.msra.mxu0 %v18436_v9  ;;  %v19953_v62 = vld [vmem:[#allocation78_spill] sm:$0xff] }
 0x261   :  { %15289 = vmatprep.subr.bf16.mxu1 %v19849_v55  ;;  %15433 = vmatprep.subr.bf16.mxu0 %v19849_v55  ;;  %v18556_v33 = vpack.c.bf16 %v19972_v26, %v19971_v57  ;;  %v19978_v57 = vand.u32 4294901760, %v18344_v28 }
 0x263   :  { %v18576_v26 = vpack.c.bf16 %v19978_v57, %v19977_v3  ;;  %v19980_v57 = vld [vmem:[#allocation48_spill] sm:$0xff] }
 0x264   :  { %15291 = vmatpush3.bf16.msra.mxu1 %v17901_v14  ;;  %15435 = vmatpush3.bf16.msra.mxu0 %v18444_v22  ;;  %v19952_v14 = vld [vmem:[#allocation77_spill] sm:$0xff] }
 0x265   :  { %15292 = vmatprep.subr.bf16.mxu1 %v19849_v55  ;;  %15436 = vmatprep.subr.bf16.mxu0 %v19849_v55 }
 0x268   :  { %15294 = vmatpush3.bf16.msra.mxu1 %v17909_v40  ;;  %15438 = vmatpush3.bf16.msra.mxu0 %v18452_v58  ;;  %v19951_v40 = vld [vmem:[#allocation52_spill] sm:$0xff] }
 0x269   :  { %15295 = vmatprep.subr.bf16.mxu1 %v19849_v55  ;;  %15439 = vmatprep.subr.bf16.mxu0 %v19849_v55 }
 0x26b   :  { %12506 = vmatmul.mubr.f32.vlgmr.msra.gmra.mrb[6].mxu1 %v17331_v25  ;;  %12716 = vmatmul.mubr.f32.vlgmr.msra.gmra.mrb[6].mxu0 %v17021_v37  ;;  %v19947_v37 = vld [vmem:[#allocation50_spill] sm:$0xff] }
 0x26c   :  { %15297 = vmatpush3.bf16.msra.mxu1 %v17551_v44  ;;  %15441 = vmatpush3.bf16.msra.mxu0 %v18077_v51 }
 0x26d   :  { %15298 = vmatprep.subr.bf16.mxu1 %v19849_v55  ;;  %15442 = vmatprep.subr.bf16.mxu0 %v19849_v55 }
 0x26e   :  { %12540 = vmatprep.mubr.msk.f32.mxu1 %vm16909_vm0, %v19867_v36  ;;  %12750 = vmatprep.mubr.msk.f32.mxu0 %vm16909_vm0, %v19867_v36 }
 0x270   :  { %15300 = vmatpush3.bf16.msra.mxu1 %v19945_v42  ;;  %15444 = vmatpush3.bf16.msra.mxu0 %v19946_v50 }
 0x271   :  { %15301 = vmatprep.subr.bf16.mxu1 %v19849_v55  ;;  %15445 = vmatprep.subr.bf16.mxu0 %v19849_v55 }
 0x274   :  { %15303 = vmatpush3.bf16.msra.mxu1 %v19947_v37  ;;  %15447 = vmatpush3.bf16.msra.mxu0 %v19948_v10 }
 0x275   :  { %15304 = vmatprep.subr.bf16.mxu1 %v19849_v55  ;;  %15448 = vmatprep.subr.bf16.mxu0 %v19849_v55 }
 0x278   :  { %15306 = vmatpush3.bf16.msra.mxu1 %v19949_v6  ;;  %15450 = vmatpush3.bf16.msra.mxu0 %v19950_v5 }
 0x279   :  { %15307 = vmatprep.subr.bf16.mxu1 %v19849_v55  ;;  %15451 = vmatprep.subr.bf16.mxu0 %v19849_v55 }
 0x27c   :  { %15309 = vmatpush3.bf16.msra.mxu1 %v19951_v40  ;;  %15453 = vmatpush3.bf16.msra.mxu0 %v19952_v14 }
 0x27d   :  { %15310 = vmatprep.subr.bf16.mxu1 %v19849_v55  ;;  %15454 = vmatprep.subr.bf16.mxu0 %v19849_v55 }
 0x280   :  { %15312 = vmatpush3.bf16.msra.mxu1 %v17637_v53  ;;  %15456 = vmatpush3.bf16.msra.mxu0 %v19953_v62 }
 0x281   :  { %15313 = vmatprep.subr.bf16.mxu1 %v19849_v55  ;;  %15457 = vmatprep.subr.bf16.mxu0 %v19849_v55 }
 0x284   :  { %15315 = vmatpush3.bf16.msra.mxu1 %v17651_v60  ;;  %15459 = vmatpush3.bf16.msra.mxu0 %v18183_v49 }
 0x285   :  { %15316 = vmatprep.subr.bf16.mxu1 %v19849_v55  ;;  %15460 = vmatprep.subr.bf16.mxu0 %v19849_v55 }
 0x288   :  { %15318 = vmatpush3.bf16.msra.mxu1 %v17689_v45  ;;  %15462 = vmatpush3.bf16.msra.mxu0 %v18223_v47 }
 0x289   :  { %15319 = vmatprep.subr.bf16.mxu1 %v19849_v55  ;;  %15463 = vmatprep.subr.bf16.mxu0 %v19849_v55 }
 0x28b   :  { %12541 = vmatmul.mubr.f32.vlgmr.msra.gmra.mrb[6].mxu1 %v19956_v0  ;;  %12751 = vmatmul.mubr.f32.vlgmr.msra.gmra.mrb[6].mxu0 %v19957_v32  ;;  %v19962_v32 = vand.u32 4294901760, %v18202_v21  ;;  %v19967_v21 = vld [vmem:[#allocation69_spill] sm:$0xff] }
 0x28c   :  { %15321 = vmatpush3.bf16.msra.mxu1 %v19958_v54  ;;  %15465 = vmatpush3.bf16.msra.mxu0 %v18500_v46 }
 0x28d   :  { %15322 = vmatprep.subr.bf16.mxu1 %v19849_v55  ;;  %15466 = vmatprep.subr.bf16.mxu0 %v19849_v55  ;;  %v18526_v19 = vpack.c.bf16 %v19963_v15, %v19962_v32  ;;  %v19969_v32 = vand.u32 4294901760, %v18249_v41  ;;  %v19974_v41 = vand.u32 4294901760, %v18306_v13 }
 0x28e   :  { %12575 = vmatprep.mubr.msk.f32.mxu1 %vm16909_vm0, %v19867_v36  ;;  %12785 = vmatprep.mubr.msk.f32.mxu0 %vm16909_vm0, %v19867_v36 }
 0x28f   :  { %v18546_v15 = vpack.c.bf16 %v19969_v32, %v19968_v12  ;;  %v19975_v12 = vand.u32 4294901760, %v18311_v17  ;;  %v19979_v17 = vld [vmem:[#allocation73_spill] sm:$0xff] }
 0x290   :  { %15324 = vmatpush3.bf16.msra.mxu1 %v19961_v31  ;;  %15468 = vmatpush3.bf16.msra.mxu0 %v18512_v35 }
 0x291   :  { %15325 = vmatprep.subr.bf16.mxu1 %v19849_v55  ;;  %15469 = vmatprep.subr.bf16.mxu0 %v19849_v55  ;;  %v18566_v32 = vpack.c.bf16 %v19975_v12, %v19974_v41 }
 0x294   :  { %15327 = vmatpush3.bf16.msra.mxu1 %v19964_v27  ;;  %15471 = vmatpush3.bf16.msra.mxu0 %v18526_v19 }
 0x295   :  { %15328 = vmatprep.subr.bf16.mxu1 %v19849_v55  ;;  %15472 = vmatprep.subr.bf16.mxu0 %v19849_v55 }
 0x298   :  { %15330 = vmatpush3.bf16.msra.mxu1 %v19967_v21  ;;  %15474 = vmatpush3.bf16.msra.mxu0 %v18536_v43 }
 0x299   :  { %15331 = vmatprep.subr.bf16.mxu1 %v19849_v55  ;;  %15475 = vmatprep.subr.bf16.mxu0 %v19849_v55 }
 0x29c   :  { %15333 = vmatpush3.bf16.msra.mxu1 %v19970_v48  ;;  %15477 = vmatpush3.bf16.msra.mxu0 %v18546_v15 }
 0x29d   :  { %15334 = vmatprep.subr.bf16.mxu1 %v19849_v55  ;;  %15478 = vmatprep.subr.bf16.mxu0 %v19849_v55 }
 0x2a0   :  { %15336 = vmatpush3.bf16.msra.mxu1 %v19973_v20  ;;  %15480 = vmatpush3.bf16.msra.mxu0 %v18556_v33 }
 0x2a1   :  { %15337 = vmatprep.subr.bf16.mxu1 %v19849_v55  ;;  %15481 = vmatprep.subr.bf16.mxu0 %v19849_v55 }
 0x2a4   :  { %15339 = vmatpush3.bf16.msra.mxu1 %v19976_v16  ;;  %15483 = vmatpush3.bf16.msra.mxu0 %v18566_v32 }
 0x2a5   :  { %15340 = vmatprep.subr.bf16.mxu1 %v19849_v55  ;;  %15484 = vmatprep.subr.bf16.mxu0 %v19849_v55 }
 0x2a8   :  { %15342 = vmatpush3.bf16.msra.mxu1 %v19979_v17  ;;  %15486 = vmatpush3.bf16.msra.mxu0 %v18576_v26 }
 0x2a9   :  { %15343 = vmatprep.subr.bf16.mxu1 %v19849_v55  ;;  %15487 = vmatprep.subr.bf16.mxu0 %v19849_v55 }
 0x2ab   :  { %12576 = vmatmul.mubr.f32.vlgmr.msra.gmra.mrb[6].mxu1 %v17321_v11  ;;  %12786 = vmatmul.mubr.f32.vlgmr.msra.gmra.mrb[6].mxu0 %v16998_v29 }
 0x2ac   :  { %15345 = vmatpush3.bf16.msra.mxu1 %v17551_v44  ;;  %15489 = vmatpush3.bf16.msra.mxu0 %v18077_v51 }
 0x2ad   :  { %15346 = vmatprep.subr.bf16.mxu1 %v19849_v55  ;;  %15490 = vmatprep.subr.bf16.mxu0 %v19849_v55 }
 0x2ae   :  { %12610 = vmatprep.mubr.msk.f32.mxu1 %vm16909_vm0, %v19867_v36  ;;  %12820 = vmatprep.mubr.msk.f32.mxu0 %vm16909_vm0, %v19867_v36 }
 0x2b0   :  { %15348 = vmatpush3.bf16.msra.mxu1 %v19945_v42  ;;  %15492 = vmatpush3.bf16.msra.mxu0 %v19946_v50 }
 0x2b1   :  { %15349 = vmatprep.subr.bf16.mxu1 %v19849_v55  ;;  %15493 = vmatprep.subr.bf16.mxu0 %v19849_v55 }
 0x2b4   :  { %15351 = vmatpush3.bf16.msra.mxu1 %v19947_v37  ;;  %15495 = vmatpush3.bf16.msra.mxu0 %v19948_v10 }
 0x2b5   :  { %15352 = vmatprep.subr.bf16.mxu1 %v19849_v55  ;;  %15496 = vmatprep.subr.bf16.mxu0 %v19849_v55 }
 0x2b8   :  { %15354 = vmatpush3.bf16.msra.mxu1 %v19949_v6  ;;  %15498 = vmatpush3.bf16.msra.mxu0 %v19950_v5 }
 0x2b9   :  { %15355 = vmatprep.subr.bf16.mxu1 %v19849_v55  ;;  %15499 = vmatprep.subr.bf16.mxu0 %v19849_v55 }
 0x2bc   :  { %15357 = vmatpush3.bf16.msra.mxu1 %v19951_v40  ;;  %15501 = vmatpush3.bf16.msra.mxu0 %v19952_v14 }
 0x2bd   :  { %15358 = vmatprep.subr.bf16.mxu1 %v19849_v55  ;;  %15502 = vmatprep.subr.bf16.mxu0 %v19849_v55 }
 0x2c0   :  { %15360 = vmatpush3.bf16.msra.mxu1 %v17637_v53  ;;  %15504 = vmatpush3.bf16.msra.mxu0 %v19953_v62 }
 0x2c1   :  { %15361 = vmatprep.subr.bf16.mxu1 %v19849_v55  ;;  %15505 = vmatprep.subr.bf16.mxu0 %v19849_v55 }
 0x2c4   :  { %15363 = vmatpush3.bf16.msra.mxu1 %v17651_v60  ;;  %15507 = vmatpush3.bf16.msra.mxu0 %v18183_v49 }
 0x2c5   :  { %15364 = vmatprep.subr.bf16.mxu1 %v19849_v55  ;;  %15508 = vmatprep.subr.bf16.mxu0 %v19849_v55 }
 0x2c8   :  { %15366 = vmatpush3.bf16.msra.mxu1 %v17689_v45  ;;  %15510 = vmatpush3.bf16.msra.mxu0 %v18223_v47 }
 0x2c9   :  { %15511 = vmatprep.subr.bf16.mxu1 %v19849_v55  ;;  %15655 = vmatprep.subr.bf16.mxu0 %v19849_v55 }
 0x2cb   :  { %12611 = vmatmul.mubr.f32.vlgmr.msra.gmra.mrb[6].mxu1 %v17321_v11  ;;  %12821 = vmatmul.mubr.f32.vlgmr.msra.gmra.mrb[6].mxu0 %v16998_v29 }
 0x2cc   :  { %15513 = vmatpush3.bf16.msra.mxu1 %v18077_v51  ;;  %15657 = vmatpush3.bf16.msra.mxu0 %v18077_v51 }
 0x2cd   :  { %15514 = vmatprep.subr.bf16.mxu1 %v19849_v55  ;;  %15658 = vmatprep.subr.bf16.mxu0 %v19849_v55 }
 0x2ce   :  { %12855 = vmatprep.mubr.msk.f32.mxu1 %vm16909_vm0, %v19867_v36  ;;  %13065 = vmatprep.mubr.msk.f32.mxu0 %vm16909_vm0, %v19867_v36 }
 0x2d0   :  { %15516 = vmatpush3.bf16.msra.mxu1 %v19946_v50  ;;  %15660 = vmatpush3.bf16.msra.mxu0 %v19946_v50 }
 0x2d1   :  { %15517 = vmatprep.subr.bf16.mxu1 %v19849_v55  ;;  %15661 = vmatprep.subr.bf16.mxu0 %v19849_v55 }
 0x2d4   :  { %15519 = vmatpush3.bf16.msra.mxu1 %v19948_v10  ;;  %15663 = vmatpush3.bf16.msra.mxu0 %v19948_v10 }
 0x2d5   :  { %15520 = vmatprep.subr.bf16.mxu1 %v19849_v55  ;;  %15664 = vmatprep.subr.bf16.mxu0 %v19849_v55 }
 0x2d8   :  { %15522 = vmatpush3.bf16.msra.mxu1 %v19950_v5  ;;  %15666 = vmatpush3.bf16.msra.mxu0 %v19950_v5 }
 0x2d9   :  { %15523 = vmatprep.subr.bf16.mxu1 %v19849_v55  ;;  %15667 = vmatprep.subr.bf16.mxu0 %v19849_v55 }
 0x2dc   :  { %15525 = vmatpush3.bf16.msra.mxu1 %v19952_v14  ;;  %15669 = vmatpush3.bf16.msra.mxu0 %v19952_v14 }
 0x2dd   :  { %15526 = vmatprep.subr.bf16.mxu1 %v19849_v55  ;;  %15670 = vmatprep.subr.bf16.mxu0 %v19849_v55 }
 0x2de   :  { %v18648_v29 = vpop.f32.mrb[4].mxu1  ;;  %v18650_v13 = vpop.f32.mrb[4].mxu0 }
 0x2df   :  { %v9726_v1 = vmul.f32 %v18648_v29, %v18648_v29  ;;  %v9727_v28 = vmul.f32 %v18650_v13, %v18650_v13  ;;  %v12192_v41 = vpop.f32.mrb[5].mxu1  ;;  %v12402_v12 = vpop.f32.mrb[5].mxu0 }
 0x2e0   :  { %15528 = vmatpush3.bf16.msra.mxu1 %v19953_v62  ;;  %15672 = vmatpush3.bf16.msra.mxu0 %v19953_v62  ;;  %v20002_v41 = vld [vmem:[#allocation25_spill] sm:$0xff]  ;;  %v20003_v12 = vld [vmem:[#allocation27_spill] sm:$0xff] }
 0x2e1   :  { %v18658_v3 = vadd.f32 %v9727_v28, %v9726_v1  ;;  %15529 = vmatprep.subr.bf16.mxu1 %v19849_v55  ;;  %15673 = vmatprep.subr.bf16.mxu0 %v19849_v55  ;;  %v19981_v1 = vld [vmem:[#allocation79_spill] sm:$0xff] }
 0x2e4   :  { %15531 = vmatpush3.bf16.msra.mxu1 %v18183_v49  ;;  %15675 = vmatpush3.bf16.msra.mxu0 %v18183_v49 }
 0x2e5   :  { %15532 = vmatprep.subr.bf16.mxu1 %v19849_v55  ;;  %15676 = vmatprep.subr.bf16.mxu0 %v19849_v55 }
 0x2e8   :  { %15534 = vmatpush3.bf16.msra.mxu1 %v18223_v47  ;;  %15678 = vmatpush3.bf16.msra.mxu0 %v18223_v47 }
 0x2e9   :  { %15535 = vmatprep.subr.bf16.mxu1 %v19849_v55  ;;  %15679 = vmatprep.subr.bf16.mxu0 %v19849_v55 }
 0x2eb   :  { %12856 = vmatmul.mubr.f32.vlgmr.msra.gmra.mrb[8].mxu1 %v19980_v57  ;;  %13066 = vmatmul.mubr.f32.vlgmr.msra.gmra.mrb[8].mxu0 %v17357_v39  ;;  %v19982_v39 = vld [vmem:[#allocation44_spill] sm:$0xff]  ;;  %v20007_v57 = vld [vmem:[#allocation34_spill] sm:$0xff] }
 0x2ec   :  { %15537 = vmatpush3.bf16.msra.mxu1 %v18239_v30  ;;  %15681 = vmatpush3.bf16.msra.mxu0 %v18239_v30  ;;  %v19983_v30 = vld [vmem:[#allocation45_spill] sm:$0xff] }
 0x2ed   :  { %15538 = vmatprep.subr.bf16.mxu1 %v19849_v55  ;;  %15682 = vmatprep.subr.bf16.mxu0 %v19849_v55 }
 0x2ee   :  { %12890 = vmatprep.mubr.msk.f32.mxu1 %vm16909_vm0, %v19867_v36  ;;  %13100 = vmatprep.mubr.msk.f32.mxu0 %vm16909_vm0, %v19867_v36 }
 0x2f0   :  { %15540 = vmatpush3.bf16.msra.mxu1 %v19981_v1  ;;  %15684 = vmatpush3.bf16.msra.mxu0 %v19981_v1  ;;  %v20008_v1 = vld [vmem:[#allocation36_spill] sm:$0xff] }
 0x2f1   :  { %15541 = vmatprep.subr.bf16.mxu1 %v19849_v55  ;;  %15685 = vmatprep.subr.bf16.mxu0 %v19849_v55 }
 0x2f4   :  { %15543 = vmatpush3.bf16.msra.mxu1 %v18301_v4  ;;  %15687 = vmatpush3.bf16.msra.mxu0 %v18301_v4  ;;  %v19991_v4 = vld [vmem:[#allocation15_spill] sm:$0xff] }
 0x2f5   :  { %15544 = vmatprep.subr.bf16.mxu1 %v19849_v55  ;;  %15688 = vmatprep.subr.bf16.mxu0 %v19849_v55 }
 0x2f8   :  { %15546 = vmatpush3.bf16.msra.mxu1 %v18318_v23  ;;  %15690 = vmatpush3.bf16.msra.mxu0 %v18318_v23 }
 0x2f9   :  { %15547 = vmatprep.subr.bf16.mxu1 %v19849_v55  ;;  %15691 = vmatprep.subr.bf16.mxu0 %v19849_v55 }
 0x2fc   :  { %15549 = vmatpush3.bf16.msra.mxu1 %v18348_v38  ;;  %15693 = vmatpush3.bf16.msra.mxu0 %v18348_v38 }
 0x2fd   :  { %15550 = vmatprep.subr.bf16.mxu1 %v19849_v55  ;;  %15694 = vmatprep.subr.bf16.mxu0 %v19849_v55 }
 0x300   :  { %15552 = vmatpush3.bf16.msra.mxu1 %v18362_v63  ;;  %15696 = vmatpush3.bf16.msra.mxu0 %v18362_v63 }
 0x301   :  { %15553 = vmatprep.subr.bf16.mxu1 %v19849_v55  ;;  %15697 = vmatprep.subr.bf16.mxu0 %v19849_v55 }
 0x304   :  { %15555 = vmatpush3.bf16.msra.mxu1 %v18376_v52  ;;  %15699 = vmatpush3.bf16.msra.mxu0 %v18376_v52  ;;  %v19993_v52 = vld [vmem:[#allocation16_spill] sm:$0xff] }
 0x305   :  { %15556 = vmatprep.subr.bf16.mxu1 %v19849_v55  ;;  %15700 = vmatprep.subr.bf16.mxu0 %v19849_v55 }
 0x308   :  { %15558 = vmatpush3.bf16.msra.mxu1 %v18382_v24  ;;  %15702 = vmatpush3.bf16.msra.mxu0 %v18382_v24 }
 0x309   :  { %15559 = vmatprep.subr.bf16.mxu1 %v19849_v55  ;;  %15703 = vmatprep.subr.bf16.mxu0 %v19849_v55 }
 0x30b   :  { %12891 = vmatmul.mubr.f32.vlgmr.msra.gmra.mrb[8].mxu1 %v19982_v39  ;;  %13101 = vmatmul.mubr.f32.vlgmr.msra.gmra.mrb[8].mxu0 %v17321_v11 }
 0x30c   :  { %15561 = vmatpush3.bf16.msra.mxu1 %v18390_v7  ;;  %15705 = vmatpush3.bf16.msra.mxu0 %v18390_v7 }
 0x30d   :  { %15562 = vmatprep.subr.bf16.mxu1 %v19849_v55  ;;  %15706 = vmatprep.subr.bf16.mxu0 %v19849_v55 }
 0x30e   :  { %12925 = vmatprep.mubr.msk.f32.mxu1 %vm16909_vm0, %v19867_v36  ;;  %13135 = vmatprep.mubr.msk.f32.mxu0 %vm16909_vm0, %v19867_v36 }
 0x310   :  { %15564 = vmatpush3.bf16.msra.mxu1 %v18400_v18  ;;  %15708 = vmatpush3.bf16.msra.mxu0 %v18400_v18 }
 0x311   :  { %15565 = vmatprep.subr.bf16.mxu1 %v19849_v55  ;;  %15709 = vmatprep.subr.bf16.mxu0 %v19849_v55 }
 0x314   :  { %15567 = vmatpush3.bf16.msra.mxu1 %v18412_v59  ;;  %15711 = vmatpush3.bf16.msra.mxu0 %v18412_v59 }
 0x315   :  { %15568 = vmatprep.subr.bf16.mxu1 %v19849_v55  ;;  %15712 = vmatprep.subr.bf16.mxu0 %v19849_v55 }
 0x318   :  { %15570 = vmatpush3.bf16.msra.mxu1 %v18420_v56  ;;  %15714 = vmatpush3.bf16.msra.mxu0 %v18420_v56  ;;  %v19994_v56 = vld [vmem:[#allocation18_spill] sm:$0xff] }
 0x319   :  { %15571 = vmatprep.subr.bf16.mxu1 %v19849_v55  ;;  %15715 = vmatprep.subr.bf16.mxu0 %v19849_v55 }
 0x31c   :  { %15573 = vmatpush3.bf16.msra.mxu1 %v18428_v8  ;;  %15717 = vmatpush3.bf16.msra.mxu0 %v18428_v8 }
 0x31d   :  { %15574 = vmatprep.subr.bf16.mxu1 %v19849_v55  ;;  %15718 = vmatprep.subr.bf16.mxu0 %v19849_v55 }
 0x320   :  { %15576 = vmatpush3.bf16.msra.mxu1 %v18436_v9  ;;  %15720 = vmatpush3.bf16.msra.mxu0 %v18436_v9 }
 0x321   :  { %15577 = vmatprep.subr.bf16.mxu1 %v19849_v55  ;;  %15721 = vmatprep.subr.bf16.mxu0 %v19849_v55 }
 0x324   :  { %15579 = vmatpush3.bf16.msra.mxu1 %v18444_v22  ;;  %15723 = vmatpush3.bf16.msra.mxu0 %v18444_v22 }
 0x325   :  { %15580 = vmatprep.subr.bf16.mxu1 %v19849_v55  ;;  %15724 = vmatprep.subr.bf16.mxu0 %v19849_v55 }
 0x328   :  { %15582 = vmatpush3.bf16.msra.mxu1 %v18452_v58  ;;  %15726 = vmatpush3.bf16.msra.mxu0 %v18452_v58 }
 0x329   :  { %15583 = vmatprep.subr.bf16.mxu1 %v19849_v55  ;;  %15727 = vmatprep.subr.bf16.mxu0 %v19849_v55 }
 0x32b   :  { %12926 = vmatmul.mubr.f32.vlgmr.msra.gmra.mrb[8].mxu1 %v19983_v30  ;;  %13136 = vmatmul.mubr.f32.vlgmr.msra.gmra.mrb[8].mxu0 %v17331_v25  ;;  %v19984_v25 = vld [vmem:[#allocation46_spill] sm:$0xff] }
 0x32c   :  { %15585 = vmatpush3.bf16.msra.mxu1 %v18077_v51  ;;  %15729 = vmatpush3.bf16.msra.mxu0 %v18077_v51  ;;  %v20010_v30 = vld [vmem:[#allocation38_spill] sm:$0xff] }
 0x32d   :  { %15586 = vmatprep.subr.bf16.mxu1 %v19849_v55  ;;  %15730 = vmatprep.subr.bf16.mxu0 %v19849_v55 }
 0x32e   :  { %12960 = vmatprep.mubr.msk.f32.mxu1 %vm16909_vm0, %v19867_v36  ;;  %13170 = vmatprep.mubr.msk.f32.mxu0 %vm16909_vm0, %v19867_v36 }
 0x330   :  { %15588 = vmatpush3.bf16.msra.mxu1 %v19946_v50  ;;  %15732 = vmatpush3.bf16.msra.mxu0 %v19946_v50 }
 0x331   :  { %15589 = vmatprep.subr.bf16.mxu1 %v19849_v55  ;;  %15733 = vmatprep.subr.bf16.mxu0 %v19849_v55 }
 0x334   :  { %15591 = vmatpush3.bf16.msra.mxu1 %v19948_v10  ;;  %15735 = vmatpush3.bf16.msra.mxu0 %v19948_v10 }
 0x335   :  { %15592 = vmatprep.subr.bf16.mxu1 %v19849_v55  ;;  %15736 = vmatprep.subr.bf16.mxu0 %v19849_v55 }
 0x338   :  { %15594 = vmatpush3.bf16.msra.mxu1 %v19950_v5  ;;  %15738 = vmatpush3.bf16.msra.mxu0 %v19950_v5 }
 0x339   :  { %15595 = vmatprep.subr.bf16.mxu1 %v19849_v55  ;;  %15739 = vmatprep.subr.bf16.mxu0 %v19849_v55 }
 0x33c   :  { %15597 = vmatpush3.bf16.msra.mxu1 %v19952_v14  ;;  %15741 = vmatpush3.bf16.msra.mxu0 %v19952_v14 }
 0x33d   :  { %15598 = vmatprep.subr.bf16.mxu1 %v19849_v55  ;;  %15742 = vmatprep.subr.bf16.mxu0 %v19849_v55 }
 0x340   :  { %15600 = vmatpush3.bf16.msra.mxu1 %v19953_v62  ;;  %15744 = vmatpush3.bf16.msra.mxu0 %v19953_v62 }
 0x341   :  { %15601 = vmatprep.subr.bf16.mxu1 %v19849_v55  ;;  %15745 = vmatprep.subr.bf16.mxu0 %v19849_v55 }
 0x344   :  { %15603 = vmatpush3.bf16.msra.mxu1 %v18183_v49  ;;  %15747 = vmatpush3.bf16.msra.mxu0 %v18183_v49 }
 0x345   :  { %15604 = vmatprep.subr.bf16.mxu1 %v19849_v55  ;;  %15748 = vmatprep.subr.bf16.mxu0 %v19849_v55 }
 0x348   :  { %15606 = vmatpush3.bf16.msra.mxu1 %v18223_v47  ;;  %15750 = vmatpush3.bf16.msra.mxu0 %v18223_v47 }
 0x349   :  { %15607 = vmatprep.subr.bf16.mxu1 %v19849_v55  ;;  %15751 = vmatprep.subr.bf16.mxu0 %v19849_v55 }
 0x34b   :  { %12961 = vmatmul.mubr.f32.vlgmr.msra.gmra.mrb[8].mxu1 %v19984_v25  ;;  %13171 = vmatmul.mubr.f32.vlgmr.msra.gmra.mrb[8].mxu0 %v19956_v0  ;;  %v98_v0 = vld [vmem:[#allocation5 + $0x20] sm:$0xff]  ;;  %v20011_v25 = vld [vmem:[#allocation39_spill] sm:$0xff] }
 0x34c   :  { %15609 = vmatpush3.bf16.msra.mxu1 %v18500_v46  ;;  %15753 = vmatpush3.bf16.msra.mxu0 %v18500_v46 }
 0x34d   :  { %15610 = vmatprep.subr.bf16.mxu1 %v19849_v55  ;;  %15754 = vmatprep.subr.bf16.mxu0 %v19849_v55 }
 0x34e   :  { %12995 = vmatprep.mubr.msk.f32.mxu1 %vm16909_vm0, %v19867_v36  ;;  %13205 = vmatprep.mubr.msk.f32.mxu0 %vm16909_vm0, %v19867_v36 }
 0x350   :  { %15612 = vmatpush3.bf16.msra.mxu1 %v18512_v35  ;;  %15756 = vmatpush3.bf16.msra.mxu0 %v18512_v35  ;;  %v96_v35 = vld [vmem:[#allocation5 + $0x18] sm:$0xff] }
 0x351   :  { %15613 = vmatprep.subr.bf16.mxu1 %v19849_v55  ;;  %15757 = vmatprep.subr.bf16.mxu0 %v19849_v55  ;;  %v18878_v46 = vand.u32 4294901760, %v96_v35 }
 0x354   :  { %15615 = vmatpush3.bf16.msra.mxu1 %v18526_v19  ;;  %15759 = vmatpush3.bf16.msra.mxu0 %v18526_v19  ;;  %v19996_v19 = vld [vmem:[#allocation19_spill] sm:$0xff] }
 0x355   :  { %15616 = vmatprep.subr.bf16.mxu1 %v19849_v55  ;;  %15760 = vmatprep.subr.bf16.mxu0 %v19849_v55 }
 0x358   :  { %15618 = vmatpush3.bf16.msra.mxu1 %v18536_v43  ;;  %15762 = vmatpush3.bf16.msra.mxu0 %v18536_v43  ;;  %v19997_v43 = vld [vmem:[#allocation21_spill] sm:$0xff] }
 0x359   :  { %15619 = vmatprep.subr.bf16.mxu1 %v19849_v55  ;;  %15763 = vmatprep.subr.bf16.mxu0 %v19849_v55 }
 0x35c   :  { %15621 = vmatpush3.bf16.msra.mxu1 %v18546_v15  ;;  %15765 = vmatpush3.bf16.msra.mxu0 %v18546_v15 }
 0x35d   :  { %15622 = vmatprep.subr.bf16.mxu1 %v19849_v55  ;;  %15766 = vmatprep.subr.bf16.mxu0 %v19849_v55 }
 0x360   :  { %15624 = vmatpush3.bf16.msra.mxu1 %v18556_v33  ;;  %15768 = vmatpush3.bf16.msra.mxu0 %v18556_v33 }
 0x361   :  { %15625 = vmatprep.subr.bf16.mxu1 %v19849_v55  ;;  %15769 = vmatprep.subr.bf16.mxu0 %v19849_v55 }
 0x364   :  { %15627 = vmatpush3.bf16.msra.mxu1 %v18566_v32  ;;  %15771 = vmatpush3.bf16.msra.mxu0 %v18566_v32  ;;  %v19999_v32 = vld [vmem:[#allocation23_spill] sm:$0xff] }
 0x365   :  { %15628 = vmatprep.subr.bf16.mxu1 %v19849_v55  ;;  %15772 = vmatprep.subr.bf16.mxu0 %v19849_v55 }
 0x368   :  { %15630 = vmatpush3.bf16.msra.mxu1 %v18576_v26  ;;  %15774 = vmatpush3.bf16.msra.mxu0 %v18576_v26 }
 0x369   :  { %15631 = vmatprep.subr.bf16.mxu1 %v19849_v55  ;;  %15775 = vmatprep.subr.bf16.mxu0 %v19849_v55 }
 0x36b   :  { %12996 = vmatmul.mubr.f32.vlgmr.msra.gmra.mrb[8].mxu1 %v19982_v39  ;;  %13206 = vmatmul.mubr.f32.vlgmr.msra.gmra.mrb[8].mxu0 %v17321_v11 }
 0x36c   :  { %15633 = vmatpush3.bf16.msra.mxu1 %v18077_v51  ;;  %15777 = vmatpush3.bf16.msra.mxu0 %v18077_v51  ;;  %v19989_v51 = vld [vmem:[#allocation14_spill] sm:$0xff] }
 0x36d   :  { %15634 = vmatprep.subr.bf16.mxu1 %v19849_v55  ;;  %15778 = vmatprep.subr.bf16.mxu0 %v19849_v55 }
 0x36e   :  { %13030 = vmatprep.mubr.msk.f32.mxu1 %vm16909_vm0, %v19867_v36  ;;  %13240 = vmatprep.mubr.msk.f32.mxu0 %vm16909_vm0, %v19867_v36 }
 0x370   :  { %15636 = vmatpush3.bf16.msra.mxu1 %v19946_v50  ;;  %15780 = vmatpush3.bf16.msra.mxu0 %v19946_v50 }
 0x371   :  { %15637 = vmatprep.subr.bf16.mxu1 %v19849_v55  ;;  %15781 = vmatprep.subr.bf16.mxu0 %v19849_v55 }
 0x374   :  { %15639 = vmatpush3.bf16.msra.mxu1 %v19948_v10  ;;  %15783 = vmatpush3.bf16.msra.mxu0 %v19948_v10 }
 0x375   :  { %15640 = vmatprep.subr.bf16.mxu1 %v19849_v55  ;;  %15784 = vmatprep.subr.bf16.mxu0 %v19849_v55 }
 0x378   :  { %15642 = vmatpush3.bf16.msra.mxu1 %v19950_v5  ;;  %15786 = vmatpush3.bf16.msra.mxu0 %v19950_v5 }
 0x379   :  { %15643 = vmatprep.subr.bf16.mxu1 %v19849_v55  ;;  %15787 = vmatprep.subr.bf16.mxu0 %v19849_v55 }
 0x37c   :  { %15645 = vmatpush3.bf16.msra.mxu1 %v19952_v14  ;;  %15789 = vmatpush3.bf16.msra.mxu0 %v19952_v14  ;;  %v19985_v14 = vld [vmem:[#allocation11_spill] sm:$0xff] }
 0x37d   :  { %15646 = vmatprep.subr.bf16.mxu1 %v19849_v55  ;;  %15790 = vmatprep.subr.bf16.mxu0 %v19849_v55 }
 0x380   :  { %15648 = vmatpush3.bf16.msra.mxu1 %v19953_v62  ;;  %15792 = vmatpush3.bf16.msra.mxu0 %v19953_v62  ;;  %v18880_v62 = vand.u32 4294901760, %v98_v0 }
 0x381   :  { %15649 = vmatprep.subr.bf16.mxu1 %v19849_v55  ;;  %15793 = vmatprep.subr.bf16.mxu0 %v19849_v55 }
 0x382   :  { %19988 = vst [vmem:[#allocation49_spill] sm:$0xff] %v18880_v62  ;;  %v18890_v10 = vsub.f32 %v98_v0, %v18880_v62  ;;  %v20013_v0 = vld [vmem:[#allocation41_spill] sm:$0xff] }
 0x384   :  { %15651 = vmatpush3.bf16.msra.mxu1 %v18183_v49  ;;  %15795 = vmatpush3.bf16.msra.mxu0 %v18183_v49  ;;  %v19986_v49 = vld [vmem:[#allocation12_spill] sm:$0xff]  ;;  %19990 = vst [vmem:[#allocation74_spill] sm:$0xff] %v18890_v10  ;;  %v18902_v63 = vand.u32 4294901760, %v18890_v10 }
 0x385   :  { %15652 = vmatprep.subr.bf16.mxu1 %v19849_v55  ;;  %15796 = vmatprep.subr.bf16.mxu0 %v19849_v55 }
 0x386   :  { %19992 = vst [vmem:[#allocation50_spill] sm:$0xff] %v18902_v63  ;;  %v6595_v59 = vsub.f32 %v18890_v10, %v18902_v63 }
 0x388   :  { %15654 = vmatpush3.bf16.msra.mxu1 %v18223_v47  ;;  %15798 = vmatpush3.bf16.msra.mxu0 %v18223_v47  ;;  %v18887_v47 = vsub.f32 %v96_v35, %v18878_v46  ;;  %v18919_v9 = vand.u32 4294901760, %v6595_v59  ;;  %v20012_v35 = vld [vmem:[#allocation40_spill] sm:$0xff]  ;;  %v20021_v59 = vld [vmem:[#allocation30_spill] sm:$0xff] }
 0x389   :  { %15799 = vmatprep.subr.bf16.mxu1 %v19849_v55  ;;  %15943 = vmatprep.subr.bf16.mxu0 %v19849_v55 }
 0x38a   :  { %v18899_v22 = vand.u32 4294901760, %v18887_v47  ;;  %19995 = vst [vmem:[#allocation75_spill] sm:$0xff] %v18919_v9 }
 0x38b   :  { %13031 = vmatmul.mubr.f32.vlgmr.msra.gmra.mrb[8].mxu1 %v19982_v39  ;;  %13241 = vmatmul.mubr.f32.vlgmr.msra.gmra.mrb[8].mxu0 %v17321_v11  ;;  %v19987_v11 = vld [vmem:[#allocation13_spill] sm:$0xff] }
 0x38c   :  { %15801 = vmatpush3.bf16.msra.mxu1 %v19985_v14  ;;  %15945 = vmatpush3.bf16.msra.mxu0 %v19985_v14  ;;  %v5954_v18 = vsub.f32 %v18887_v47, %v18899_v22  ;;  %v20009_v39 = vld [vmem:[#allocation37_spill] sm:$0xff] }
 0x38d   :  { %15802 = vmatprep.subr.bf16.mxu1 %v19849_v55  ;;  %15946 = vmatprep.subr.bf16.mxu0 %v19849_v55 }
 0x38e   :  { %13275 = vmatprep.mubr.msk.f32.mxu1 %vm16909_vm0, %v19867_v36  ;;  %13485 = vmatprep.mubr.msk.f32.mxu0 %vm16909_vm0, %v19867_v36  ;;  %v18917_v8 = vand.u32 4294901760, %v5954_v18  ;;  %v20020_v18 = vld [vmem:[#allocation28_spill] sm:$0xff] }
 0x390   :  { %15804 = vmatpush3.bf16.msra.mxu1 %v19986_v49  ;;  %15948 = vmatpush3.bf16.msra.mxu0 %v19986_v49 }
 0x391   :  { %15805 = vmatprep.subr.bf16.mxu1 %v19849_v55  ;;  %15949 = vmatprep.subr.bf16.mxu0 %v19849_v55 }
 0x394   :  { %15807 = vmatpush3.bf16.msra.mxu1 %v19987_v11  ;;  %15951 = vmatpush3.bf16.msra.mxu0 %v19987_v11 }
 0x395   :  { %15808 = vmatprep.subr.bf16.mxu1 %v19849_v55  ;;  %15952 = vmatprep.subr.bf16.mxu0 %v19849_v55 }
 0x398   :  { %15810 = vmatpush3.bf16.msra.mxu1 %v19989_v51  ;;  %15954 = vmatpush3.bf16.msra.mxu0 %v19989_v51 }
 0x399   :  { %15811 = vmatprep.subr.bf16.mxu1 %v19849_v55  ;;  %15955 = vmatprep.subr.bf16.mxu0 %v19849_v55 }
 0x39c   :  { %15813 = vmatpush3.bf16.msra.mxu1 %v19991_v4  ;;  %15957 = vmatpush3.bf16.msra.mxu0 %v19991_v4 }
 0x39d   :  { %15814 = vmatprep.subr.bf16.mxu1 %v19849_v55  ;;  %15958 = vmatprep.subr.bf16.mxu0 %v19849_v55 }
 0x39e   :  { %v3943_v23 = vpop.f32.mrb[6].mxu1  ;;  %v18896_v5 = vpop.f32.mrb[6].mxu0 }
 0x39f   :  { %v9729_v50 = vmul.f32 %v3943_v23, %v3943_v23  ;;  %v12612_v38 = vpop.f32.mrb[7].mxu1  ;;  %v12822_v58 = vpop.f32.mrb[7].mxu0 }
 0x3a0   :  { %15816 = vmatpush3.bf16.msra.mxu1 %v19993_v52  ;;  %15960 = vmatpush3.bf16.msra.mxu0 %v19993_v52  ;;  %v20016_v38 = vld [vmem:[#allocation20_spill] sm:$0xff]  ;;  %v20017_v58 = vld [vmem:[#allocation22_spill] sm:$0xff] }
 0x3a1   :  { %v9730_v24 = vadd.f32 %v9729_v50, %v18658_v3  ;;  %15817 = vmatprep.subr.bf16.mxu1 %v19849_v55  ;;  %15961 = vmatprep.subr.bf16.mxu0 %v19849_v55  ;;  %v20006_v3 = vld [vmem:[#allocation32_spill] sm:$0xff]  ;;  %v20015_v50 = vld [vmem:[#allocation43_spill] sm:$0xff] }
 0x3a3   :  { %v9731_v7 = vmax.f32 %v9730_v24, 1e-24  ;;  %v20018_v24 = vld [vmem:[#allocation24_spill] sm:$0xff] }
 0x3a4   :  { %15819 = vmatpush3.bf16.msra.mxu1 %v19994_v56  ;;  %15963 = vmatpush3.bf16.msra.mxu0 %v19994_v56 }
 0x3a5   :  { %16822 = vrsqrt.f32 %v9731_v7  ;;  %15820 = vmatprep.subr.bf16.mxu1 %v19849_v55  ;;  %15964 = vmatprep.subr.bf16.mxu0 %v19849_v55  ;;  %v20019_v7 = vld [vmem:[#allocation26_spill] sm:$0xff] }
 0x3a8   :  { %15822 = vmatpush3.bf16.msra.mxu1 %v19996_v19  ;;  %15966 = vmatpush3.bf16.msra.mxu0 %v19996_v19 }
 0x3a9   :  { %15823 = vmatprep.subr.bf16.mxu1 %v19849_v55  ;;  %15967 = vmatprep.subr.bf16.mxu0 %v19849_v55 }
 0x3ab   :  { %13276 = vmatmul.mubr.f32.vlgmr.msra.gmra.mrb[10].mxu1 %v18917_v8  ;;  %13486 = vmatmul.mubr.f32.vlgmr.msra.gmra.mrb[10].mxu0 %v18919_v9  ;;  %v9736_v9 = vmul.f32 %v18896_v5, %v18896_v5 }
 0x3ac   :  { %15825 = vmatpush3.bf16.msra.mxu1 %v19997_v43  ;;  %15969 = vmatpush3.bf16.msra.mxu0 %v19997_v43 }
 0x3ad   :  { %15826 = vmatprep.subr.bf16.mxu1 %v19849_v55  ;;  %15970 = vmatprep.subr.bf16.mxu0 %v19849_v55 }
 0x3ae   :  { %13310 = vmatprep.mubr.msk.f32.mxu1 %vm16909_vm0, %v19867_v36  ;;  %13520 = vmatprep.mubr.msk.f32.mxu0 %vm16909_vm0, %v19867_v36 }
 0x3af   :  { %v16823_v15 = vpop.eup %16822 }
 0x3b0   :  { %v18935_v33 = vmul.f32 %v16823_v15, %v3943_v23  ;;  %15828 = vmatpush3.bf16.msra.mxu1 %v19999_v32  ;;  %15972 = vmatpush3.bf16.msra.mxu0 %v19999_v32  ;;  %v18940_v26 = vmul.f32 %v16823_v15, %v18648_v29  ;;  %v18943_v28 = vmul.f32 %v16823_v15, %v18650_v13  ;;  %v20004_v29 = vld [vmem:[#allocation29_spill] sm:$0xff]  ;;  %v20005_v13 = vld [vmem:[#allocation31_spill] sm:$0xff]  ;;  %v20014_v23 = vld [vmem:[#allocation42_spill] sm:$0xff] }
 0x3b1   :  { %15829 = vmatprep.subr.bf16.mxu1 %v19849_v55  ;;  %15973 = vmatprep.subr.bf16.mxu0 %v19849_v55  ;;  %v20022_v15 = vld [vmem:[#allocation33_spill] sm:$0xff] }
 0x3b2   :  { %19998 = vst [vmem:[#allocation51_spill] sm:$0xff] %v18935_v33  ;;  %20000 = vst [vmem:[#allocation76_spill] sm:$0xff] %v18940_v26  ;;  %v20023_v33 = vld [vmem:[#allocation35_spill] sm:$0xff] }
 0x3b3   :  { %20001 = vst [vmem:[#allocation52_spill] sm:$0xff] %v18943_v28  ;;  %v100_v28 = vld [vmem:[#allocation5 + $0x28] sm:$0xff] }
 0x3b4   :  { %15831 = vmatpush3.bf16.msra.mxu1 %v20002_v41  ;;  %15975 = vmatpush3.bf16.msra.mxu0 %v20002_v41  ;;  %v19141_v26 = vand.u32 4294901760, %v100_v28 }
 0x3b5   :  { %15832 = vmatprep.subr.bf16.mxu1 %v19849_v55  ;;  %15976 = vmatprep.subr.bf16.mxu0 %v19849_v55 }
 0x3b8   :  { %15834 = vmatpush3.bf16.msra.mxu1 %v20003_v12  ;;  %15978 = vmatpush3.bf16.msra.mxu0 %v20003_v12 }
 0x3b9   :  { %15835 = vmatprep.subr.bf16.mxu1 %v19849_v55  ;;  %15979 = vmatprep.subr.bf16.mxu0 %v19849_v55 }
 0x3bc   :  { %15837 = vmatpush3.bf16.msra.mxu1 %v20004_v29  ;;  %15981 = vmatpush3.bf16.msra.mxu0 %v20004_v29 }
 0x3bd   :  { %15838 = vmatprep.subr.bf16.mxu1 %v19849_v55  ;;  %15982 = vmatprep.subr.bf16.mxu0 %v19849_v55 }
 0x3c0   :  { %15840 = vmatpush3.bf16.msra.mxu1 %v20005_v13  ;;  %15984 = vmatpush3.bf16.msra.mxu0 %v20005_v13 }
 0x3c1   :  { %15841 = vmatprep.subr.bf16.mxu1 %v19849_v55  ;;  %15985 = vmatprep.subr.bf16.mxu0 %v19849_v55 }
 0x3c4   :  { %15843 = vmatpush3.bf16.msra.mxu1 %v20006_v3  ;;  %15987 = vmatpush3.bf16.msra.mxu0 %v20006_v3 }
 0x3c5   :  { %15844 = vmatprep.subr.bf16.mxu1 %v19849_v55  ;;  %15988 = vmatprep.subr.bf16.mxu0 %v19849_v55 }
 0x3c8   :  { %15846 = vmatpush3.bf16.msra.mxu1 %v20007_v57  ;;  %15990 = vmatpush3.bf16.msra.mxu0 %v20007_v57 }
 0x3c9   :  { %15847 = vmatprep.subr.bf16.mxu1 %v19849_v55  ;;  %15991 = vmatprep.subr.bf16.mxu0 %v19849_v55 }
 0x3cb   :  { %13311 = vmatmul.mubr.f32.vlgmr.msra.gmra.mrb[10].mxu1 %v18878_v46  ;;  %13521 = vmatmul.mubr.f32.vlgmr.msra.gmra.mrb[10].mxu0 %v18880_v62 }
 0x3cc   :  { %15849 = vmatpush3.bf16.msra.mxu1 %v20008_v1  ;;  %15993 = vmatpush3.bf16.msra.mxu0 %v20008_v1 }
 0x3cd   :  { %15850 = vmatprep.subr.bf16.mxu1 %v19849_v55  ;;  %15994 = vmatprep.subr.bf16.mxu0 %v19849_v55 }
 0x3ce   :  { %13345 = vmatprep.mubr.msk.f32.mxu1 %vm16909_vm0, %v19867_v36  ;;  %13555 = vmatprep.mubr.msk.f32.mxu0 %vm16909_vm0, %v19867_v36 }
 0x3d0   :  { %15852 = vmatpush3.bf16.msra.mxu1 %v20009_v39  ;;  %15996 = vmatpush3.bf16.msra.mxu0 %v20009_v39 }
 0x3d1   :  { %15853 = vmatprep.subr.bf16.mxu1 %v19849_v55  ;;  %15997 = vmatprep.subr.bf16.mxu0 %v19849_v55 }
 0x3d4   :  { %15855 = vmatpush3.bf16.msra.mxu1 %v20010_v30  ;;  %15999 = vmatpush3.bf16.msra.mxu0 %v20010_v30 }
 0x3d5   :  { %15856 = vmatprep.subr.bf16.mxu1 %v19849_v55  ;;  %16000 = vmatprep.subr.bf16.mxu0 %v19849_v55 }
 0x3d8   :  { %15858 = vmatpush3.bf16.msra.mxu1 %v20011_v25  ;;  %16002 = vmatpush3.bf16.msra.mxu0 %v20011_v25 }
 0x3d9   :  { %15859 = vmatprep.subr.bf16.mxu1 %v19849_v55  ;;  %16003 = vmatprep.subr.bf16.mxu0 %v19849_v55 }
 0x3dc   :  { %15861 = vmatpush3.bf16.msra.mxu1 %v20012_v35  ;;  %16005 = vmatpush3.bf16.msra.mxu0 %v20012_v35 }
 0x3dd   :  { %15862 = vmatprep.subr.bf16.mxu1 %v19849_v55  ;;  %16006 = vmatprep.subr.bf16.mxu0 %v19849_v55 }
 0x3e0   :  { %15864 = vmatpush3.bf16.msra.mxu1 %v20013_v0  ;;  %16008 = vmatpush3.bf16.msra.mxu0 %v20013_v0 }
 0x3e1   :  { %15865 = vmatprep.subr.bf16.mxu1 %v19849_v55  ;;  %16009 = vmatprep.subr.bf16.mxu0 %v19849_v55 }
 0x3e4   :  { %15867 = vmatpush3.bf16.msra.mxu1 %v20014_v23  ;;  %16011 = vmatpush3.bf16.msra.mxu0 %v20014_v23 }
 0x3e5   :  { %15868 = vmatprep.subr.bf16.mxu1 %v19849_v55  ;;  %16012 = vmatprep.subr.bf16.mxu0 %v19849_v55 }
 0x3e8   :  { %15870 = vmatpush3.bf16.msra.mxu1 %v20015_v50  ;;  %16014 = vmatpush3.bf16.msra.mxu0 %v20015_v50 }
 0x3e9   :  { %15871 = vmatprep.subr.bf16.mxu1 %v19849_v55  ;;  %16015 = vmatprep.subr.bf16.mxu0 %v19849_v55 }
 0x3eb   :  { %13346 = vmatmul.mubr.f32.vlgmr.msra.gmra.mrb[10].mxu1 %v18887_v47  ;;  %13556 = vmatmul.mubr.f32.vlgmr.msra.gmra.mrb[10].mxu0 %v18890_v10 }
 0x3ec   :  { %15873 = vmatpush3.bf16.msra.mxu1 %v19985_v14  ;;  %16017 = vmatpush3.bf16.msra.mxu0 %v19985_v14 }
 0x3ed   :  { %15874 = vmatprep.subr.bf16.mxu1 %v19849_v55  ;;  %16018 = vmatprep.subr.bf16.mxu0 %v19849_v55 }
 0x3ee   :  { %13380 = vmatprep.mubr.msk.f32.mxu1 %vm16909_vm0, %v19867_v36  ;;  %13590 = vmatprep.mubr.msk.f32.mxu0 %vm16909_vm0, %v19867_v36 }
 0x3f0   :  { %15876 = vmatpush3.bf16.msra.mxu1 %v19986_v49  ;;  %16020 = vmatpush3.bf16.msra.mxu0 %v19986_v49 }
 0x3f1   :  { %15877 = vmatprep.subr.bf16.mxu1 %v19849_v55  ;;  %16021 = vmatprep.subr.bf16.mxu0 %v19849_v55 }
 0x3f4   :  { %15879 = vmatpush3.bf16.msra.mxu1 %v19987_v11  ;;  %16023 = vmatpush3.bf16.msra.mxu0 %v19987_v11 }
 0x3f5   :  { %15880 = vmatprep.subr.bf16.mxu1 %v19849_v55  ;;  %16024 = vmatprep.subr.bf16.mxu0 %v19849_v55 }
 0x3f8   :  { %15882 = vmatpush3.bf16.msra.mxu1 %v19989_v51  ;;  %16026 = vmatpush3.bf16.msra.mxu0 %v19989_v51 }
 0x3f9   :  { %15883 = vmatprep.subr.bf16.mxu1 %v19849_v55  ;;  %16027 = vmatprep.subr.bf16.mxu0 %v19849_v55 }
 0x3fc   :  { %15885 = vmatpush3.bf16.msra.mxu1 %v19991_v4  ;;  %16029 = vmatpush3.bf16.msra.mxu0 %v19991_v4 }
 0x3fd   :  { %15886 = vmatprep.subr.bf16.mxu1 %v19849_v55  ;;  %16030 = vmatprep.subr.bf16.mxu0 %v19849_v55 }
 0x400   :  { %15888 = vmatpush3.bf16.msra.mxu1 %v19993_v52  ;;  %16032 = vmatpush3.bf16.msra.mxu0 %v19993_v52 }
 0x401   :  { %15889 = vmatprep.subr.bf16.mxu1 %v19849_v55  ;;  %16033 = vmatprep.subr.bf16.mxu0 %v19849_v55 }
 0x404   :  { %15891 = vmatpush3.bf16.msra.mxu1 %v19994_v56  ;;  %16035 = vmatpush3.bf16.msra.mxu0 %v19994_v56 }
 0x405   :  { %15892 = vmatprep.subr.bf16.mxu1 %v19849_v55  ;;  %16036 = vmatprep.subr.bf16.mxu0 %v19849_v55 }
 0x408   :  { %15894 = vmatpush3.bf16.msra.mxu1 %v19996_v19  ;;  %16038 = vmatpush3.bf16.msra.mxu0 %v19996_v19 }
 0x409   :  { %15895 = vmatprep.subr.bf16.mxu1 %v19849_v55  ;;  %16039 = vmatprep.subr.bf16.mxu0 %v19849_v55 }
 0x40b   :  { %13381 = vmatmul.mubr.f32.vlgmr.msra.gmra.mrb[10].mxu1 %v18899_v22  ;;  %13591 = vmatmul.mubr.f32.vlgmr.msra.gmra.mrb[10].mxu0 %v18902_v63  ;;  %v19148_v63 = vsub.f32 %v100_v28, %v19141_v26 }
 0x40c   :  { %15897 = vmatpush3.bf16.msra.mxu1 %v20016_v38  ;;  %16041 = vmatpush3.bf16.msra.mxu0 %v20016_v38 }
 0x40d   :  { %15898 = vmatprep.subr.bf16.mxu1 %v19849_v55  ;;  %16042 = vmatprep.subr.bf16.mxu0 %v19849_v55 }
 0x40e   :  { %13415 = vmatprep.mubr.msk.f32.mxu1 %vm16909_vm0, %v19867_v36  ;;  %13625 = vmatprep.mubr.msk.f32.mxu0 %vm16909_vm0, %v19867_v36 }
 0x410   :  { %15900 = vmatpush3.bf16.msra.mxu1 %v20017_v58  ;;  %16044 = vmatpush3.bf16.msra.mxu0 %v20017_v58 }
 0x411   :  { %15901 = vmatprep.subr.bf16.mxu1 %v19849_v55  ;;  %16045 = vmatprep.subr.bf16.mxu0 %v19849_v55 }
 0x414   :  { %15903 = vmatpush3.bf16.msra.mxu1 %v20018_v24  ;;  %16047 = vmatpush3.bf16.msra.mxu0 %v20018_v24 }
 0x415   :  { %15904 = vmatprep.subr.bf16.mxu1 %v19849_v55  ;;  %16048 = vmatprep.subr.bf16.mxu0 %v19849_v55 }
 0x418   :  { %15906 = vmatpush3.bf16.msra.mxu1 %v20019_v7  ;;  %16050 = vmatpush3.bf16.msra.mxu0 %v20019_v7 }
 0x419   :  { %15907 = vmatprep.subr.bf16.mxu1 %v19849_v55  ;;  %16051 = vmatprep.subr.bf16.mxu0 %v19849_v55 }
 0x41c   :  { %15909 = vmatpush3.bf16.msra.mxu1 %v20020_v18  ;;  %16053 = vmatpush3.bf16.msra.mxu0 %v20020_v18 }
 0x41d   :  { %15910 = vmatprep.subr.bf16.mxu1 %v19849_v55  ;;  %16054 = vmatprep.subr.bf16.mxu0 %v19849_v55 }
 0x420   :  { %15912 = vmatpush3.bf16.msra.mxu1 %v20021_v59  ;;  %16056 = vmatpush3.bf16.msra.mxu0 %v20021_v59 }
 0x421   :  { %15913 = vmatprep.subr.bf16.mxu1 %v19849_v55  ;;  %16057 = vmatprep.subr.bf16.mxu0 %v19849_v55 }
 0x424   :  { %15915 = vmatpush3.bf16.msra.mxu1 %v20022_v15  ;;  %16059 = vmatpush3.bf16.msra.mxu0 %v20022_v15  ;;  %v19157_v15 = vand.u32 4294901760, %v19148_v63 }
 0x425   :  { %15916 = vmatprep.subr.bf16.mxu1 %v19849_v55  ;;  %16060 = vmatprep.subr.bf16.mxu0 %v19849_v55 }
 0x426   :  { %v7236_v48 = vsub.f32 %v19148_v63, %v19157_v15 }
 0x428   :  { %15918 = vmatpush3.bf16.msra.mxu1 %v20023_v33  ;;  %16062 = vmatpush3.bf16.msra.mxu0 %v20023_v33 }
 0x429   :  { %15919 = vmatprep.subr.bf16.mxu1 %v19849_v55  ;;  %16063 = vmatprep.subr.bf16.mxu0 %v19849_v55 }
 0x42b   :  { %13416 = vmatmul.mubr.f32.vlgmr.msra.gmra.mrb[10].mxu1 %v18878_v46  ;;  %13626 = vmatmul.mubr.f32.vlgmr.msra.gmra.mrb[10].mxu0 %v18880_v62 }
 0x42c   :  { %15921 = vmatpush3.bf16.msra.mxu1 %v19985_v14  ;;  %16065 = vmatpush3.bf16.msra.mxu0 %v19985_v14 }
 0x42d   :  { %15922 = vmatprep.subr.bf16.mxu1 %v19849_v55  ;;  %16066 = vmatprep.subr.bf16.mxu0 %v19849_v55 }
 0x42e   :  { %13450 = vmatprep.mubr.msk.f32.mxu1 %vm16909_vm0, %v19867_v36  ;;  %13660 = vmatprep.mubr.msk.f32.mxu0 %vm16909_vm0, %v19867_v36 }
 0x430   :  { %15924 = vmatpush3.bf16.msra.mxu1 %v19986_v49  ;;  %16068 = vmatpush3.bf16.msra.mxu0 %v19986_v49 }
 0x431   :  { %15925 = vmatprep.subr.bf16.mxu1 %v19849_v55  ;;  %16069 = vmatprep.subr.bf16.mxu0 %v19849_v55 }
 0x434   :  { %15927 = vmatpush3.bf16.msra.mxu1 %v19987_v11  ;;  %16071 = vmatpush3.bf16.msra.mxu0 %v19987_v11 }
 0x435   :  { %15928 = vmatprep.subr.bf16.mxu1 %v19849_v55  ;;  %16072 = vmatprep.subr.bf16.mxu0 %v19849_v55 }
 0x438   :  { %15930 = vmatpush3.bf16.msra.mxu1 %v19989_v51  ;;  %16074 = vmatpush3.bf16.msra.mxu0 %v19989_v51 }
 0x439   :  { %15931 = vmatprep.subr.bf16.mxu1 %v19849_v55  ;;  %16075 = vmatprep.subr.bf16.mxu0 %v19849_v55 }
 0x43c   :  { %15933 = vmatpush3.bf16.msra.mxu1 %v19991_v4  ;;  %16077 = vmatpush3.bf16.msra.mxu0 %v19991_v4 }
 0x43d   :  { %15934 = vmatprep.subr.bf16.mxu1 %v19849_v55  ;;  %16078 = vmatprep.subr.bf16.mxu0 %v19849_v55 }
 0x440   :  { %15936 = vmatpush3.bf16.msra.mxu1 %v19993_v52  ;;  %16080 = vmatpush3.bf16.msra.mxu0 %v19993_v52 }
 0x441   :  { %15937 = vmatprep.subr.bf16.mxu1 %v19849_v55  ;;  %16081 = vmatprep.subr.bf16.mxu0 %v19849_v55 }
 0x444   :  { %15939 = vmatpush3.bf16.msra.mxu1 %v19994_v56  ;;  %16083 = vmatpush3.bf16.msra.mxu0 %v19994_v56 }
 0x445   :  { %15940 = vmatprep.subr.bf16.mxu1 %v19849_v55  ;;  %16084 = vmatprep.subr.bf16.mxu0 %v19849_v55 }
 0x448   :  { %15942 = vmatpush3.bf16.msra.mxu1 %v19996_v19  ;;  %16086 = vmatpush3.bf16.msra.mxu0 %v19996_v19 }
 0x449   :  { %16087 = vmatprep.subr.bf16.mxu1 %v19849_v55  ;;  %16231 = vmatprep.subr.bf16.mxu0 %v19849_v55 }
 0x44b   :  { %13451 = vmatmul.mubr.f32.vlgmr.msra.gmra.mrb[10].mxu1 %v18878_v46  ;;  %13661 = vmatmul.mubr.f32.vlgmr.msra.gmra.mrb[10].mxu0 %v18880_v62 }
 0x44c   :  { %16089 = vmatpush3.bf16.msra.mxu1 %v19985_v14  ;;  %16233 = vmatpush3.bf16.msra.mxu0 %v17551_v44 }
 0x44d   :  { %16090 = vmatprep.subr.bf16.mxu1 %v19849_v55  ;;  %16234 = vmatprep.subr.bf16.mxu0 %v19849_v55 }
 0x44e   :  { %13695 = vmatprep.mubr.msk.f32.mxu1 %vm16909_vm0, %v19867_v36  ;;  %13905 = vmatprep.mubr.msk.f32.mxu0 %vm16909_vm0, %v19867_v36 }
 0x450   :  { %16092 = vmatpush3.bf16.msra.mxu1 %v19986_v49  ;;  %16236 = vmatpush3.bf16.msra.mxu0 %v19945_v42 }
 0x451   :  { %16093 = vmatprep.subr.bf16.mxu1 %v19849_v55  ;;  %16237 = vmatprep.subr.bf16.mxu0 %v19849_v55 }
 0x454   :  { %16095 = vmatpush3.bf16.msra.mxu1 %v19987_v11  ;;  %16239 = vmatpush3.bf16.msra.mxu0 %v19947_v37 }
 0x455   :  { %16096 = vmatprep.subr.bf16.mxu1 %v19849_v55  ;;  %16240 = vmatprep.subr.bf16.mxu0 %v19849_v55 }
 0x458   :  { %16098 = vmatpush3.bf16.msra.mxu1 %v19989_v51  ;;  %16242 = vmatpush3.bf16.msra.mxu0 %v19949_v6 }
 0x459   :  { %16099 = vmatprep.subr.bf16.mxu1 %v19849_v55  ;;  %16243 = vmatprep.subr.bf16.mxu0 %v19849_v55 }
 0x45c   :  { %16101 = vmatpush3.bf16.msra.mxu1 %v19991_v4  ;;  %16245 = vmatpush3.bf16.msra.mxu0 %v19951_v40 }
 0x45d   :  { %16102 = vmatprep.subr.bf16.mxu1 %v19849_v55  ;;  %16246 = vmatprep.subr.bf16.mxu0 %v19849_v55 }
 0x45e   :  { %v5225_v10 = vpop.f32.mrb[8].mxu1  ;;  %v5866_v62 = vpop.f32.mrb[8].mxu0 }
 0x45f   :  { %v9737_v17 = vmul.f32 %v5225_v10, %v5225_v10  ;;  %v13032_v33 = vpop.f32.mrb[9].mxu1  ;;  %v13242_v16 = vpop.f32.mrb[9].mxu0  ;;  %v9739_v20 = vmul.f32 %v5866_v62, %v5866_v62 }
 0x460   :  { %16104 = vmatpush3.bf16.msra.mxu1 %v19993_v52  ;;  %16248 = vmatpush3.bf16.msra.mxu0 %v17637_v53 }
 0x461   :  { %v9738_v28 = vadd.f32 %v9737_v17, %v9736_v9  ;;  %16105 = vmatprep.subr.bf16.mxu1 %v19849_v55  ;;  %16249 = vmatprep.subr.bf16.mxu0 %v19849_v55  ;;  %v19169_v17 = vand.u32 4294901760, %v7236_v48  ;;  %v20025_v48 = vld [vmem:[#allocation54_spill] sm:$0xff] }
 0x463   :  { %v9740_v59 = vadd.f32 %v9739_v20, %v9738_v28  ;;  %v20024_v20 = vld [vmem:[#allocation53_spill] sm:$0xff] }
 0x464   :  { %16107 = vmatpush3.bf16.msra.mxu1 %v19994_v56  ;;  %16251 = vmatpush3.bf16.msra.mxu0 %v17651_v60 }
 0x465   :  { %v9741_v16 = vmax.f32 %v9740_v59, 1e-24  ;;  %16108 = vmatprep.subr.bf16.mxu1 %v19849_v55  ;;  %16252 = vmatprep.subr.bf16.mxu0 %v19849_v55 }
 0x467   :  { %16824 = vrsqrt.f32 %v9741_v16 }
 0x468   :  { %16110 = vmatpush3.bf16.msra.mxu1 %v19996_v19  ;;  %16254 = vmatpush3.bf16.msra.mxu0 %v17689_v45 }
 0x469   :  { %16111 = vmatprep.subr.bf16.mxu1 %v19849_v55  ;;  %16255 = vmatprep.subr.bf16.mxu0 %v19849_v55 }
 0x46b   :  { %13696 = vmatmul.mubr.f32.vlgmr.msra.gmra.mrb[12].mxu1 %v19169_v17  ;;  %13906 = vmatmul.mubr.f32.vlgmr.msra.gmra.mrb[12].mxu0 %v18917_v8 }
 0x46c   :  { %16113 = vmatpush3.bf16.msra.mxu1 %v19997_v43  ;;  %16257 = vmatpush3.bf16.msra.mxu0 %v20024_v20 }
 0x46d   :  { %16114 = vmatprep.subr.bf16.mxu1 %v19849_v55  ;;  %16258 = vmatprep.subr.bf16.mxu0 %v19849_v55 }
 0x46e   :  { %13730 = vmatprep.mubr.msk.f32.mxu1 %vm16909_vm0, %v19867_v36  ;;  %13940 = vmatprep.mubr.msk.f32.mxu0 %vm16909_vm0, %v19867_v36 }
 0x470   :  { %16116 = vmatpush3.bf16.msra.mxu1 %v19999_v32  ;;  %16260 = vmatpush3.bf16.msra.mxu0 %v20025_v48  ;;  %v20029_v32 = vld [vmem:[#allocation58_spill] sm:$0xff] }
 0x471   :  { %v16825_v9 = vpop.eup %16824  ;;  %16117 = vmatprep.subr.bf16.mxu1 %v19849_v55  ;;  %16261 = vmatprep.subr.bf16.mxu0 %v19849_v55 }
 0x472   :  { %v19189_v8 = vmul.f32 %v16825_v9, %v5866_v62  ;;  %v19192_v43 = vmul.f32 %v16825_v9, %v18896_v5  ;;  %v19194_v33 = vmul.f32 %v16825_v9, %v5225_v10  ;;  %v20026_v62 = vld [vmem:[#allocation55_spill] sm:$0xff]  ;;  %v20027_v10 = vld [vmem:[#allocation56_spill] sm:$0xff]  ;;  %v20028_v5 = vld [vmem:[#allocation57_spill] sm:$0xff] }
 0x474   :  { %16119 = vmatpush3.bf16.msra.mxu1 %v20002_v41  ;;  %16263 = vmatpush3.bf16.msra.mxu0 %v17767_v61  ;;  %v20030_v41 = vld [vmem:[#allocation59_spill] sm:$0xff] }
 0x475   :  { %16120 = vmatprep.subr.bf16.mxu1 %v19849_v55  ;;  %16264 = vmatprep.subr.bf16.mxu0 %v19849_v55 }
 0x478   :  { %16122 = vmatpush3.bf16.msra.mxu1 %v20003_v12  ;;  %16266 = vmatpush3.bf16.msra.mxu0 %v17781_v2  ;;  %v20031_v12 = vld [vmem:[#allocation60_spill] sm:$0xff] }
 0x479   :  { %16123 = vmatprep.subr.bf16.mxu1 %v19849_v55  ;;  %16267 = vmatprep.subr.bf16.mxu0 %v19849_v55 }
 0x47c   :  { %16125 = vmatpush3.bf16.msra.mxu1 %v20004_v29  ;;  %16269 = vmatpush3.bf16.msra.mxu0 %v17805_v34  ;;  %v20032_v29 = vld [vmem:[#allocation61_spill] sm:$0xff] }
 0x47d   :  { %16126 = vmatprep.subr.bf16.mxu1 %v19849_v55  ;;  %16270 = vmatprep.subr.bf16.mxu0 %v19849_v55 }
 0x480   :  { %16128 = vmatpush3.bf16.msra.mxu1 %v20005_v13  ;;  %16272 = vmatpush3.bf16.msra.mxu0 %v20026_v62  ;;  %v20033_v13 = vld [vmem:[#allocation62_spill] sm:$0xff] }
 0x481   :  { %16129 = vmatprep.subr.bf16.mxu1 %v19849_v55  ;;  %16273 = vmatprep.subr.bf16.mxu0 %v19849_v55 }
 0x484   :  { %16131 = vmatpush3.bf16.msra.mxu1 %v20006_v3  ;;  %16275 = vmatpush3.bf16.msra.mxu0 %v20027_v10  ;;  %v20034_v3 = vld [vmem:[#allocation63_spill] sm:$0xff] }
 0x485   :  { %16132 = vmatprep.subr.bf16.mxu1 %v19849_v55  ;;  %16276 = vmatprep.subr.bf16.mxu0 %v19849_v55 }
 0x488   :  { %16134 = vmatpush3.bf16.msra.mxu1 %v20007_v57  ;;  %16278 = vmatpush3.bf16.msra.mxu0 %v20028_v5  ;;  %v20035_v57 = vld [vmem:[#allocation64_spill] sm:$0xff] }
 0x489   :  { %16135 = vmatprep.subr.bf16.mxu1 %v19849_v55  ;;  %16279 = vmatprep.subr.bf16.mxu0 %v19849_v55 }
 0x48b   :  { %13731 = vmatmul.mubr.f32.vlgmr.msra.gmra.mrb[12].mxu1 %v19141_v26  ;;  %13941 = vmatmul.mubr.f32.vlgmr.msra.gmra.mrb[12].mxu0 %v18878_v46 }
 0x48c   :  { %16137 = vmatpush3.bf16.msra.mxu1 %v20008_v1  ;;  %16281 = vmatpush3.bf16.msra.mxu0 %v20029_v32  ;;  %v20036_v1 = vld [vmem:[#allocation65_spill] sm:$0xff] }
 0x48d   :  { %16138 = vmatprep.subr.bf16.mxu1 %v19849_v55  ;;  %16282 = vmatprep.subr.bf16.mxu0 %v19849_v55 }
 0x48e   :  { %13765 = vmatprep.mubr.msk.f32.mxu1 %vm16909_vm0, %v19867_v36  ;;  %13975 = vmatprep.mubr.msk.f32.mxu0 %vm16909_vm0, %v19867_v36 }
 0x490   :  { %16140 = vmatpush3.bf16.msra.mxu1 %v20009_v39  ;;  %16284 = vmatpush3.bf16.msra.mxu0 %v20030_v41  ;;  %v20039_v39 = vld [vmem:[#allocation71_spill] sm:$0xff] }
 0x491   :  { %16141 = vmatprep.subr.bf16.mxu1 %v19849_v55  ;;  %16285 = vmatprep.subr.bf16.mxu0 %v19849_v55 }
 0x494   :  { %16143 = vmatpush3.bf16.msra.mxu1 %v20010_v30  ;;  %16287 = vmatpush3.bf16.msra.mxu0 %v20031_v12  ;;  %v20040_v30 = vld [vmem:[#allocation33_spill] sm:$0xff] }
 0x495   :  { %16144 = vmatprep.subr.bf16.mxu1 %v19849_v55  ;;  %16288 = vmatprep.subr.bf16.mxu0 %v19849_v55 }
 0x498   :  { %16146 = vmatpush3.bf16.msra.mxu1 %v20011_v25  ;;  %16290 = vmatpush3.bf16.msra.mxu0 %v20032_v29  ;;  %v20041_v25 = vld [vmem:[#allocation72_spill] sm:$0xff] }
 0x499   :  { %16147 = vmatprep.subr.bf16.mxu1 %v19849_v55  ;;  %16291 = vmatprep.subr.bf16.mxu0 %v19849_v55 }
 0x49c   :  { %16149 = vmatpush3.bf16.msra.mxu1 %v20012_v35  ;;  %16293 = vmatpush3.bf16.msra.mxu0 %v20033_v13  ;;  %v20042_v35 = vld [vmem:[#allocation35_spill] sm:$0xff] }
 0x49d   :  { %16150 = vmatprep.subr.bf16.mxu1 %v19849_v55  ;;  %16294 = vmatprep.subr.bf16.mxu0 %v19849_v55 }
 0x4a0   :  { %16152 = vmatpush3.bf16.msra.mxu1 %v20013_v0  ;;  %16296 = vmatpush3.bf16.msra.mxu0 %v20034_v3  ;;  %v20043_v0 = vld [vmem:[#allocation73_spill] sm:$0xff] }
 0x4a1   :  { %16153 = vmatprep.subr.bf16.mxu1 %v19849_v55  ;;  %16297 = vmatprep.subr.bf16.mxu0 %v19849_v55 }
 0x4a4   :  { %16155 = vmatpush3.bf16.msra.mxu1 %v20014_v23  ;;  %16299 = vmatpush3.bf16.msra.mxu0 %v20035_v57 }
 0x4a5   :  { %16156 = vmatprep.subr.bf16.mxu1 %v19849_v55  ;;  %16300 = vmatprep.subr.bf16.mxu0 %v19849_v55 }
 0x4a8   :  { %16158 = vmatpush3.bf16.msra.mxu1 %v20015_v50  ;;  %16302 = vmatpush3.bf16.msra.mxu0 %v20036_v1 }
 0x4a9   :  { %16159 = vmatprep.subr.bf16.mxu1 %v19849_v55  ;;  %16303 = vmatprep.subr.bf16.mxu0 %v19849_v55 }
 0x4ab   :  { %13766 = vmatmul.mubr.f32.vlgmr.msra.gmra.mrb[12].mxu1 %v19148_v63  ;;  %13976 = vmatmul.mubr.f32.vlgmr.msra.gmra.mrb[12].mxu0 %v18887_v47  ;;  %v20037_v47 = vld [vmem:[#allocation70_spill] sm:$0xff] }
 0x4ac   :  { %16161 = vmatpush3.bf16.msra.mxu1 %v19985_v14  ;;  %16305 = vmatpush3.bf16.msra.mxu0 %v17551_v44 }
 0x4ad   :  { %16162 = vmatprep.subr.bf16.mxu1 %v19849_v55  ;;  %16306 = vmatprep.subr.bf16.mxu0 %v19849_v55 }
 0x4ae   :  { %13800 = vmatprep.mubr.msk.f32.mxu1 %vm16909_vm0, %v19867_v36  ;;  %14010 = vmatprep.mubr.msk.f32.mxu0 %vm16909_vm0, %v19867_v36 }
 0x4b0   :  { %16164 = vmatpush3.bf16.msra.mxu1 %v19986_v49  ;;  %16308 = vmatpush3.bf16.msra.mxu0 %v19945_v42 }
 0x4b1   :  { %16165 = vmatprep.subr.bf16.mxu1 %v19849_v55  ;;  %16309 = vmatprep.subr.bf16.mxu0 %v19849_v55 }
 0x4b4   :  { %16167 = vmatpush3.bf16.msra.mxu1 %v19987_v11  ;;  %16311 = vmatpush3.bf16.msra.mxu0 %v19947_v37 }
 0x4b5   :  { %16168 = vmatprep.subr.bf16.mxu1 %v19849_v55  ;;  %16312 = vmatprep.subr.bf16.mxu0 %v19849_v55 }
 0x4b8   :  { %16170 = vmatpush3.bf16.msra.mxu1 %v19989_v51  ;;  %16314 = vmatpush3.bf16.msra.mxu0 %v19949_v6 }
 0x4b9   :  { %16171 = vmatprep.subr.bf16.mxu1 %v19849_v55  ;;  %16315 = vmatprep.subr.bf16.mxu0 %v19849_v55 }
 0x4bc   :  { %16173 = vmatpush3.bf16.msra.mxu1 %v19991_v4  ;;  %16317 = vmatpush3.bf16.msra.mxu0 %v19951_v40 }
 0x4bd   :  { %16174 = vmatprep.subr.bf16.mxu1 %v19849_v55  ;;  %16318 = vmatprep.subr.bf16.mxu0 %v19849_v55 }
 0x4c0   :  { %16176 = vmatpush3.bf16.msra.mxu1 %v19993_v52  ;;  %16320 = vmatpush3.bf16.msra.mxu0 %v17637_v53 }
 0x4c1   :  { %16177 = vmatprep.subr.bf16.mxu1 %v19849_v55  ;;  %16321 = vmatprep.subr.bf16.mxu0 %v19849_v55 }
 0x4c4   :  { %16179 = vmatpush3.bf16.msra.mxu1 %v19994_v56  ;;  %16323 = vmatpush3.bf16.msra.mxu0 %v17651_v60 }
 0x4c5   :  { %16180 = vmatprep.subr.bf16.mxu1 %v19849_v55  ;;  %16324 = vmatprep.subr.bf16.mxu0 %v19849_v55 }
 0x4c8   :  { %16182 = vmatpush3.bf16.msra.mxu1 %v19996_v19  ;;  %16326 = vmatpush3.bf16.msra.mxu0 %v17689_v45 }
 0x4c9   :  { %16183 = vmatprep.subr.bf16.mxu1 %v19849_v55  ;;  %16327 = vmatprep.subr.bf16.mxu0 %v19849_v55 }
 0x4cb   :  { %13801 = vmatmul.mubr.f32.vlgmr.msra.gmra.mrb[12].mxu1 %v19157_v15  ;;  %14011 = vmatmul.mubr.f32.vlgmr.msra.gmra.mrb[12].mxu0 %v18899_v22  ;;  %v20038_v22 = vld [vmem:[#allocation30_spill] sm:$0xff] }
 0x4cc   :  { %16185 = vmatpush3.bf16.msra.mxu1 %v20016_v38  ;;  %16329 = vmatpush3.bf16.msra.mxu0 %v19958_v54 }
 0x4cd   :  { %16186 = vmatprep.subr.bf16.mxu1 %v19849_v55  ;;  %16330 = vmatprep.subr.bf16.mxu0 %v19849_v55 }
 0x4ce   :  { %13835 = vmatprep.mubr.msk.f32.mxu1 %vm16909_vm0, %v19867_v36  ;;  %14045 = vmatprep.mubr.msk.f32.mxu0 %vm16909_vm0, %v19867_v36 }
 0x4d0   :  { %16188 = vmatpush3.bf16.msra.mxu1 %v20017_v58  ;;  %16332 = vmatpush3.bf16.msra.mxu0 %v19961_v31 }
 0x4d1   :  { %16189 = vmatprep.subr.bf16.mxu1 %v19849_v55  ;;  %16333 = vmatprep.subr.bf16.mxu0 %v19849_v55 }
 0x4d4   :  { %16191 = vmatpush3.bf16.msra.mxu1 %v20018_v24  ;;  %16335 = vmatpush3.bf16.msra.mxu0 %v19964_v27 }
 0x4d5   :  { %16192 = vmatprep.subr.bf16.mxu1 %v19849_v55  ;;  %16336 = vmatprep.subr.bf16.mxu0 %v19849_v55 }
 0x4d8   :  { %16194 = vmatpush3.bf16.msra.mxu1 %v20019_v7  ;;  %16338 = vmatpush3.bf16.msra.mxu0 %v19967_v21 }
 0x4d9   :  { %16195 = vmatprep.subr.bf16.mxu1 %v19849_v55  ;;  %16339 = vmatprep.subr.bf16.mxu0 %v19849_v55 }
 0x4dc   :  { %16197 = vmatpush3.bf16.msra.mxu1 %v20020_v18  ;;  %16341 = vmatpush3.bf16.msra.mxu0 %v20037_v47 }
 0x4dd   :  { %16198 = vmatprep.subr.bf16.mxu1 %v19849_v55  ;;  %16342 = vmatprep.subr.bf16.mxu0 %v19849_v55 }
 0x4e0   :  { %16200 = vmatpush3.bf16.msra.mxu1 %v20038_v22  ;;  %16344 = vmatpush3.bf16.msra.mxu0 %v20039_v39  ;;  %v20048_v22 = vld [vmem:[#allocation81_spill] sm:$0xff] }
 0x4e1   :  { %16201 = vmatprep.subr.bf16.mxu1 %v19849_v55  ;;  %16345 = vmatprep.subr.bf16.mxu0 %v19849_v55 }
 0x4e4   :  { %16203 = vmatpush3.bf16.msra.mxu1 %v20040_v30  ;;  %16347 = vmatpush3.bf16.msra.mxu0 %v20041_v25  ;;  %v20049_v30 = vld [vmem:[#allocation82_spill] sm:$0xff] }
 0x4e5   :  { %16204 = vmatprep.subr.bf16.mxu1 %v19849_v55  ;;  %16348 = vmatprep.subr.bf16.mxu0 %v19849_v55 }
 0x4e8   :  { %16206 = vmatpush3.bf16.msra.mxu1 %v20042_v35  ;;  %16350 = vmatpush3.bf16.msra.mxu0 %v20043_v0  ;;  %v20050_v35 = vld [vmem:[#allocation80_spill] sm:$0xff] }
 0x4e9   :  { %16207 = vmatprep.subr.bf16.mxu1 %v19849_v55  ;;  %16351 = vmatprep.subr.bf16.mxu0 %v19849_v55 }
 0x4eb   :  { %13836 = vmatmul.mubr.f32.vlgmr.msra.gmra.mrb[12].mxu1 %v19141_v26  ;;  %14046 = vmatmul.mubr.f32.vlgmr.msra.gmra.mrb[12].mxu0 %v18878_v46 }
 0x4ec   :  { %16209 = vmatpush3.bf16.msra.mxu1 %v19985_v14  ;;  %16353 = vmatpush3.bf16.msra.mxu0 %v17551_v44 }
 0x4ed   :  { %16210 = vmatprep.subr.bf16.mxu1 %v19849_v55  ;;  %16354 = vmatprep.subr.bf16.mxu0 %v19849_v55 }
 0x4ee   :  { %13870 = vmatprep.mubr.msk.f32.mxu1 %vm16909_vm0, %v19867_v36  ;;  %14080 = vmatprep.mubr.msk.f32.mxu0 %vm16909_vm0, %v19867_v36 }
 0x4f0   :  { %16212 = vmatpush3.bf16.msra.mxu1 %v19986_v49  ;;  %16356 = vmatpush3.bf16.msra.mxu0 %v19945_v42 }
 0x4f1   :  { %16213 = vmatprep.subr.bf16.mxu1 %v19849_v55  ;;  %16357 = vmatprep.subr.bf16.mxu0 %v19849_v55 }
 0x4f4   :  { %16215 = vmatpush3.bf16.msra.mxu1 %v19987_v11  ;;  %16359 = vmatpush3.bf16.msra.mxu0 %v19947_v37 }
 0x4f5   :  { %16216 = vmatprep.subr.bf16.mxu1 %v19849_v55  ;;  %16360 = vmatprep.subr.bf16.mxu0 %v19849_v55 }
 0x4f8   :  { %16218 = vmatpush3.bf16.msra.mxu1 %v19989_v51  ;;  %16362 = vmatpush3.bf16.msra.mxu0 %v19949_v6 }
 0x4f9   :  { %16219 = vmatprep.subr.bf16.mxu1 %v19849_v55  ;;  %16363 = vmatprep.subr.bf16.mxu0 %v19849_v55 }
 0x4fc   :  { %16221 = vmatpush3.bf16.msra.mxu1 %v19991_v4  ;;  %16365 = vmatpush3.bf16.msra.mxu0 %v19951_v40 }
 0x4fd   :  { %16222 = vmatprep.subr.bf16.mxu1 %v19849_v55  ;;  %16366 = vmatprep.subr.bf16.mxu0 %v19849_v55 }
 0x500   :  { %16224 = vmatpush3.bf16.msra.mxu1 %v19993_v52  ;;  %16368 = vmatpush3.bf16.msra.mxu0 %v17637_v53 }
 0x501   :  { %16225 = vmatprep.subr.bf16.mxu1 %v19849_v55  ;;  %16369 = vmatprep.subr.bf16.mxu0 %v19849_v55 }
 0x504   :  { %16227 = vmatpush3.bf16.msra.mxu1 %v19994_v56  ;;  %16371 = vmatpush3.bf16.msra.mxu0 %v17651_v60  ;;  %v20044_v56 = vld [vmem:[#allocation75_spill] sm:$0xff] }
 0x505   :  { %16228 = vmatprep.subr.bf16.mxu1 %v19849_v55  ;;  %16372 = vmatprep.subr.bf16.mxu0 %v19849_v55 }
 0x508   :  { %16230 = vmatpush3.bf16.msra.mxu1 %v19996_v19  ;;  %16374 = vmatpush3.bf16.msra.mxu0 %v17689_v45 }
 0x509   :  { %16375 = vmatprep.subr.bf16.mxu1 %v19849_v55  ;;  %16519 = vmatprep.subr.bf16.mxu0 %v19849_v55 }
 0x50b   :  { %13871 = vmatmul.mubr.f32.vlgmr.msra.gmra.mrb[12].mxu1 %v19141_v26  ;;  %14081 = vmatmul.mubr.f32.vlgmr.msra.gmra.mrb[12].mxu0 %v18878_v46 }
 0x50c   :  { %16377 = vmatpush3.bf16.msra.mxu1 %v17551_v44  ;;  %16521 = vmatpush3.bf16.msra.mxu0 %v17551_v44 }
 0x50d   :  { %16378 = vmatprep.subr.bf16.mxu1 %v19849_v55  ;;  %16522 = vmatprep.subr.bf16.mxu0 %v19849_v55 }
 0x50e   :  { %14115 = vmatprep.mubr.msk.f32.mxu1 %vm16909_vm0, %v19867_v36  ;;  %14325 = vmatprep.mubr.msk.f32.mxu0 %vm16909_vm0, %v19867_v36 }
 0x510   :  { %16380 = vmatpush3.bf16.msra.mxu1 %v19945_v42  ;;  %16524 = vmatpush3.bf16.msra.mxu0 %v19945_v42 }
 0x511   :  { %16381 = vmatprep.subr.bf16.mxu1 %v19849_v55  ;;  %16525 = vmatprep.subr.bf16.mxu0 %v19849_v55 }
 0x514   :  { %16383 = vmatpush3.bf16.msra.mxu1 %v19947_v37  ;;  %16527 = vmatpush3.bf16.msra.mxu0 %v19947_v37 }
 0x515   :  { %16384 = vmatprep.subr.bf16.mxu1 %v19849_v55  ;;  %16528 = vmatprep.subr.bf16.mxu0 %v19849_v55 }
 0x518   :  { %16386 = vmatpush3.bf16.msra.mxu1 %v19949_v6  ;;  %16530 = vmatpush3.bf16.msra.mxu0 %v19949_v6 }
 0x519   :  { %16387 = vmatprep.subr.bf16.mxu1 %v19849_v55  ;;  %16531 = vmatprep.subr.bf16.mxu0 %v19849_v55 }
 0x51c   :  { %16389 = vmatpush3.bf16.msra.mxu1 %v19951_v40  ;;  %16533 = vmatpush3.bf16.msra.mxu0 %v19951_v40 }
 0x51d   :  { %16390 = vmatprep.subr.bf16.mxu1 %v19849_v55  ;;  %16534 = vmatprep.subr.bf16.mxu0 %v19849_v55 }
 0x51e   :  { %v19398_v14 = vpop.f32.mrb[10].mxu1  ;;  %v19400_v49 = vpop.f32.mrb[10].mxu0 }
 0x51f   :  { %v9746_v11 = vmul.f32 %v19398_v14, %v19398_v14  ;;  %v9747_v46 = vmul.f32 %v19400_v49, %v19400_v49  ;;  %v13452_v51 = vpop.f32.mrb[11].mxu1  ;;  %v13662_v4 = vpop.f32.mrb[11].mxu0 }
 0x520   :  { %16392 = vmatpush3.bf16.msra.mxu1 %v17637_v53  ;;  %16536 = vmatpush3.bf16.msra.mxu0 %v17637_v53  ;;  %v20053_v51 = vld [vmem:[#allocation51_spill] sm:$0xff] }
 0x521   :  { %v19408_v52 = vadd.f32 %v9747_v46, %v9746_v11  ;;  %16393 = vmatprep.subr.bf16.mxu1 %v19849_v55  ;;  %16537 = vmatprep.subr.bf16.mxu0 %v19849_v55  ;;  %v20052_v11 = vld [vmem:[#allocation52_spill] sm:$0xff] }
 0x524   :  { %16395 = vmatpush3.bf16.msra.mxu1 %v17651_v60  ;;  %16539 = vmatpush3.bf16.msra.mxu0 %v17651_v60 }
 0x525   :  { %16396 = vmatprep.subr.bf16.mxu1 %v19849_v55  ;;  %16540 = vmatprep.subr.bf16.mxu0 %v19849_v55 }
 0x528   :  { %16398 = vmatpush3.bf16.msra.mxu1 %v17689_v45  ;;  %16542 = vmatpush3.bf16.msra.mxu0 %v17689_v45 }
 0x529   :  { %16399 = vmatprep.subr.bf16.mxu1 %v19849_v55  ;;  %16543 = vmatprep.subr.bf16.mxu0 %v19849_v55 }
 0x52b   :  { %14116 = vmatmul.mubr.f32.vlgmr.msra.gmra.mrb[14].mxu1 %v20044_v56  ;;  %14326 = vmatmul.mubr.f32.vlgmr.msra.gmra.mrb[14].mxu0 %v19169_v17 }
 0x52c   :  { %16401 = vmatpush3.bf16.msra.mxu1 %v20024_v20  ;;  %16545 = vmatpush3.bf16.msra.mxu0 %v20024_v20 }
 0x52d   :  { %16402 = vmatprep.subr.bf16.mxu1 %v19849_v55  ;;  %16546 = vmatprep.subr.bf16.mxu0 %v19849_v55 }
 0x52e   :  { %14150 = vmatprep.mubr.msk.f32.mxu1 %vm16909_vm0, %v19867_v36  ;;  %14360 = vmatprep.mubr.msk.f32.mxu0 %vm16909_vm0, %v19867_v36 }
 0x530   :  { %16404 = vmatpush3.bf16.msra.mxu1 %v20025_v48  ;;  %16548 = vmatpush3.bf16.msra.mxu0 %v20025_v48 }
 0x531   :  { %16405 = vmatprep.subr.bf16.mxu1 %v19849_v55  ;;  %16549 = vmatprep.subr.bf16.mxu0 %v19849_v55 }
 0x534   :  { %16407 = vmatpush3.bf16.msra.mxu1 %v17767_v61  ;;  %16551 = vmatpush3.bf16.msra.mxu0 %v17767_v61  ;;  %v20045_v61 = vld [vmem:[#allocation49_spill] sm:$0xff] }
 0x535   :  { %16408 = vmatprep.subr.bf16.mxu1 %v19849_v55  ;;  %16552 = vmatprep.subr.bf16.mxu0 %v19849_v55 }
 0x538   :  { %16410 = vmatpush3.bf16.msra.mxu1 %v17781_v2  ;;  %16554 = vmatpush3.bf16.msra.mxu0 %v17781_v2  ;;  %v20046_v2 = vld [vmem:[#allocation74_spill] sm:$0xff] }
 0x539   :  { %16411 = vmatprep.subr.bf16.mxu1 %v19849_v55  ;;  %16555 = vmatprep.subr.bf16.mxu0 %v19849_v55 }
 0x53c   :  { %16413 = vmatpush3.bf16.msra.mxu1 %v17805_v34  ;;  %16557 = vmatpush3.bf16.msra.mxu0 %v17805_v34  ;;  %v20047_v34 = vld [vmem:[#allocation50_spill] sm:$0xff] }
 0x53d   :  { %16414 = vmatprep.subr.bf16.mxu1 %v19849_v55  ;;  %16558 = vmatprep.subr.bf16.mxu0 %v19849_v55 }
 0x540   :  { %16416 = vmatpush3.bf16.msra.mxu1 %v20026_v62  ;;  %16560 = vmatpush3.bf16.msra.mxu0 %v20026_v62 }
 0x541   :  { %16417 = vmatprep.subr.bf16.mxu1 %v19849_v55  ;;  %16561 = vmatprep.subr.bf16.mxu0 %v19849_v55 }
 0x544   :  { %16419 = vmatpush3.bf16.msra.mxu1 %v20027_v10  ;;  %16563 = vmatpush3.bf16.msra.mxu0 %v20027_v10 }
 0x545   :  { %16420 = vmatprep.subr.bf16.mxu1 %v19849_v55  ;;  %16564 = vmatprep.subr.bf16.mxu0 %v19849_v55 }
 0x548   :  { %16422 = vmatpush3.bf16.msra.mxu1 %v20028_v5  ;;  %16566 = vmatpush3.bf16.msra.mxu0 %v20028_v5 }
 0x549   :  { %16423 = vmatprep.subr.bf16.mxu1 %v19849_v55  ;;  %16567 = vmatprep.subr.bf16.mxu0 %v19849_v55 }
 0x54b   :  { %14151 = vmatmul.mubr.f32.vlgmr.msra.gmra.mrb[14].mxu1 %v20045_v61  ;;  %14361 = vmatmul.mubr.f32.vlgmr.msra.gmra.mrb[14].mxu0 %v19141_v26 }
 0x54c   :  { %16425 = vmatpush3.bf16.msra.mxu1 %v20029_v32  ;;  %16569 = vmatpush3.bf16.msra.mxu0 %v20029_v32 }
 0x54d   :  { %16426 = vmatprep.subr.bf16.mxu1 %v19849_v55  ;;  %16570 = vmatprep.subr.bf16.mxu0 %v19849_v55 }
 0x54e   :  { %14185 = vmatprep.mubr.msk.f32.mxu1 %vm16909_vm0, %v19867_v36  ;;  %14395 = vmatprep.mubr.msk.f32.mxu0 %vm16909_vm0, %v19867_v36 }
 0x550   :  { %16428 = vmatpush3.bf16.msra.mxu1 %v20030_v41  ;;  %16572 = vmatpush3.bf16.msra.mxu0 %v20030_v41 }
 0x551   :  { %16429 = vmatprep.subr.bf16.mxu1 %v19849_v55  ;;  %16573 = vmatprep.subr.bf16.mxu0 %v19849_v55 }
 0x554   :  { %16431 = vmatpush3.bf16.msra.mxu1 %v20031_v12  ;;  %16575 = vmatpush3.bf16.msra.mxu0 %v20031_v12 }
 0x555   :  { %16432 = vmatprep.subr.bf16.mxu1 %v19849_v55  ;;  %16576 = vmatprep.subr.bf16.mxu0 %v19849_v55 }
 0x558   :  { %16434 = vmatpush3.bf16.msra.mxu1 %v20032_v29  ;;  %16578 = vmatpush3.bf16.msra.mxu0 %v20032_v29 }
 0x559   :  { %16435 = vmatprep.subr.bf16.mxu1 %v19849_v55  ;;  %16579 = vmatprep.subr.bf16.mxu0 %v19849_v55 }
 0x55c   :  { %16437 = vmatpush3.bf16.msra.mxu1 %v20033_v13  ;;  %16581 = vmatpush3.bf16.msra.mxu0 %v20033_v13 }
 0x55d   :  { %16438 = vmatprep.subr.bf16.mxu1 %v19849_v55  ;;  %16582 = vmatprep.subr.bf16.mxu0 %v19849_v55 }
 0x560   :  { %16440 = vmatpush3.bf16.msra.mxu1 %v20034_v3  ;;  %16584 = vmatpush3.bf16.msra.mxu0 %v20034_v3 }
 0x561   :  { %16441 = vmatprep.subr.bf16.mxu1 %v19849_v55  ;;  %16585 = vmatprep.subr.bf16.mxu0 %v19849_v55 }
 0x564   :  { %16443 = vmatpush3.bf16.msra.mxu1 %v20035_v57  ;;  %16587 = vmatpush3.bf16.msra.mxu0 %v20035_v57 }
 0x565   :  { %16444 = vmatprep.subr.bf16.mxu1 %v19849_v55  ;;  %16588 = vmatprep.subr.bf16.mxu0 %v19849_v55 }
 0x568   :  { %16446 = vmatpush3.bf16.msra.mxu1 %v20036_v1  ;;  %16590 = vmatpush3.bf16.msra.mxu0 %v20036_v1 }
 0x569   :  { %16447 = vmatprep.subr.bf16.mxu1 %v19849_v55  ;;  %16591 = vmatprep.subr.bf16.mxu0 %v19849_v55 }
 0x56b   :  { %14186 = vmatmul.mubr.f32.vlgmr.msra.gmra.mrb[14].mxu1 %v20046_v2  ;;  %14396 = vmatmul.mubr.f32.vlgmr.msra.gmra.mrb[14].mxu0 %v19148_v63 }
 0x56c   :  { %16449 = vmatpush3.bf16.msra.mxu1 %v17551_v44  ;;  %16593 = vmatpush3.bf16.msra.mxu0 %v17551_v44 }
 0x56d   :  { %16450 = vmatprep.subr.bf16.mxu1 %v19849_v55  ;;  %16594 = vmatprep.subr.bf16.mxu0 %v19849_v55 }
 0x56e   :  { %14220 = vmatprep.mubr.msk.f32.mxu1 %vm16909_vm0, %v19867_v36  ;;  %14430 = vmatprep.mubr.msk.f32.mxu0 %vm16909_vm0, %v19867_v36 }
 0x570   :  { %16452 = vmatpush3.bf16.msra.mxu1 %v19945_v42  ;;  %16596 = vmatpush3.bf16.msra.mxu0 %v19945_v42 }
 0x571   :  { %16453 = vmatprep.subr.bf16.mxu1 %v19849_v55  ;;  %16597 = vmatprep.subr.bf16.mxu0 %v19849_v55 }
 0x574   :  { %16455 = vmatpush3.bf16.msra.mxu1 %v19947_v37  ;;  %16599 = vmatpush3.bf16.msra.mxu0 %v19947_v37 }
 0x575   :  { %16456 = vmatprep.subr.bf16.mxu1 %v19849_v55  ;;  %16600 = vmatprep.subr.bf16.mxu0 %v19849_v55 }
 0x578   :  { %16458 = vmatpush3.bf16.msra.mxu1 %v19949_v6  ;;  %16602 = vmatpush3.bf16.msra.mxu0 %v19949_v6 }
 0x579   :  { %16459 = vmatprep.subr.bf16.mxu1 %v19849_v55  ;;  %16603 = vmatprep.subr.bf16.mxu0 %v19849_v55 }
 0x57c   :  { %16461 = vmatpush3.bf16.msra.mxu1 %v19951_v40  ;;  %16605 = vmatpush3.bf16.msra.mxu0 %v19951_v40 }
 0x57d   :  { %16462 = vmatprep.subr.bf16.mxu1 %v19849_v55  ;;  %16606 = vmatprep.subr.bf16.mxu0 %v19849_v55 }
 0x580   :  { %16464 = vmatpush3.bf16.msra.mxu1 %v17637_v53  ;;  %16608 = vmatpush3.bf16.msra.mxu0 %v17637_v53 }
 0x581   :  { %16465 = vmatprep.subr.bf16.mxu1 %v19849_v55  ;;  %16609 = vmatprep.subr.bf16.mxu0 %v19849_v55 }
 0x584   :  { %16467 = vmatpush3.bf16.msra.mxu1 %v17651_v60  ;;  %16611 = vmatpush3.bf16.msra.mxu0 %v17651_v60 }
 0x585   :  { %16468 = vmatprep.subr.bf16.mxu1 %v19849_v55  ;;  %16612 = vmatprep.subr.bf16.mxu0 %v19849_v55 }
 0x588   :  { %16470 = vmatpush3.bf16.msra.mxu1 %v17689_v45  ;;  %16614 = vmatpush3.bf16.msra.mxu0 %v17689_v45 }
 0x589   :  { %16471 = vmatprep.subr.bf16.mxu1 %v19849_v55  ;;  %16615 = vmatprep.subr.bf16.mxu0 %v19849_v55 }
 0x58b   :  { %14221 = vmatmul.mubr.f32.vlgmr.msra.gmra.mrb[14].mxu1 %v20047_v34  ;;  %14431 = vmatmul.mubr.f32.vlgmr.msra.gmra.mrb[14].mxu0 %v19157_v15 }
 0x58c   :  { %16473 = vmatpush3.bf16.msra.mxu1 %v19958_v54  ;;  %16617 = vmatpush3.bf16.msra.mxu0 %v19958_v54 }
 0x58d   :  { %16474 = vmatprep.subr.bf16.mxu1 %v19849_v55  ;;  %16618 = vmatprep.subr.bf16.mxu0 %v19849_v55 }
 0x58e   :  { %14255 = vmatprep.mubr.msk.f32.mxu1 %vm16909_vm0, %v19867_v36  ;;  %14465 = vmatprep.mubr.msk.f32.mxu0 %vm16909_vm0, %v19867_v36 }
 0x590   :  { %16476 = vmatpush3.bf16.msra.mxu1 %v19961_v31  ;;  %16620 = vmatpush3.bf16.msra.mxu0 %v19961_v31 }
 0x591   :  { %16477 = vmatprep.subr.bf16.mxu1 %v19849_v55  ;;  %16621 = vmatprep.subr.bf16.mxu0 %v19849_v55 }
 0x594   :  { %16479 = vmatpush3.bf16.msra.mxu1 %v19964_v27  ;;  %16623 = vmatpush3.bf16.msra.mxu0 %v19964_v27 }
 0x595   :  { %16480 = vmatprep.subr.bf16.mxu1 %v19849_v55  ;;  %16624 = vmatprep.subr.bf16.mxu0 %v19849_v55 }
 0x598   :  { %16482 = vmatpush3.bf16.msra.mxu1 %v19967_v21  ;;  %16626 = vmatpush3.bf16.msra.mxu0 %v19967_v21 }
 0x599   :  { %16483 = vmatprep.subr.bf16.mxu1 %v19849_v55  ;;  %16627 = vmatprep.subr.bf16.mxu0 %v19849_v55 }
 0x59c   :  { %16485 = vmatpush3.bf16.msra.mxu1 %v20037_v47  ;;  %16629 = vmatpush3.bf16.msra.mxu0 %v20037_v47 }
 0x59d   :  { %16486 = vmatprep.subr.bf16.mxu1 %v19849_v55  ;;  %16630 = vmatprep.subr.bf16.mxu0 %v19849_v55 }
 0x5a0   :  { %16488 = vmatpush3.bf16.msra.mxu1 %v20039_v39  ;;  %16632 = vmatpush3.bf16.msra.mxu0 %v20039_v39 }
 0x5a1   :  { %16489 = vmatprep.subr.bf16.mxu1 %v19849_v55  ;;  %16633 = vmatprep.subr.bf16.mxu0 %v19849_v55 }
 0x5a4   :  { %16491 = vmatpush3.bf16.msra.mxu1 %v20041_v25  ;;  %16635 = vmatpush3.bf16.msra.mxu0 %v20041_v25 }
 0x5a5   :  { %16492 = vmatprep.subr.bf16.mxu1 %v19849_v55  ;;  %16636 = vmatprep.subr.bf16.mxu0 %v19849_v55 }
 0x5a8   :  { %16494 = vmatpush3.bf16.msra.mxu1 %v20043_v0  ;;  %16638 = vmatpush3.bf16.msra.mxu0 %v20043_v0 }
 0x5a9   :  { %16495 = vmatprep.subr.bf16.mxu1 %v19849_v55  ;;  %16639 = vmatprep.subr.bf16.mxu0 %v19849_v55 }
 0x5ab   :  { %14256 = vmatmul.mubr.f32.vlgmr.msra.gmra.mrb[14].mxu1 %v20045_v61  ;;  %14466 = vmatmul.mubr.f32.vlgmr.msra.gmra.mrb[14].mxu0 %v19141_v26 }
 0x5ac   :  { %16497 = vmatpush3.bf16.msra.mxu1 %v17551_v44  ;;  %16641 = vmatpush3.bf16.msra.mxu0 %v17551_v44 }
 0x5ad   :  { %16498 = vmatprep.subr.bf16.mxu1 %v19849_v55  ;;  %16642 = vmatprep.subr.bf16.mxu0 %v19849_v55 }
 0x5ae   :  { %14290 = vmatprep.mubr.msk.f32.mxu1 %vm16909_vm0, %v19867_v36  ;;  %14500 = vmatprep.mubr.msk.f32.mxu0 %vm16909_vm0, %v19867_v36 }
 0x5b0   :  { %16500 = vmatpush3.bf16.msra.mxu1 %v19945_v42  ;;  %16644 = vmatpush3.bf16.msra.mxu0 %v19945_v42 }
 0x5b1   :  { %16501 = vmatprep.subr.bf16.mxu1 %v19849_v55  ;;  %16645 = vmatprep.subr.bf16.mxu0 %v19849_v55 }
 0x5b4   :  { %16503 = vmatpush3.bf16.msra.mxu1 %v19947_v37  ;;  %16647 = vmatpush3.bf16.msra.mxu0 %v19947_v37 }
 0x5b5   :  { %16504 = vmatprep.subr.bf16.mxu1 %v19849_v55  ;;  %16648 = vmatprep.subr.bf16.mxu0 %v19849_v55 }
 0x5b8   :  { %16506 = vmatpush3.bf16.msra.mxu1 %v19949_v6  ;;  %16650 = vmatpush3.bf16.msra.mxu0 %v19949_v6 }
 0x5b9   :  { %16507 = vmatprep.subr.bf16.mxu1 %v19849_v55  ;;  %16651 = vmatprep.subr.bf16.mxu0 %v19849_v55 }
 0x5bc   :  { %16509 = vmatpush3.bf16.msra.mxu1 %v19951_v40  ;;  %16653 = vmatpush3.bf16.msra.mxu0 %v19951_v40 }
 0x5bd   :  { %16510 = vmatprep.subr.bf16.mxu1 %v19849_v55  ;;  %16654 = vmatprep.subr.bf16.mxu0 %v19849_v55 }
 0x5c0   :  { %16512 = vmatpush3.bf16.msra.mxu1 %v17637_v53  ;;  %16656 = vmatpush3.bf16.msra.mxu0 %v17637_v53 }
 0x5c1   :  { %16513 = vmatprep.subr.bf16.mxu1 %v19849_v55  ;;  %16657 = vmatprep.subr.bf16.mxu0 %v19849_v55 }
 0x5c4   :  { %16515 = vmatpush3.bf16.msra.mxu1 %v17651_v60  ;;  %16659 = vmatpush3.bf16.msra.mxu0 %v17651_v60 }
 0x5c5   :  { %16516 = vmatprep.subr.bf16.mxu1 %v19849_v55  ;;  %16660 = vmatprep.subr.bf16.mxu0 %v19849_v55 }
 0x5c8   :  { %16518 = vmatpush3.bf16.msra.mxu1 %v17689_v45  ;;  %16662 = vmatpush3.bf16.msra.mxu0 %v17689_v45 }
 0x5cb   :  { %14291 = vmatmul.mubr.f32.vlgmr.msra.gmra.mrb[14].mxu1 %v20045_v61  ;;  %14501 = vmatmul.mubr.f32.vlgmr.msra.gmra.mrb[14].mxu0 %v19141_v26 }
 0x5de   :  { %v7789_v44 = vpop.f32.mrb[12].mxu1  ;;  %v8430_v53 = vpop.f32.mrb[12].mxu0 }
 0x5df   :  { %v9749_v36 = vmul.f32 %v7789_v44, %v7789_v44  ;;  %v13872_v40 = vpop.f32.mrb[13].mxu1  ;;  %v14082_v54 = vpop.f32.mrb[13].mxu0  ;;  %v9756_v21 = vmul.f32 %v8430_v53, %v8430_v53 }
 0x5e1   :  { %v9750_v6 = vadd.f32 %v9749_v36, %v19408_v52 }
 0x5e3   :  { %v9751_v60 = vmax.f32 %v9750_v6, 1e-24 }
 0x5e5   :  { %16826 = vrsqrt.f32 %v9751_v60 }
 0x5ef   :  { %v16827_v42 = vpop.eup %16826 }
 0x5f0   :  { %v9755_v37 = vmul.f32 %v16827_v42, %v7789_v44  ;;  %v9753_v55 = vmul.f32 %v16827_v42, %v19398_v14  ;;  %v9754_v31 = vmul.f32 %v16827_v42, %v19400_v49  ;;  %v20051_v14 = vld [vmem:[#allocation76_spill] sm:$0xff] }
 0x69e   :  { %v9071_v45 = vpop.f32.mrb[14].mxu1  ;;  %v9712_v27 = vpop.f32.mrb[14].mxu0 }
 0x69f   :  { %v9757_v63 = vmul.f32 %v9071_v45, %v9071_v45  ;;  %v14292_v19 = vpop.f32.mrb[15].mxu1  ;;  %v14502_v26 = vpop.f32.mrb[15].mxu0  ;;  %v9759_v50 = vmul.f32 %v9712_v27, %v9712_v27 }
 0x6a1   :  { %v9758_v23 = vadd.f32 %v9757_v63, %v9756_v21 }
 0x6a3   :  { %v9760_v38 = vadd.f32 %v9759_v50, %v9758_v23 }
 0x6a5   :  { %v9761_v58 = vmax.f32 %v9760_v38, 1e-24 }
 0x6a7   :  { %16828 = vrsqrt.f32 %v9761_v58 }
 0x6b1   :  { %v16829_v24 = vpop.eup %16828 }
 0x6b2   :  { %v9763_v7 = vmul.f32 %v16829_v24, %v8430_v53  ;;  %v9764_v18 = vmul.f32 %v16829_v24, %v9071_v45  ;;  %v9765_v59 = vmul.f32 %v16829_v24, %v9712_v27 }
 0x6b4   :  { %v9766_v15 = vmul.f32 %v9765_v59, %v9754_v31  ;;  %v9767_v28 = vmul.f32 %v9764_v18, %v9755_v37  ;;  %v9769_v16 = vmul.f32 %v9763_v7, %v9755_v37  ;;  %v9770_v17 = vmul.f32 %v9765_v59, %v9753_v55 }
 0x6b5   :  { %v9772_v20 = vmul.f32 %v9764_v18, %v9753_v55  ;;  %v9773_v48 = vmul.f32 %v9763_v7, %v9754_v31 }
 0x6b6   :  { %v9768_v9 = vsub.f32 %v9766_v15, %v9767_v28  ;;  %v9771_v62 = vsub.f32 %v9769_v16, %v9770_v17 }
 0x6b7   :  { %v9774_v10 = vsub.f32 %v9772_v20, %v9773_v48 }
 0x6b8   :  { %v9775_v5 = vmul.f32 %v9768_v9, %v9768_v9  ;;  %v9776_v32 = vmul.f32 %v9771_v62, %v9771_v62 }
 0x6b9   :  { %v9778_v12 = vmul.f32 %v9774_v10, %v9774_v10 }
 0x6ba   :  { %v9777_v41 = vadd.f32 %v9776_v32, %v9775_v5 }
 0x6bc   :  { %v9779_v29 = vadd.f32 %v9778_v12, %v9777_v41 }
 0x6be   :  { %v9780_v13 = vmax.f32 %v9779_v29, 1e-24 }
 0x6c0   :  { %16830 = vrsqrt.f32 %v9780_v13 }
 0x6ca   :  { %v16831_v3 = vpop.eup %16830 }
 0x6cb   :  { %v9782_v57 = vmul.f32 %v16831_v3, %v9768_v9  ;;  %v9783_v1 = vmul.f32 %v16831_v3, %v9771_v62  ;;  %v9784_v47 = vmul.f32 %v16831_v3, %v9774_v10 }
 0x6cd   :  { %v9785_v39 = vmul.f32 %v9782_v57, %v20048_v22  ;;  %v9786_v25 = vmul.f32 %v9783_v1, %v20049_v30  ;;  %v9788_v0 = vmul.f32 %v9784_v47, %v20050_v35  ;;  %v9791_v49 = vmul.f32 %v9782_v57, %v20051_v14 }
 0x6ce   :  { %v9792_v46 = vmul.f32 %v9783_v1, %v20052_v11  ;;  %v9794_v4 = vmul.f32 %v9784_v47, %v20053_v51  ;;  %v9797_v52 = vmul.f32 %v9782_v57, %v19192_v43  ;;  %v9798_v56 = vmul.f32 %v9783_v1, %v19194_v33 }
 0x6cf   :  { %v9787_v61 = vadd.f32 %v9786_v25, %v9785_v39  ;;  %v9800_v2 = vmul.f32 %v9784_v47, %v19189_v8 }
 0x6d0   :  { %v9793_v34 = vadd.f32 %v9792_v46, %v9791_v49  ;;  %v9799_v44 = vadd.f32 %v9798_v56, %v9797_v52 }
 0x6d1   :  { %v9789_v53 = vadd.f32 %v9788_v0, %v9787_v61 }
 0x6d2   :  { %v9795_v36 = vadd.f32 %v9794_v4, %v9793_v34  ;;  %v9801_v40 = vadd.f32 %v9800_v2, %v9799_v44 }
 0x6d3   :  { %v9790_v54 = vand.u32 2147483647, %v9789_v53 }
 0x6d4   :  { %v9796_v6 = vand.u32 2147483647, %v9795_v36  ;;  %v9802_v60 = vand.u32 2147483647, %v9801_v40 }
 0x6d6   :  { %v9803_v42 = vadd.f32 %v9796_v6, %v9790_v54 }
 0x6d8   :  { %v9804_v37 = vadd.f32 %v9803_v42, %v9802_v60 }
 0x6da   :  { %9806 = vst [vmem:[#allocation7] sm:$0xff] %v9804_v37 }
 0x6db   :  { %16887 = shalt.err (!%p16884_p6)
}
 0x6dc   :  { %s16888_s10 = scalar_lea.hbm %s19636_s2, 128 }
 0x6dd   :  { %p16889_p7 = scmp.ne.s32.totalorder %s19636_s2, %s16888_s10  ;;  %p16892_p8 = scmp.lt.u32.totalorder %s16888_s10, %s19636_s2 }
 0x6df   :  { %p16894_p9 = pnand %p16892_p8, %p16889_p7 }
 0x6e1   :  { %16897 = shalt.err (!%p16894_p9)
}
 0x6e2   :  { %9816 = dma.vmem_to_hbm [thread:$0]  %s9814_s6, 128, %s19636_s2, [#allocation4]  }
 0x6e3   :  { %16902 = dma.done.wait [#allocation4], 128  }
 0x6e4   :  { %16903 = vsyncadd [#allocation4], 4294967168 }
 0x6e5   :  { %9820 = vsyncpa [#allocation3], 1 }
 0x6e6   :  { %9821 = vsyncpa [#allocation6], 1 }
 0x6e7   :  { %9822 = vsyncpa [#allocation4], 1 }

</bundles_post_ra>
